<compile_context>
chip_gen: v6e
topology: v6e:2x2x1
jax: 0.10.0
libtpu: 0.0.40
codegen_flags: <defaults>
</compile_context>

<pallas_src>
import math

import jax
import jax.numpy as jnp
from jax.experimental import pallas as pl
from jax.experimental.pallas import tpu as pltpu

LANE = 128  # lane-aligned width used for padded hidden state and per-gate blocks


# ----------------------------------------------------------------------------
# Fused decoder kernel: LSTM stack + FC head, everything resident in VMEM
# ----------------------------------------------------------------------------
def _make_decoder_kernel(num_layers, seq_len):
    T = seq_len

    def kernel(*args):
        x_ref, h0_ref = args[0], args[1]
        lw = args[2:2 + 3 * num_layers]                  # (wih, whh, bias) per layer
        (fw1_ref, fb1_ref, fw2_ref, fb2_ref,
         o_ref, y_sc) = args[2 + 3 * num_layers:]

        B, _, D = x_ref.shape
        HP, G4 = lw[1].shape                             # padded hidden, 4 * padded gate
        G = G4 // 4

        def run_layer(gx_steps, whh, h_init, write_seq):
            # gx_steps[t]: (B, 4G) precomputed x-projection + bias at step t.
            h = h_init
            c = jnp.zeros_like(h_init)
            for t in range(T):                           # fully unrolled recurrence
                gates = gx_steps[t] + jnp.dot(
                    h, whh, preferred_element_type=jnp.float32)
                i_g = jax.nn.sigmoid(gates[:, 0 * G:1 * G])   # lane-aligned gate slices
                f_g = jax.nn.sigmoid(gates[:, 1 * G:2 * G])
                g_g = jnp.tanh(gates[:, 2 * G:3 * G])
                o_g = jax.nn.sigmoid(gates[:, 3 * G:4 * G])
                c = f_g * c + i_g * g_g
                h = o_g * jnp.tanh(c)
                if write_seq:                            # time-major seq for next layer
                    y_sc[t * B:(t + 1) * B, :] = h
            return h

        # ---- layer 0: input projection for all timesteps in one MXU matmul ----
        wih0, whh0, b0 = lw[0][...], lw[1][...], lw[2][...]
        x2d = x_ref[...].reshape(B * T, D)               # rows ordered (b, t)
        gx = jnp.dot(x2d, wih0, preferred_element_type=jnp.float32) + b0
        gx = gx.reshape(B, T, G4)
        h_last = run_layer([gx[:, t, :] for t in range(T)], whh0, h0_ref[0],
                           write_seq=num_layers > 1)

        # ---- layers 1 .. L-1 ----
        for l in range(1, num_layers):
            # TODO(synk): training-mode inter-layer dropout (p=0.5) not
            # implemented; inference identity matches the eval() module.
            wih, whh, bias = lw[3 * l][...], lw[3 * l + 1][...], lw[3 * l + 2][...]
            gx = jnp.dot(y_sc[...], wih, preferred_element_type=jnp.float32) + bias
            h_last = run_layer([gx[t * B:(t + 1) * B, :] for t in range(T)],
                               whh, h0_ref[l], write_seq=l < num_layers - 1)

        # ---- FC head: Linear(50,50) -> ReLU -> [Dropout p=0.5: identity] -> Linear(50,3)
        z = jnp.dot(h_last, fw1_ref[...], preferred_element_type=jnp.float32)
        z = jnp.maximum(z + fb1_ref[...], 0.0)
        o_ref[...] = (jnp.dot(z, fw2_ref[...], preferred_element_type=jnp.float32)
                      + fb2_ref[...])

    return kernel


def decoder_forward(params, x, h0):
    """x: (B, T, input_size) batch_first; h0: (num_layers, B, hidden_size).
    Returns logits of shape (B, num_classes)."""
    B, T, _ = x.shape
    num_layers, _, H = h0.shape
    HP = params["fw1"].shape[0]
    num_classes = params["fw2"].shape[1]

    x = x.astype(jnp.float32)
    # Zero-pad h0's hidden dim to the lane-aligned carry width (tiny one-off op).
    h0p = jnp.pad(h0.astype(jnp.float32), ((0, 0), (0, 0), (0, HP - H)))

    inputs = [x, h0p]
    for l in range(num_layers):
        inputs.extend(params["lstm"][l])
    inputs.extend([params["fw1"], params["fb1"], params["fw2"], params["fb2"]])

    return pl.pallas_call(
        _make_decoder_kernel(num_layers, T),
        out_shape=jax.ShapeDtypeStruct((B, num_classes), jnp.float32),
        in_specs=[pl.BlockSpec(memory_space=pltpu.MemorySpace.VMEM)
                  for _ in inputs],
        out_specs=pl.BlockSpec(memory_space=pltpu.MemorySpace.VMEM),
        scratch_shapes=[pltpu.VMEM((T * B, HP), jnp.float32)],   # hidden seq buffer
    )(*inputs)


# ----------------------------------------------------------------------------
# Parameters: raw (PyTorch-style) init + lane-aligned packing for the kernel
# ----------------------------------------------------------------------------
def init_params(key, input_size, hidden_size, num_layers, num_classes=3):
    H = hidden_size
    k = 1.0 / math.sqrt(H)
    params = {"lstm": []}
    for l in range(num_layers):
        d_in = input_size if l == 0 else H
        key, k1, k2, k3, k4 = jax.random.split(key, 5)
        w_ih = jax.random.uniform(k1, (4 * H, d_in), jnp.float32, -k, k)
        w_hh = jax.random.uniform(k2, (4 * H, H), jnp.float32, -k, k)
        b_ih = jax.random.uniform(k3, (4 * H,), jnp.float32, -k, k)
        b_hh = jax.random.uniform(k4, (4 * H,), jnp.float32, -k, k)
        params["lstm"].append((w_ih.T, w_hh.T, b_ih + b_hh))
    kf = 1.0 / math.sqrt(50)
    key, k1, k2, k3, k4 = jax.random.split(key, 5)
    params["w1_T"] = jax.random.uniform(k1, (50, 50), jnp.float32, -kf, kf)
    params["b1"] = jax.random.uniform(k2, (50,), jnp.float32, -kf, kf)
    params["w2_T"] = jax.random.uniform(k3, (50, num_classes), jnp.float32, -kf, kf)
    params["b2"] = jax.random.uniform(k4, (num_classes,), jnp.float32, -kf, kf)
    return params


def pack_params(raw, hidden_size, num_layers, lane=LANE):
    """Lane-aligned layout for the fused kernel: each gate gets its own
    `lane`-wide block; hidden/cell carried at `lane` lanes (zero padded)."""
    H, G = hidden_size, lane
    assert H <= G, "hidden_size must fit in one lane block"

    def pad_gate_cols(w):                                # (rows, 4H) -> (rows, 4G)
        return jnp.concatenate(
            [jnp.pad(w[:, k * H:(k + 1) * H], ((0, 0), (0, G - H)))
             for k in range(4)], axis=1)

    packed = {"lstm": []}
    for l in range(num_layers):
        w_ih_T, w_hh_T, bias = raw["lstm"][l]
        wih = pad_gate_cols(w_ih_T)
        if l > 0:                                        # input is the padded hidden
            wih = jnp.pad(wih, ((0, G - H), (0, 0)))
        whh = jnp.pad(pad_gate_cols(w_hh_T), ((0, G - H), (0, 0)))
        b = pad_gate_cols(bias.reshape(1, 4 * H))
        packed["lstm"].append((wih, whh, b))

    f_in, f_mid = raw["w1_T"].shape
    packed["fw1"] = jnp.pad(raw["w1_T"], ((0, G - f_in), (0, G - f_mid)))
    packed["fb1"] = jnp.pad(raw["b1"].reshape(1, -1), ((0, 0), (0, G - f_mid)))
    packed["fw2"] = jnp.pad(raw["w2_T"], ((0, G - f_mid), (0, 0)))
    packed["fb2"] = raw["b2"].reshape(1, -1)
    return packed


# ----------------------------------------------------------------------------
# Pure-JAX reference (for correctness check)
# ----------------------------------------------------------------------------
def reference_forward(params, x, h0):
    B, T, _ = x.shape
    num_layers = h0.shape[0]
    H = h0.shape[-1]
    inp = x.astype(jnp.float32)
    h_last = None
    for l in range(num_layers):
        wih_T, whh_T, bias = params["lstm"][l]
        h = h0[l]
        c = jnp.zeros((B, H), jnp.float32)
        ys = []
        for t in range(T):
            gates = inp[:, t, :] @ wih_T + h @ whh_T + bias
            i_g = jax.nn.sigmoid(gates[:, 0 * H:1 * H])
            f_g = jax.nn.sigmoid(gates[:, 1 * H:2 * H])
            g_g = jnp.tanh(gates[:, 2 * H:3 * H])
            o_g = jax.nn.sigmoid(gates[:, 3 * H:4 * H])
            c = f_g * c + i_g * g_g
            h = o_g * jnp.tanh(c)
            ys.append(h)
        inp = jnp.stack(ys, axis=1)
        h_last = h
    z = jnp.maximum(h_last @ params["w1_T"] + params["b1"], 0.0)
    return z @ params["w2_T"] + params["b2"]


if __name__ == "__main__":
    # Module hyper-params: the fc head hard-codes 50 features -> hidden_size=50.
    INPUT_SIZE = 32
    HIDDEN_SIZE = 50
    NUM_LAYERS = 2
    BATCH = 2
    SEQ = 8
    NUM_CLASSES = 3

    raw = init_params(jax.random.PRNGKey(42), INPUT_SIZE, HIDDEN_SIZE,
                      NUM_LAYERS, NUM_CLASSES)
    packed = pack_params(raw, HIDDEN_SIZE, NUM_LAYERS)

    kx, kh = jax.random.split(jax.random.PRNGKey(0))
    x = jax.random.normal(kx, (BATCH, SEQ, INPUT_SIZE), jnp.float32)
    h0 = jax.random.normal(kh, (NUM_LAYERS, BATCH, HIDDEN_SIZE), jnp.float32)

    out = jax.block_until_ready(decoder_forward(packed, x, h0))
    ref = reference_forward(raw, x, h0)

    assert out.shape == (BATCH, NUM_CLASSES), out.shape
    assert jnp.allclose(out, ref, atol=1e-4, rtol=1e-4), (out, ref)
    print("KERNEL_OK")
</pallas_src>

<mosaic_0001>
module attributes {stable_mosaic.version = 11 : i64} {
  func.func @kernel(%arg0: memref<2x8x32xf32, #tpu.memory_space<vmem>>, %arg1: memref<2x2x128xf32, #tpu.memory_space<vmem>>, %arg2: memref<32x512xf32, #tpu.memory_space<vmem>>, %arg3: memref<128x512xf32, #tpu.memory_space<vmem>>, %arg4: memref<1x512xf32, #tpu.memory_space<vmem>>, %arg5: memref<128x512xf32, #tpu.memory_space<vmem>>, %arg6: memref<128x512xf32, #tpu.memory_space<vmem>>, %arg7: memref<1x512xf32, #tpu.memory_space<vmem>>, %arg8: memref<128x128xf32, #tpu.memory_space<vmem>>, %arg9: memref<1x128xf32, #tpu.memory_space<vmem>>, %arg10: memref<128x3xf32, #tpu.memory_space<vmem>>, %arg11: memref<1x3xf32, #tpu.memory_space<vmem>>, %arg12: memref<2x3xf32, #tpu.memory_space<vmem>>, %arg13: memref<16x128xf32, #tpu.memory_space<vmem>>) attributes {dimension_semantics = [], scalar_prefetch = 0 : i64, scratch_operands = 1 : i64, tpu.core_type = #tpu.core_type<tc>} {
    %c0 = arith.constant 0 : index
    %c0_0 = arith.constant 0 : index
    %0 = vector.load %arg2[%c0, %c0_0] : memref<32x512xf32, #tpu.memory_space<vmem>>, vector<32x512xf32>
    %c0_1 = arith.constant 0 : index
    %c0_2 = arith.constant 0 : index
    %1 = vector.load %arg3[%c0_1, %c0_2] : memref<128x512xf32, #tpu.memory_space<vmem>>, vector<128x512xf32>
    %c0_3 = arith.constant 0 : index
    %c0_4 = arith.constant 0 : index
    %2 = vector.load %arg4[%c0_3, %c0_4] : memref<1x512xf32, #tpu.memory_space<vmem>>, vector<1x512xf32>
    %c0_5 = arith.constant 0 : index
    %c0_6 = arith.constant 0 : index
    %c0_7 = arith.constant 0 : index
    %3 = vector.load %arg0[%c0_5, %c0_6, %c0_7] : memref<2x8x32xf32, #tpu.memory_space<vmem>>, vector<2x8x32xf32>
    %4 = vector.shape_cast %3 : vector<2x8x32xf32> to vector<16x32xf32>
    %cst = arith.constant dense<0.000000e+00> : vector<16x512xf32>
    %5 = tpu.matmul %4, %0, %cst {dimension_numbers = #tpu.dot_dimension_numbers<[1], [0], [0], [1], [0, 0, 1, 1], [], []>} : vector<16x32xf32>, vector<32x512xf32>, vector<16x512xf32> -> vector<16x512xf32>
    %6 = vector.broadcast %2 : vector<1x512xf32> to vector<16x512xf32>
    %7 = arith.addf %5, %6 : vector<16x512xf32>
    %8 = vector.shape_cast %7 : vector<16x512xf32> to vector<2x8x512xf32>
    %9 = vector.extract_strided_slice %8 {offsets = [0, 0, 0], sizes = [2, 1, 512], strides = [1, 1, 1]} : vector<2x8x512xf32> to vector<2x1x512xf32>
    %10 = vector.shape_cast %9 : vector<2x1x512xf32> to vector<2x512xf32>
    %11 = vector.extract_strided_slice %8 {offsets = [0, 1, 0], sizes = [2, 1, 512], strides = [1, 1, 1]} : vector<2x8x512xf32> to vector<2x1x512xf32>
    %12 = vector.shape_cast %11 : vector<2x1x512xf32> to vector<2x512xf32>
    %13 = vector.extract_strided_slice %8 {offsets = [0, 2, 0], sizes = [2, 1, 512], strides = [1, 1, 1]} : vector<2x8x512xf32> to vector<2x1x512xf32>
    %14 = vector.shape_cast %13 : vector<2x1x512xf32> to vector<2x512xf32>
    %15 = vector.extract_strided_slice %8 {offsets = [0, 3, 0], sizes = [2, 1, 512], strides = [1, 1, 1]} : vector<2x8x512xf32> to vector<2x1x512xf32>
    %16 = vector.shape_cast %15 : vector<2x1x512xf32> to vector<2x512xf32>
    %17 = vector.extract_strided_slice %8 {offsets = [0, 4, 0], sizes = [2, 1, 512], strides = [1, 1, 1]} : vector<2x8x512xf32> to vector<2x1x512xf32>
    %18 = vector.shape_cast %17 : vector<2x1x512xf32> to vector<2x512xf32>
    %19 = vector.extract_strided_slice %8 {offsets = [0, 5, 0], sizes = [2, 1, 512], strides = [1, 1, 1]} : vector<2x8x512xf32> to vector<2x1x512xf32>
    %20 = vector.shape_cast %19 : vector<2x1x512xf32> to vector<2x512xf32>
    %21 = vector.extract_strided_slice %8 {offsets = [0, 6, 0], sizes = [2, 1, 512], strides = [1, 1, 1]} : vector<2x8x512xf32> to vector<2x1x512xf32>
    %22 = vector.shape_cast %21 : vector<2x1x512xf32> to vector<2x512xf32>
    %23 = vector.extract_strided_slice %8 {offsets = [0, 7, 0], sizes = [2, 1, 512], strides = [1, 1, 1]} : vector<2x8x512xf32> to vector<2x1x512xf32>
    %24 = vector.shape_cast %23 : vector<2x1x512xf32> to vector<2x512xf32>
    %c0_8 = arith.constant 0 : index
    %c0_9 = arith.constant 0 : index
    %c0_10 = arith.constant 0 : index
    %25 = vector.load %arg1[%c0_8, %c0_9, %c0_10] : memref<2x2x128xf32, #tpu.memory_space<vmem>>, vector<1x2x128xf32>
    %26 = vector.shape_cast %25 : vector<1x2x128xf32> to vector<2x128xf32>
    %cst_11 = arith.constant 0.000000e+00 : f32
    %27 = vector.broadcast %cst_11 : f32 to vector<2x128xf32>
    %cst_12 = arith.constant dense<0.000000e+00> : vector<2x512xf32>
    %28 = tpu.matmul %26, %1, %cst_12 {dimension_numbers = #tpu.dot_dimension_numbers<[1], [0], [0], [1], [0, 0, 1, 1], [], []>} : vector<2x128xf32>, vector<128x512xf32>, vector<2x512xf32> -> vector<2x512xf32>
    %29 = arith.addf %10, %28 : vector<2x512xf32>
    %30 = vector.extract_strided_slice %29 {offsets = [0, 0], sizes = [2, 128], strides = [1, 1]} : vector<2x512xf32> to vector<2x128xf32>
    %31 = arith.negf %30 : vector<2x128xf32>
    %32 = math.exp %31 : vector<2x128xf32>
    %cst_13 = arith.constant 1.000000e+00 : f32
    %33 = vector.broadcast %cst_13 : f32 to vector<2x128xf32>
    %34 = arith.addf %33, %32 : vector<2x128xf32>
    %35 = arith.divf %33, %34 : vector<2x128xf32>
    %36 = vector.extract_strided_slice %29 {offsets = [0, 128], sizes = [2, 128], strides = [1, 1]} : vector<2x512xf32> to vector<2x128xf32>
    %37 = arith.negf %36 : vector<2x128xf32>
    %38 = math.exp %37 : vector<2x128xf32>
    %cst_14 = arith.constant 1.000000e+00 : f32
    %39 = vector.broadcast %cst_14 : f32 to vector<2x128xf32>
    %40 = arith.addf %39, %38 : vector<2x128xf32>
    %41 = arith.divf %39, %40 : vector<2x128xf32>
    %42 = vector.extract_strided_slice %29 {offsets = [0, 256], sizes = [2, 128], strides = [1, 1]} : vector<2x512xf32> to vector<2x128xf32>
    %43 = math.tanh %42 : vector<2x128xf32>
    %44 = vector.extract_strided_slice %29 {offsets = [0, 384], sizes = [2, 128], strides = [1, 1]} : vector<2x512xf32> to vector<2x128xf32>
    %45 = arith.negf %44 : vector<2x128xf32>
    %46 = math.exp %45 : vector<2x128xf32>
    %cst_15 = arith.constant 1.000000e+00 : f32
    %47 = vector.broadcast %cst_15 : f32 to vector<2x128xf32>
    %48 = arith.addf %47, %46 : vector<2x128xf32>
    %49 = arith.divf %47, %48 : vector<2x128xf32>
    %50 = arith.mulf %41, %27 : vector<2x128xf32>
    %51 = arith.mulf %35, %43 : vector<2x128xf32>
    %52 = arith.addf %50, %51 : vector<2x128xf32>
    %53 = math.tanh %52 : vector<2x128xf32>
    %54 = arith.mulf %49, %53 : vector<2x128xf32>
    %c0_16 = arith.constant 0 : index
    %c0_17 = arith.constant 0 : index
    %55 = vector.load %arg13[%c0_16, %c0_17] : memref<16x128xf32, #tpu.memory_space<vmem>>, vector<2x128xf32>
    tpu.vector_store %arg13[%c0_16, %c0_17], %54 {strides = array<i32>} : memref<16x128xf32, #tpu.memory_space<vmem>>, vector<2x128xf32>,
    %cst_18 = arith.constant dense<0.000000e+00> : vector<2x512xf32>
    %56 = tpu.matmul %54, %1, %cst_18 {dimension_numbers = #tpu.dot_dimension_numbers<[1], [0], [0], [1], [0, 0, 1, 1], [], []>} : vector<2x128xf32>, vector<128x512xf32>, vector<2x512xf32> -> vector<2x512xf32>
    %57 = arith.addf %12, %56 : vector<2x512xf32>
    %58 = vector.extract_strided_slice %57 {offsets = [0, 0], sizes = [2, 128], strides = [1, 1]} : vector<2x512xf32> to vector<2x128xf32>
    %59 = arith.negf %58 : vector<2x128xf32>
    %60 = math.exp %59 : vector<2x128xf32>
    %cst_19 = arith.constant 1.000000e+00 : f32
    %61 = vector.broadcast %cst_19 : f32 to vector<2x128xf32>
    %62 = arith.addf %61, %60 : vector<2x128xf32>
    %63 = arith.divf %61, %62 : vector<2x128xf32>
    %64 = vector.extract_strided_slice %57 {offsets = [0, 128], sizes = [2, 128], strides = [1, 1]} : vector<2x512xf32> to vector<2x128xf32>
    %65 = arith.negf %64 : vector<2x128xf32>
    %66 = math.exp %65 : vector<2x128xf32>
    %cst_20 = arith.constant 1.000000e+00 : f32
    %67 = vector.broadcast %cst_20 : f32 to vector<2x128xf32>
    %68 = arith.addf %67, %66 : vector<2x128xf32>
    %69 = arith.divf %67, %68 : vector<2x128xf32>
    %70 = vector.extract_strided_slice %57 {offsets = [0, 256], sizes = [2, 128], strides = [1, 1]} : vector<2x512xf32> to vector<2x128xf32>
    %71 = math.tanh %70 : vector<2x128xf32>
    %72 = vector.extract_strided_slice %57 {offsets = [0, 384], sizes = [2, 128], strides = [1, 1]} : vector<2x512xf32> to vector<2x128xf32>
    %73 = arith.negf %72 : vector<2x128xf32>
    %74 = math.exp %73 : vector<2x128xf32>
    %cst_21 = arith.constant 1.000000e+00 : f32
    %75 = vector.broadcast %cst_21 : f32 to vector<2x128xf32>
    %76 = arith.addf %75, %74 : vector<2x128xf32>
    %77 = arith.divf %75, %76 : vector<2x128xf32>
    %78 = arith.mulf %69, %52 : vector<2x128xf32>
    %79 = arith.mulf %63, %71 : vector<2x128xf32>
    %80 = arith.addf %78, %79 : vector<2x128xf32>
    %81 = math.tanh %80 : vector<2x128xf32>
    %82 = arith.mulf %77, %81 : vector<2x128xf32>
    %c2 = arith.constant 2 : index
    %c0_22 = arith.constant 0 : index
    %83 = vector.load %arg13[%c2, %c0_22] : memref<16x128xf32, #tpu.memory_space<vmem>>, vector<2x128xf32>
    tpu.vector_store %arg13[%c2, %c0_22], %82 {strides = array<i32>} : memref<16x128xf32, #tpu.memory_space<vmem>>, vector<2x128xf32>,
    %cst_23 = arith.constant dense<0.000000e+00> : vector<2x512xf32>
    %84 = tpu.matmul %82, %1, %cst_23 {dimension_numbers = #tpu.dot_dimension_numbers<[1], [0], [0], [1], [0, 0, 1, 1], [], []>} : vector<2x128xf32>, vector<128x512xf32>, vector<2x512xf32> -> vector<2x512xf32>
    %85 = arith.addf %14, %84 : vector<2x512xf32>
    %86 = vector.extract_strided_slice %85 {offsets = [0, 0], sizes = [2, 128], strides = [1, 1]} : vector<2x512xf32> to vector<2x128xf32>
    %87 = arith.negf %86 : vector<2x128xf32>
    %88 = math.exp %87 : vector<2x128xf32>
    %cst_24 = arith.constant 1.000000e+00 : f32
    %89 = vector.broadcast %cst_24 : f32 to vector<2x128xf32>
    %90 = arith.addf %89, %88 : vector<2x128xf32>
    %91 = arith.divf %89, %90 : vector<2x128xf32>
    %92 = vector.extract_strided_slice %85 {offsets = [0, 128], sizes = [2, 128], strides = [1, 1]} : vector<2x512xf32> to vector<2x128xf32>
    %93 = arith.negf %92 : vector<2x128xf32>
    %94 = math.exp %93 : vector<2x128xf32>
    %cst_25 = arith.constant 1.000000e+00 : f32
    %95 = vector.broadcast %cst_25 : f32 to vector<2x128xf32>
    %96 = arith.addf %95, %94 : vector<2x128xf32>
    %97 = arith.divf %95, %96 : vector<2x128xf32>
    %98 = vector.extract_strided_slice %85 {offsets = [0, 256], sizes = [2, 128], strides = [1, 1]} : vector<2x512xf32> to vector<2x128xf32>
    %99 = math.tanh %98 : vector<2x128xf32>
    %100 = vector.extract_strided_slice %85 {offsets = [0, 384], sizes = [2, 128], strides = [1, 1]} : vector<2x512xf32> to vector<2x128xf32>
    %101 = arith.negf %100 : vector<2x128xf32>
    %102 = math.exp %101 : vector<2x128xf32>
    %cst_26 = arith.constant 1.000000e+00 : f32
    %103 = vector.broadcast %cst_26 : f32 to vector<2x128xf32>
    %104 = arith.addf %103, %102 : vector<2x128xf32>
    %105 = arith.divf %103, %104 : vector<2x128xf32>
    %106 = arith.mulf %97, %80 : vector<2x128xf32>
    %107 = arith.mulf %91, %99 : vector<2x128xf32>
    %108 = arith.addf %106, %107 : vector<2x128xf32>
    %109 = math.tanh %108 : vector<2x128xf32>
    %110 = arith.mulf %105, %109 : vector<2x128xf32>
    %c4 = arith.constant 4 : index
    %c0_27 = arith.constant 0 : index
    %111 = vector.load %arg13[%c4, %c0_27] : memref<16x128xf32, #tpu.memory_space<vmem>>, vector<2x128xf32>
    tpu.vector_store %arg13[%c4, %c0_27], %110 {strides = array<i32>} : memref<16x128xf32, #tpu.memory_space<vmem>>, vector<2x128xf32>,
    %cst_28 = arith.constant dense<0.000000e+00> : vector<2x512xf32>
    %112 = tpu.matmul %110, %1, %cst_28 {dimension_numbers = #tpu.dot_dimension_numbers<[1], [0], [0], [1], [0, 0, 1, 1], [], []>} : vector<2x128xf32>, vector<128x512xf32>, vector<2x512xf32> -> vector<2x512xf32>
    %113 = arith.addf %16, %112 : vector<2x512xf32>
    %114 = vector.extract_strided_slice %113 {offsets = [0, 0], sizes = [2, 128], strides = [1, 1]} : vector<2x512xf32> to vector<2x128xf32>
    %115 = arith.negf %114 : vector<2x128xf32>
    %116 = math.exp %115 : vector<2x128xf32>
    %cst_29 = arith.constant 1.000000e+00 : f32
    %117 = vector.broadcast %cst_29 : f32 to vector<2x128xf32>
    %118 = arith.addf %117, %116 : vector<2x128xf32>
    %119 = arith.divf %117, %118 : vector<2x128xf32>
    %120 = vector.extract_strided_slice %113 {offsets = [0, 128], sizes = [2, 128], strides = [1, 1]} : vector<2x512xf32> to vector<2x128xf32>
    %121 = arith.negf %120 : vector<2x128xf32>
    %122 = math.exp %121 : vector<2x128xf32>
    %cst_30 = arith.constant 1.000000e+00 : f32
    %123 = vector.broadcast %cst_30 : f32 to vector<2x128xf32>
    %124 = arith.addf %123, %122 : vector<2x128xf32>
    %125 = arith.divf %123, %124 : vector<2x128xf32>
    %126 = vector.extract_strided_slice %113 {offsets = [0, 256], sizes = [2, 128], strides = [1, 1]} : vector<2x512xf32> to vector<2x128xf32>
    %127 = math.tanh %126 : vector<2x128xf32>
    %128 = vector.extract_strided_slice %113 {offsets = [0, 384], sizes = [2, 128], strides = [1, 1]} : vector<2x512xf32> to vector<2x128xf32>
    %129 = arith.negf %128 : vector<2x128xf32>
    %130 = math.exp %129 : vector<2x128xf32>
    %cst_31 = arith.constant 1.000000e+00 : f32
    %131 = vector.broadcast %cst_31 : f32 to vector<2x128xf32>
    %132 = arith.addf %131, %130 : vector<2x128xf32>
    %133 = arith.divf %131, %132 : vector<2x128xf32>
    %134 = arith.mulf %125, %108 : vector<2x128xf32>
    %135 = arith.mulf %119, %127 : vector<2x128xf32>
    %136 = arith.addf %134, %135 : vector<2x128xf32>
    %137 = math.tanh %136 : vector<2x128xf32>
    %138 = arith.mulf %133, %137 : vector<2x128xf32>
    %c6 = arith.constant 6 : index
    %c0_32 = arith.constant 0 : index
    %139 = vector.load %arg13[%c6, %c0_32] : memref<16x128xf32, #tpu.memory_space<vmem>>, vector<2x128xf32>
    tpu.vector_store %arg13[%c6, %c0_32], %138 {strides = array<i32>} : memref<16x128xf32, #tpu.memory_space<vmem>>, vector<2x128xf32>,
    %cst_33 = arith.constant dense<0.000000e+00> : vector<2x512xf32>
    %140 = tpu.matmul %138, %1, %cst_33 {dimension_numbers = #tpu.dot_dimension_numbers<[1], [0], [0], [1], [0, 0, 1, 1], [], []>} : vector<2x128xf32>, vector<128x512xf32>, vector<2x512xf32> -> vector<2x512xf32>
    %141 = arith.addf %18, %140 : vector<2x512xf32>
    %142 = vector.extract_strided_slice %141 {offsets = [0, 0], sizes = [2, 128], strides = [1, 1]} : vector<2x512xf32> to vector<2x128xf32>
    %143 = arith.negf %142 : vector<2x128xf32>
    %144 = math.exp %143 : vector<2x128xf32>
    %cst_34 = arith.constant 1.000000e+00 : f32
    %145 = vector.broadcast %cst_34 : f32 to vector<2x128xf32>
    %146 = arith.addf %145, %144 : vector<2x128xf32>
    %147 = arith.divf %145, %146 : vector<2x128xf32>
    %148 = vector.extract_strided_slice %141 {offsets = [0, 128], sizes = [2, 128], strides = [1, 1]} : vector<2x512xf32> to vector<2x128xf32>
    %149 = arith.negf %148 : vector<2x128xf32>
    %150 = math.exp %149 : vector<2x128xf32>
    %cst_35 = arith.constant 1.000000e+00 : f32
    %151 = vector.broadcast %cst_35 : f32 to vector<2x128xf32>
    %152 = arith.addf %151, %150 : vector<2x128xf32>
    %153 = arith.divf %151, %152 : vector<2x128xf32>
    %154 = vector.extract_strided_slice %141 {offsets = [0, 256], sizes = [2, 128], strides = [1, 1]} : vector<2x512xf32> to vector<2x128xf32>
    %155 = math.tanh %154 : vector<2x128xf32>
    %156 = vector.extract_strided_slice %141 {offsets = [0, 384], sizes = [2, 128], strides = [1, 1]} : vector<2x512xf32> to vector<2x128xf32>
    %157 = arith.negf %156 : vector<2x128xf32>
    %158 = math.exp %157 : vector<2x128xf32>
    %cst_36 = arith.constant 1.000000e+00 : f32
    %159 = vector.broadcast %cst_36 : f32 to vector<2x128xf32>
    %160 = arith.addf %159, %158 : vector<2x128xf32>
    %161 = arith.divf %159, %160 : vector<2x128xf32>
    %162 = arith.mulf %153, %136 : vector<2x128xf32>
    %163 = arith.mulf %147, %155 : vector<2x128xf32>
    %164 = arith.addf %162, %163 : vector<2x128xf32>
    %165 = math.tanh %164 : vector<2x128xf32>
    %166 = arith.mulf %161, %165 : vector<2x128xf32>
    %c8 = arith.constant 8 : index
    %c0_37 = arith.constant 0 : index
    %167 = vector.load %arg13[%c8, %c0_37] : memref<16x128xf32, #tpu.memory_space<vmem>>, vector<2x128xf32>
    tpu.vector_store %arg13[%c8, %c0_37], %166 {strides = array<i32>} : memref<16x128xf32, #tpu.memory_space<vmem>>, vector<2x128xf32>,
    %cst_38 = arith.constant dense<0.000000e+00> : vector<2x512xf32>
    %168 = tpu.matmul %166, %1, %cst_38 {dimension_numbers = #tpu.dot_dimension_numbers<[1], [0], [0], [1], [0, 0, 1, 1], [], []>} : vector<2x128xf32>, vector<128x512xf32>, vector<2x512xf32> -> vector<2x512xf32>
    %169 = arith.addf %20, %168 : vector<2x512xf32>
    %170 = vector.extract_strided_slice %169 {offsets = [0, 0], sizes = [2, 128], strides = [1, 1]} : vector<2x512xf32> to vector<2x128xf32>
    %171 = arith.negf %170 : vector<2x128xf32>
    %172 = math.exp %171 : vector<2x128xf32>
    %cst_39 = arith.constant 1.000000e+00 : f32
    %173 = vector.broadcast %cst_39 : f32 to vector<2x128xf32>
    %174 = arith.addf %173, %172 : vector<2x128xf32>
    %175 = arith.divf %173, %174 : vector<2x128xf32>
    %176 = vector.extract_strided_slice %169 {offsets = [0, 128], sizes = [2, 128], strides = [1, 1]} : vector<2x512xf32> to vector<2x128xf32>
    %177 = arith.negf %176 : vector<2x128xf32>
    %178 = math.exp %177 : vector<2x128xf32>
    %cst_40 = arith.constant 1.000000e+00 : f32
    %179 = vector.broadcast %cst_40 : f32 to vector<2x128xf32>
    %180 = arith.addf %179, %178 : vector<2x128xf32>
    %181 = arith.divf %179, %180 : vector<2x128xf32>
    %182 = vector.extract_strided_slice %169 {offsets = [0, 256], sizes = [2, 128], strides = [1, 1]} : vector<2x512xf32> to vector<2x128xf32>
    %183 = math.tanh %182 : vector<2x128xf32>
    %184 = vector.extract_strided_slice %169 {offsets = [0, 384], sizes = [2, 128], strides = [1, 1]} : vector<2x512xf32> to vector<2x128xf32>
    %185 = arith.negf %184 : vector<2x128xf32>
    %186 = math.exp %185 : vector<2x128xf32>
    %cst_41 = arith.constant 1.000000e+00 : f32
    %187 = vector.broadcast %cst_41 : f32 to vector<2x128xf32>
    %188 = arith.addf %187, %186 : vector<2x128xf32>
    %189 = arith.divf %187, %188 : vector<2x128xf32>
    %190 = arith.mulf %181, %164 : vector<2x128xf32>
    %191 = arith.mulf %175, %183 : vector<2x128xf32>
    %192 = arith.addf %190, %191 : vector<2x128xf32>
    %193 = math.tanh %192 : vector<2x128xf32>
    %194 = arith.mulf %189, %193 : vector<2x128xf32>
    %c10 = arith.constant 10 : index
    %c0_42 = arith.constant 0 : index
    %195 = vector.load %arg13[%c10, %c0_42] : memref<16x128xf32, #tpu.memory_space<vmem>>, vector<2x128xf32>
    tpu.vector_store %arg13[%c10, %c0_42], %194 {strides = array<i32>} : memref<16x128xf32, #tpu.memory_space<vmem>>, vector<2x128xf32>,
    %cst_43 = arith.constant dense<0.000000e+00> : vector<2x512xf32>
    %196 = tpu.matmul %194, %1, %cst_43 {dimension_numbers = #tpu.dot_dimension_numbers<[1], [0], [0], [1], [0, 0, 1, 1], [], []>} : vector<2x128xf32>, vector<128x512xf32>, vector<2x512xf32> -> vector<2x512xf32>
    %197 = arith.addf %22, %196 : vector<2x512xf32>
    %198 = vector.extract_strided_slice %197 {offsets = [0, 0], sizes = [2, 128], strides = [1, 1]} : vector<2x512xf32> to vector<2x128xf32>
    %199 = arith.negf %198 : vector<2x128xf32>
    %200 = math.exp %199 : vector<2x128xf32>
    %cst_44 = arith.constant 1.000000e+00 : f32
    %201 = vector.broadcast %cst_44 : f32 to vector<2x128xf32>
    %202 = arith.addf %201, %200 : vector<2x128xf32>
    %203 = arith.divf %201, %202 : vector<2x128xf32>
    %204 = vector.extract_strided_slice %197 {offsets = [0, 128], sizes = [2, 128], strides = [1, 1]} : vector<2x512xf32> to vector<2x128xf32>
    %205 = arith.negf %204 : vector<2x128xf32>
    %206 = math.exp %205 : vector<2x128xf32>
    %cst_45 = arith.constant 1.000000e+00 : f32
    %207 = vector.broadcast %cst_45 : f32 to vector<2x128xf32>
    %208 = arith.addf %207, %206 : vector<2x128xf32>
    %209 = arith.divf %207, %208 : vector<2x128xf32>
    %210 = vector.extract_strided_slice %197 {offsets = [0, 256], sizes = [2, 128], strides = [1, 1]} : vector<2x512xf32> to vector<2x128xf32>
    %211 = math.tanh %210 : vector<2x128xf32>
    %212 = vector.extract_strided_slice %197 {offsets = [0, 384], sizes = [2, 128], strides = [1, 1]} : vector<2x512xf32> to vector<2x128xf32>
    %213 = arith.negf %212 : vector<2x128xf32>
    %214 = math.exp %213 : vector<2x128xf32>
    %cst_46 = arith.constant 1.000000e+00 : f32
    %215 = vector.broadcast %cst_46 : f32 to vector<2x128xf32>
    %216 = arith.addf %215, %214 : vector<2x128xf32>
    %217 = arith.divf %215, %216 : vector<2x128xf32>
    %218 = arith.mulf %209, %192 : vector<2x128xf32>
    %219 = arith.mulf %203, %211 : vector<2x128xf32>
    %220 = arith.addf %218, %219 : vector<2x128xf32>
    %221 = math.tanh %220 : vector<2x128xf32>
    %222 = arith.mulf %217, %221 : vector<2x128xf32>
    %c12 = arith.constant 12 : index
    %c0_47 = arith.constant 0 : index
    %223 = vector.load %arg13[%c12, %c0_47] : memref<16x128xf32, #tpu.memory_space<vmem>>, vector<2x128xf32>
    tpu.vector_store %arg13[%c12, %c0_47], %222 {strides = array<i32>} : memref<16x128xf32, #tpu.memory_space<vmem>>, vector<2x128xf32>,
    %cst_48 = arith.constant dense<0.000000e+00> : vector<2x512xf32>
    %224 = tpu.matmul %222, %1, %cst_48 {dimension_numbers = #tpu.dot_dimension_numbers<[1], [0], [0], [1], [0, 0, 1, 1], [], []>} : vector<2x128xf32>, vector<128x512xf32>, vector<2x512xf32> -> vector<2x512xf32>
    %225 = arith.addf %24, %224 : vector<2x512xf32>
    %226 = vector.extract_strided_slice %225 {offsets = [0, 0], sizes = [2, 128], strides = [1, 1]} : vector<2x512xf32> to vector<2x128xf32>
    %227 = arith.negf %226 : vector<2x128xf32>
    %228 = math.exp %227 : vector<2x128xf32>
    %cst_49 = arith.constant 1.000000e+00 : f32
    %229 = vector.broadcast %cst_49 : f32 to vector<2x128xf32>
    %230 = arith.addf %229, %228 : vector<2x128xf32>
    %231 = arith.divf %229, %230 : vector<2x128xf32>
    %232 = vector.extract_strided_slice %225 {offsets = [0, 128], sizes = [2, 128], strides = [1, 1]} : vector<2x512xf32> to vector<2x128xf32>
    %233 = arith.negf %232 : vector<2x128xf32>
    %234 = math.exp %233 : vector<2x128xf32>
    %cst_50 = arith.constant 1.000000e+00 : f32
    %235 = vector.broadcast %cst_50 : f32 to vector<2x128xf32>
    %236 = arith.addf %235, %234 : vector<2x128xf32>
    %237 = arith.divf %235, %236 : vector<2x128xf32>
    %238 = vector.extract_strided_slice %225 {offsets = [0, 256], sizes = [2, 128], strides = [1, 1]} : vector<2x512xf32> to vector<2x128xf32>
    %239 = math.tanh %238 : vector<2x128xf32>
    %240 = vector.extract_strided_slice %225 {offsets = [0, 384], sizes = [2, 128], strides = [1, 1]} : vector<2x512xf32> to vector<2x128xf32>
    %241 = arith.negf %240 : vector<2x128xf32>
    %242 = math.exp %241 : vector<2x128xf32>
    %cst_51 = arith.constant 1.000000e+00 : f32
    %243 = vector.broadcast %cst_51 : f32 to vector<2x128xf32>
    %244 = arith.addf %243, %242 : vector<2x128xf32>
    %245 = arith.divf %243, %244 : vector<2x128xf32>
    %246 = arith.mulf %237, %220 : vector<2x128xf32>
    %247 = arith.mulf %231, %239 : vector<2x128xf32>
    %248 = arith.addf %246, %247 : vector<2x128xf32>
    %249 = math.tanh %248 : vector<2x128xf32>
    %250 = arith.mulf %245, %249 : vector<2x128xf32>
    %c14 = arith.constant 14 : index
    %c0_52 = arith.constant 0 : index
    %251 = vector.load %arg13[%c14, %c0_52] : memref<16x128xf32, #tpu.memory_space<vmem>>, vector<2x128xf32>
    tpu.vector_store %arg13[%c14, %c0_52], %250 {strides = array<i32>} : memref<16x128xf32, #tpu.memory_space<vmem>>, vector<2x128xf32>,
    %c0_53 = arith.constant 0 : index
    %c0_54 = arith.constant 0 : index
    %252 = vector.load %arg5[%c0_53, %c0_54] : memref<128x512xf32, #tpu.memory_space<vmem>>, vector<128x512xf32>
    %c0_55 = arith.constant 0 : index
    %c0_56 = arith.constant 0 : index
    %253 = vector.load %arg6[%c0_55, %c0_56] : memref<128x512xf32, #tpu.memory_space<vmem>>, vector<128x512xf32>
    %c0_57 = arith.constant 0 : index
    %c0_58 = arith.constant 0 : index
    %254 = vector.load %arg7[%c0_57, %c0_58] : memref<1x512xf32, #tpu.memory_space<vmem>>, vector<1x512xf32>
    %c0_59 = arith.constant 0 : index
    %c0_60 = arith.constant 0 : index
    %255 = vector.load %arg13[%c0_59, %c0_60] : memref<16x128xf32, #tpu.memory_space<vmem>>, vector<16x128xf32>
    %cst_61 = arith.constant dense<0.000000e+00> : vector<16x512xf32>
    %256 = tpu.matmul %255, %252, %cst_61 {dimension_numbers = #tpu.dot_dimension_numbers<[1], [0], [0], [1], [0, 0, 1, 1], [], []>} : vector<16x128xf32>, vector<128x512xf32>, vector<16x512xf32> -> vector<16x512xf32>
    %257 = vector.broadcast %254 : vector<1x512xf32> to vector<16x512xf32>
    %258 = arith.addf %256, %257 : vector<16x512xf32>
    %259 = vector.extract_strided_slice %258 {offsets = [0, 0], sizes = [2, 512], strides = [1, 1]} : vector<16x512xf32> to vector<2x512xf32>
    %260 = vector.extract_strided_slice %258 {offsets = [2, 0], sizes = [2, 512], strides = [1, 1]} : vector<16x512xf32> to vector<2x512xf32>
    %261 = vector.extract_strided_slice %258 {offsets = [4, 0], sizes = [2, 512], strides = [1, 1]} : vector<16x512xf32> to vector<2x512xf32>
    %262 = vector.extract_strided_slice %258 {offsets = [6, 0], sizes = [2, 512], strides = [1, 1]} : vector<16x512xf32> to vector<2x512xf32>
    %263 = vector.extract_strided_slice %258 {offsets = [8, 0], sizes = [2, 512], strides = [1, 1]} : vector<16x512xf32> to vector<2x512xf32>
    %264 = vector.extract_strided_slice %258 {offsets = [10, 0], sizes = [2, 512], strides = [1, 1]} : vector<16x512xf32> to vector<2x512xf32>
    %265 = vector.extract_strided_slice %258 {offsets = [12, 0], sizes = [2, 512], strides = [1, 1]} : vector<16x512xf32> to vector<2x512xf32>
    %266 = vector.extract_strided_slice %258 {offsets = [14, 0], sizes = [2, 512], strides = [1, 1]} : vector<16x512xf32> to vector<2x512xf32>
    %c1 = arith.constant 1 : index
    %c0_62 = arith.constant 0 : index
    %c0_63 = arith.constant 0 : index
    %267 = vector.load %arg1[%c1, %c0_62, %c0_63] : memref<2x2x128xf32, #tpu.memory_space<vmem>>, vector<1x2x128xf32>
    %268 = vector.shape_cast %267 : vector<1x2x128xf32> to vector<2x128xf32>
    %cst_64 = arith.constant 0.000000e+00 : f32
    %269 = vector.broadcast %cst_64 : f32 to vector<2x128xf32>
    %cst_65 = arith.constant dense<0.000000e+00> : vector<2x512xf32>
    %270 = tpu.matmul %268, %253, %cst_65 {dimension_numbers = #tpu.dot_dimension_numbers<[1], [0], [0], [1], [0, 0, 1, 1], [], []>} : vector<2x128xf32>, vector<128x512xf32>, vector<2x512xf32> -> vector<2x512xf32>
    %271 = arith.addf %259, %270 : vector<2x512xf32>
    %272 = vector.extract_strided_slice %271 {offsets = [0, 0], sizes = [2, 128], strides = [1, 1]} : vector<2x512xf32> to vector<2x128xf32>
    %273 = arith.negf %272 : vector<2x128xf32>
    %274 = math.exp %273 : vector<2x128xf32>
    %cst_66 = arith.constant 1.000000e+00 : f32
    %275 = vector.broadcast %cst_66 : f32 to vector<2x128xf32>
    %276 = arith.addf %275, %274 : vector<2x128xf32>
    %277 = arith.divf %275, %276 : vector<2x128xf32>
    %278 = vector.extract_strided_slice %271 {offsets = [0, 128], sizes = [2, 128], strides = [1, 1]} : vector<2x512xf32> to vector<2x128xf32>
    %279 = arith.negf %278 : vector<2x128xf32>
    %280 = math.exp %279 : vector<2x128xf32>
    %cst_67 = arith.constant 1.000000e+00 : f32
    %281 = vector.broadcast %cst_67 : f32 to vector<2x128xf32>
    %282 = arith.addf %281, %280 : vector<2x128xf32>
    %283 = arith.divf %281, %282 : vector<2x128xf32>
    %284 = vector.extract_strided_slice %271 {offsets = [0, 256], sizes = [2, 128], strides = [1, 1]} : vector<2x512xf32> to vector<2x128xf32>
    %285 = math.tanh %284 : vector<2x128xf32>
    %286 = vector.extract_strided_slice %271 {offsets = [0, 384], sizes = [2, 128], strides = [1, 1]} : vector<2x512xf32> to vector<2x128xf32>
    %287 = arith.negf %286 : vector<2x128xf32>
    %288 = math.exp %287 : vector<2x128xf32>
    %cst_68 = arith.constant 1.000000e+00 : f32
    %289 = vector.broadcast %cst_68 : f32 to vector<2x128xf32>
    %290 = arith.addf %289, %288 : vector<2x128xf32>
    %291 = arith.divf %289, %290 : vector<2x128xf32>
    %292 = arith.mulf %283, %269 : vector<2x128xf32>
    %293 = arith.mulf %277, %285 : vector<2x128xf32>
    %294 = arith.addf %292, %293 : vector<2x128xf32>
    %295 = math.tanh %294 : vector<2x128xf32>
    %296 = arith.mulf %291, %295 : vector<2x128xf32>
    %cst_69 = arith.constant dense<0.000000e+00> : vector<2x512xf32>
    %297 = tpu.matmul %296, %253, %cst_69 {dimension_numbers = #tpu.dot_dimension_numbers<[1], [0], [0], [1], [0, 0, 1, 1], [], []>} : vector<2x128xf32>, vector<128x512xf32>, vector<2x512xf32> -> vector<2x512xf32>
    %298 = arith.addf %260, %297 : vector<2x512xf32>
    %299 = vector.extract_strided_slice %298 {offsets = [0, 0], sizes = [2, 128], strides = [1, 1]} : vector<2x512xf32> to vector<2x128xf32>
    %300 = arith.negf %299 : vector<2x128xf32>
    %301 = math.exp %300 : vector<2x128xf32>
    %cst_70 = arith.constant 1.000000e+00 : f32
    %302 = vector.broadcast %cst_70 : f32 to vector<2x128xf32>
    %303 = arith.addf %302, %301 : vector<2x128xf32>
    %304 = arith.divf %302, %303 : vector<2x128xf32>
    %305 = vector.extract_strided_slice %298 {offsets = [0, 128], sizes = [2, 128], strides = [1, 1]} : vector<2x512xf32> to vector<2x128xf32>
    %306 = arith.negf %305 : vector<2x128xf32>
    %307 = math.exp %306 : vector<2x128xf32>
    %cst_71 = arith.constant 1.000000e+00 : f32
    %308 = vector.broadcast %cst_71 : f32 to vector<2x128xf32>
    %309 = arith.addf %308, %307 : vector<2x128xf32>
    %310 = arith.divf %308, %309 : vector<2x128xf32>
    %311 = vector.extract_strided_slice %298 {offsets = [0, 256], sizes = [2, 128], strides = [1, 1]} : vector<2x512xf32> to vector<2x128xf32>
    %312 = math.tanh %311 : vector<2x128xf32>
    %313 = vector.extract_strided_slice %298 {offsets = [0, 384], sizes = [2, 128], strides = [1, 1]} : vector<2x512xf32> to vector<2x128xf32>
    %314 = arith.negf %313 : vector<2x128xf32>
    %315 = math.exp %314 : vector<2x128xf32>
    %cst_72 = arith.constant 1.000000e+00 : f32
    %316 = vector.broadcast %cst_72 : f32 to vector<2x128xf32>
    %317 = arith.addf %316, %315 : vector<2x128xf32>
    %318 = arith.divf %316, %317 : vector<2x128xf32>
    %319 = arith.mulf %310, %294 : vector<2x128xf32>
    %320 = arith.mulf %304, %312 : vector<2x128xf32>
    %321 = arith.addf %319, %320 : vector<2x128xf32>
    %322 = math.tanh %321 : vector<2x128xf32>
    %323 = arith.mulf %318, %322 : vector<2x128xf32>
    %cst_73 = arith.constant dense<0.000000e+00> : vector<2x512xf32>
    %324 = tpu.matmul %323, %253, %cst_73 {dimension_numbers = #tpu.dot_dimension_numbers<[1], [0], [0], [1], [0, 0, 1, 1], [], []>} : vector<2x128xf32>, vector<128x512xf32>, vector<2x512xf32> -> vector<2x512xf32>
    %325 = arith.addf %261, %324 : vector<2x512xf32>
    %326 = vector.extract_strided_slice %325 {offsets = [0, 0], sizes = [2, 128], strides = [1, 1]} : vector<2x512xf32> to vector<2x128xf32>
    %327 = arith.negf %326 : vector<2x128xf32>
    %328 = math.exp %327 : vector<2x128xf32>
    %cst_74 = arith.constant 1.000000e+00 : f32
    %329 = vector.broadcast %cst_74 : f32 to vector<2x128xf32>
    %330 = arith.addf %329, %328 : vector<2x128xf32>
    %331 = arith.divf %329, %330 : vector<2x128xf32>
    %332 = vector.extract_strided_slice %325 {offsets = [0, 128], sizes = [2, 128], strides = [1, 1]} : vector<2x512xf32> to vector<2x128xf32>
    %333 = arith.negf %332 : vector<2x128xf32>
    %334 = math.exp %333 : vector<2x128xf32>
    %cst_75 = arith.constant 1.000000e+00 : f32
    %335 = vector.broadcast %cst_75 : f32 to vector<2x128xf32>
    %336 = arith.addf %335, %334 : vector<2x128xf32>
    %337 = arith.divf %335, %336 : vector<2x128xf32>
    %338 = vector.extract_strided_slice %325 {offsets = [0, 256], sizes = [2, 128], strides = [1, 1]} : vector<2x512xf32> to vector<2x128xf32>
    %339 = math.tanh %338 : vector<2x128xf32>
    %340 = vector.extract_strided_slice %325 {offsets = [0, 384], sizes = [2, 128], strides = [1, 1]} : vector<2x512xf32> to vector<2x128xf32>
    %341 = arith.negf %340 : vector<2x128xf32>
    %342 = math.exp %341 : vector<2x128xf32>
    %cst_76 = arith.constant 1.000000e+00 : f32
    %343 = vector.broadcast %cst_76 : f32 to vector<2x128xf32>
    %344 = arith.addf %343, %342 : vector<2x128xf32>
    %345 = arith.divf %343, %344 : vector<2x128xf32>
    %346 = arith.mulf %337, %321 : vector<2x128xf32>
    %347 = arith.mulf %331, %339 : vector<2x128xf32>
    %348 = arith.addf %346, %347 : vector<2x128xf32>
    %349 = math.tanh %348 : vector<2x128xf32>
    %350 = arith.mulf %345, %349 : vector<2x128xf32>
    %cst_77 = arith.constant dense<0.000000e+00> : vector<2x512xf32>
    %351 = tpu.matmul %350, %253, %cst_77 {dimension_numbers = #tpu.dot_dimension_numbers<[1], [0], [0], [1], [0, 0, 1, 1], [], []>} : vector<2x128xf32>, vector<128x512xf32>, vector<2x512xf32> -> vector<2x512xf32>
    %352 = arith.addf %262, %351 : vector<2x512xf32>
    %353 = vector.extract_strided_slice %352 {offsets = [0, 0], sizes = [2, 128], strides = [1, 1]} : vector<2x512xf32> to vector<2x128xf32>
    %354 = arith.negf %353 : vector<2x128xf32>
    %355 = math.exp %354 : vector<2x128xf32>
    %cst_78 = arith.constant 1.000000e+00 : f32
    %356 = vector.broadcast %cst_78 : f32 to vector<2x128xf32>
    %357 = arith.addf %356, %355 : vector<2x128xf32>
    %358 = arith.divf %356, %357 : vector<2x128xf32>
    %359 = vector.extract_strided_slice %352 {offsets = [0, 128], sizes = [2, 128], strides = [1, 1]} : vector<2x512xf32> to vector<2x128xf32>
    %360 = arith.negf %359 : vector<2x128xf32>
    %361 = math.exp %360 : vector<2x128xf32>
    %cst_79 = arith.constant 1.000000e+00 : f32
    %362 = vector.broadcast %cst_79 : f32 to vector<2x128xf32>
    %363 = arith.addf %362, %361 : vector<2x128xf32>
    %364 = arith.divf %362, %363 : vector<2x128xf32>
    %365 = vector.extract_strided_slice %352 {offsets = [0, 256], sizes = [2, 128], strides = [1, 1]} : vector<2x512xf32> to vector<2x128xf32>
    %366 = math.tanh %365 : vector<2x128xf32>
    %367 = vector.extract_strided_slice %352 {offsets = [0, 384], sizes = [2, 128], strides = [1, 1]} : vector<2x512xf32> to vector<2x128xf32>
    %368 = arith.negf %367 : vector<2x128xf32>
    %369 = math.exp %368 : vector<2x128xf32>
    %cst_80 = arith.constant 1.000000e+00 : f32
    %370 = vector.broadcast %cst_80 : f32 to vector<2x128xf32>
    %371 = arith.addf %370, %369 : vector<2x128xf32>
    %372 = arith.divf %370, %371 : vector<2x128xf32>
    %373 = arith.mulf %364, %348 : vector<2x128xf32>
    %374 = arith.mulf %358, %366 : vector<2x128xf32>
    %375 = arith.addf %373, %374 : vector<2x128xf32>
    %376 = math.tanh %375 : vector<2x128xf32>
    %377 = arith.mulf %372, %376 : vector<2x128xf32>
    %cst_81 = arith.constant dense<0.000000e+00> : vector<2x512xf32>
    %378 = tpu.matmul %377, %253, %cst_81 {dimension_numbers = #tpu.dot_dimension_numbers<[1], [0], [0], [1], [0, 0, 1, 1], [], []>} : vector<2x128xf32>, vector<128x512xf32>, vector<2x512xf32> -> vector<2x512xf32>
    %379 = arith.addf %263, %378 : vector<2x512xf32>
    %380 = vector.extract_strided_slice %379 {offsets = [0, 0], sizes = [2, 128], strides = [1, 1]} : vector<2x512xf32> to vector<2x128xf32>
    %381 = arith.negf %380 : vector<2x128xf32>
    %382 = math.exp %381 : vector<2x128xf32>
    %cst_82 = arith.constant 1.000000e+00 : f32
    %383 = vector.broadcast %cst_82 : f32 to vector<2x128xf32>
    %384 = arith.addf %383, %382 : vector<2x128xf32>
    %385 = arith.divf %383, %384 : vector<2x128xf32>
    %386 = vector.extract_strided_slice %379 {offsets = [0, 128], sizes = [2, 128], strides = [1, 1]} : vector<2x512xf32> to vector<2x128xf32>
    %387 = arith.negf %386 : vector<2x128xf32>
    %388 = math.exp %387 : vector<2x128xf32>
    %cst_83 = arith.constant 1.000000e+00 : f32
    %389 = vector.broadcast %cst_83 : f32 to vector<2x128xf32>
    %390 = arith.addf %389, %388 : vector<2x128xf32>
    %391 = arith.divf %389, %390 : vector<2x128xf32>
    %392 = vector.extract_strided_slice %379 {offsets = [0, 256], sizes = [2, 128], strides = [1, 1]} : vector<2x512xf32> to vector<2x128xf32>
    %393 = math.tanh %392 : vector<2x128xf32>
    %394 = vector.extract_strided_slice %379 {offsets = [0, 384], sizes = [2, 128], strides = [1, 1]} : vector<2x512xf32> to vector<2x128xf32>
    %395 = arith.negf %394 : vector<2x128xf32>
    %396 = math.exp %395 : vector<2x128xf32>
    %cst_84 = arith.constant 1.000000e+00 : f32
    %397 = vector.broadcast %cst_84 : f32 to vector<2x128xf32>
    %398 = arith.addf %397, %396 : vector<2x128xf32>
    %399 = arith.divf %397, %398 : vector<2x128xf32>
    %400 = arith.mulf %391, %375 : vector<2x128xf32>
    %401 = arith.mulf %385, %393 : vector<2x128xf32>
    %402 = arith.addf %400, %401 : vector<2x128xf32>
    %403 = math.tanh %402 : vector<2x128xf32>
    %404 = arith.mulf %399, %403 : vector<2x128xf32>
    %cst_85 = arith.constant dense<0.000000e+00> : vector<2x512xf32>
    %405 = tpu.matmul %404, %253, %cst_85 {dimension_numbers = #tpu.dot_dimension_numbers<[1], [0], [0], [1], [0, 0, 1, 1], [], []>} : vector<2x128xf32>, vector<128x512xf32>, vector<2x512xf32> -> vector<2x512xf32>
    %406 = arith.addf %264, %405 : vector<2x512xf32>
    %407 = vector.extract_strided_slice %406 {offsets = [0, 0], sizes = [2, 128], strides = [1, 1]} : vector<2x512xf32> to vector<2x128xf32>
    %408 = arith.negf %407 : vector<2x128xf32>
    %409 = math.exp %408 : vector<2x128xf32>
    %cst_86 = arith.constant 1.000000e+00 : f32
    %410 = vector.broadcast %cst_86 : f32 to vector<2x128xf32>
    %411 = arith.addf %410, %409 : vector<2x128xf32>
    %412 = arith.divf %410, %411 : vector<2x128xf32>
    %413 = vector.extract_strided_slice %406 {offsets = [0, 128], sizes = [2, 128], strides = [1, 1]} : vector<2x512xf32> to vector<2x128xf32>
    %414 = arith.negf %413 : vector<2x128xf32>
    %415 = math.exp %414 : vector<2x128xf32>
    %cst_87 = arith.constant 1.000000e+00 : f32
    %416 = vector.broadcast %cst_87 : f32 to vector<2x128xf32>
    %417 = arith.addf %416, %415 : vector<2x128xf32>
    %418 = arith.divf %416, %417 : vector<2x128xf32>
    %419 = vector.extract_strided_slice %406 {offsets = [0, 256], sizes = [2, 128], strides = [1, 1]} : vector<2x512xf32> to vector<2x128xf32>
    %420 = math.tanh %419 : vector<2x128xf32>
    %421 = vector.extract_strided_slice %406 {offsets = [0, 384], sizes = [2, 128], strides = [1, 1]} : vector<2x512xf32> to vector<2x128xf32>
    %422 = arith.negf %421 : vector<2x128xf32>
    %423 = math.exp %422 : vector<2x128xf32>
    %cst_88 = arith.constant 1.000000e+00 : f32
    %424 = vector.broadcast %cst_88 : f32 to vector<2x128xf32>
    %425 = arith.addf %424, %423 : vector<2x128xf32>
    %426 = arith.divf %424, %425 : vector<2x128xf32>
    %427 = arith.mulf %418, %402 : vector<2x128xf32>
    %428 = arith.mulf %412, %420 : vector<2x128xf32>
    %429 = arith.addf %427, %428 : vector<2x128xf32>
    %430 = math.tanh %429 : vector<2x128xf32>
    %431 = arith.mulf %426, %430 : vector<2x128xf32>
    %cst_89 = arith.constant dense<0.000000e+00> : vector<2x512xf32>
    %432 = tpu.matmul %431, %253, %cst_89 {dimension_numbers = #tpu.dot_dimension_numbers<[1], [0], [0], [1], [0, 0, 1, 1], [], []>} : vector<2x128xf32>, vector<128x512xf32>, vector<2x512xf32> -> vector<2x512xf32>
    %433 = arith.addf %265, %432 : vector<2x512xf32>
    %434 = vector.extract_strided_slice %433 {offsets = [0, 0], sizes = [2, 128], strides = [1, 1]} : vector<2x512xf32> to vector<2x128xf32>
    %435 = arith.negf %434 : vector<2x128xf32>
    %436 = math.exp %435 : vector<2x128xf32>
    %cst_90 = arith.constant 1.000000e+00 : f32
    %437 = vector.broadcast %cst_90 : f32 to vector<2x128xf32>
    %438 = arith.addf %437, %436 : vector<2x128xf32>
    %439 = arith.divf %437, %438 : vector<2x128xf32>
    %440 = vector.extract_strided_slice %433 {offsets = [0, 128], sizes = [2, 128], strides = [1, 1]} : vector<2x512xf32> to vector<2x128xf32>
    %441 = arith.negf %440 : vector<2x128xf32>
    %442 = math.exp %441 : vector<2x128xf32>
    %cst_91 = arith.constant 1.000000e+00 : f32
    %443 = vector.broadcast %cst_91 : f32 to vector<2x128xf32>
    %444 = arith.addf %443, %442 : vector<2x128xf32>
    %445 = arith.divf %443, %444 : vector<2x128xf32>
    %446 = vector.extract_strided_slice %433 {offsets = [0, 256], sizes = [2, 128], strides = [1, 1]} : vector<2x512xf32> to vector<2x128xf32>
    %447 = math.tanh %446 : vector<2x128xf32>
    %448 = vector.extract_strided_slice %433 {offsets = [0, 384], sizes = [2, 128], strides = [1, 1]} : vector<2x512xf32> to vector<2x128xf32>
    %449 = arith.negf %448 : vector<2x128xf32>
    %450 = math.exp %449 : vector<2x128xf32>
    %cst_92 = arith.constant 1.000000e+00 : f32
    %451 = vector.broadcast %cst_92 : f32 to vector<2x128xf32>
    %452 = arith.addf %451, %450 : vector<2x128xf32>
    %453 = arith.divf %451, %452 : vector<2x128xf32>
    %454 = arith.mulf %445, %429 : vector<2x128xf32>
    %455 = arith.mulf %439, %447 : vector<2x128xf32>
    %456 = arith.addf %454, %455 : vector<2x128xf32>
    %457 = math.tanh %456 : vector<2x128xf32>
    %458 = arith.mulf %453, %457 : vector<2x128xf32>
    %cst_93 = arith.constant dense<0.000000e+00> : vector<2x512xf32>
    %459 = tpu.matmul %458, %253, %cst_93 {dimension_numbers = #tpu.dot_dimension_numbers<[1], [0], [0], [1], [0, 0, 1, 1], [], []>} : vector<2x128xf32>, vector<128x512xf32>, vector<2x512xf32> -> vector<2x512xf32>
    %460 = arith.addf %266, %459 : vector<2x512xf32>
    %461 = vector.extract_strided_slice %460 {offsets = [0, 0], sizes = [2, 128], strides = [1, 1]} : vector<2x512xf32> to vector<2x128xf32>
    %462 = arith.negf %461 : vector<2x128xf32>
    %463 = math.exp %462 : vector<2x128xf32>
    %cst_94 = arith.constant 1.000000e+00 : f32
    %464 = vector.broadcast %cst_94 : f32 to vector<2x128xf32>
    %465 = arith.addf %464, %463 : vector<2x128xf32>
    %466 = arith.divf %464, %465 : vector<2x128xf32>
    %467 = vector.extract_strided_slice %460 {offsets = [0, 128], sizes = [2, 128], strides = [1, 1]} : vector<2x512xf32> to vector<2x128xf32>
    %468 = arith.negf %467 : vector<2x128xf32>
    %469 = math.exp %468 : vector<2x128xf32>
    %cst_95 = arith.constant 1.000000e+00 : f32
    %470 = vector.broadcast %cst_95 : f32 to vector<2x128xf32>
    %471 = arith.addf %470, %469 : vector<2x128xf32>
    %472 = arith.divf %470, %471 : vector<2x128xf32>
    %473 = vector.extract_strided_slice %460 {offsets = [0, 256], sizes = [2, 128], strides = [1, 1]} : vector<2x512xf32> to vector<2x128xf32>
    %474 = math.tanh %473 : vector<2x128xf32>
    %475 = vector.extract_strided_slice %460 {offsets = [0, 384], sizes = [2, 128], strides = [1, 1]} : vector<2x512xf32> to vector<2x128xf32>
    %476 = arith.negf %475 : vector<2x128xf32>
    %477 = math.exp %476 : vector<2x128xf32>
    %cst_96 = arith.constant 1.000000e+00 : f32
    %478 = vector.broadcast %cst_96 : f32 to vector<2x128xf32>
    %479 = arith.addf %478, %477 : vector<2x128xf32>
    %480 = arith.divf %478, %479 : vector<2x128xf32>
    %481 = arith.mulf %472, %456 : vector<2x128xf32>
    %482 = arith.mulf %466, %474 : vector<2x128xf32>
    %483 = arith.addf %481, %482 : vector<2x128xf32>
    %484 = math.tanh %483 : vector<2x128xf32>
    %485 = arith.mulf %480, %484 : vector<2x128xf32>
    %c0_97 = arith.constant 0 : index
    %c0_98 = arith.constant 0 : index
    %486 = vector.load %arg8[%c0_97, %c0_98] : memref<128x128xf32, #tpu.memory_space<vmem>>, vector<128x128xf32>
    %cst_99 = arith.constant dense<0.000000e+00> : vector<2x128xf32>
    %487 = tpu.matmul %485, %486, %cst_99 {dimension_numbers = #tpu.dot_dimension_numbers<[1], [0], [0], [1], [0, 0, 1, 1], [], []>} : vector<2x128xf32>, vector<128x128xf32>, vector<2x128xf32> -> vector<2x128xf32>
    %c0_100 = arith.constant 0 : index
    %c0_101 = arith.constant 0 : index
    %488 = vector.load %arg9[%c0_100, %c0_101] : memref<1x128xf32, #tpu.memory_space<vmem>>, vector<1x128xf32>
    %489 = vector.broadcast %488 : vector<1x128xf32> to vector<2x128xf32>
    %490 = arith.addf %487, %489 : vector<2x128xf32>
    %cst_102 = arith.constant 0.000000e+00 : f32
    %491 = vector.broadcast %cst_102 : f32 to vector<2x128xf32>
    %492 = arith.maximumf %490, %491 : vector<2x128xf32>
    %c0_103 = arith.constant 0 : index
    %c0_104 = arith.constant 0 : index
    %493 = vector.load %arg10[%c0_103, %c0_104] : memref<128x3xf32, #tpu.memory_space<vmem>>, vector<128x3xf32>
    %cst_105 = arith.constant dense<0.000000e+00> : vector<2x3xf32>
    %494 = tpu.matmul %492, %493, %cst_105 {dimension_numbers = #tpu.dot_dimension_numbers<[1], [0], [0], [1], [0, 0, 1, 1], [], []>} : vector<2x128xf32>, vector<128x3xf32>, vector<2x3xf32> -> vector<2x3xf32>
    %c0_106 = arith.constant 0 : index
    %c0_107 = arith.constant 0 : index
    %495 = vector.load %arg11[%c0_106, %c0_107] : memref<1x3xf32, #tpu.memory_space<vmem>>, vector<1x3xf32>
    %496 = vector.broadcast %495 : vector<1x3xf32> to vector<2x3xf32>
    %497 = arith.addf %494, %496 : vector<2x3xf32>
    %c0_108 = arith.constant 0 : index
    %c0_109 = arith.constant 0 : index
    %498 = vector.load %arg12[%c0_108, %c0_109] : memref<2x3xf32, #tpu.memory_space<vmem>>, vector<2x3xf32>
    tpu.vector_store %arg12[%c0_108, %c0_109], %497 {strides = array<i32>} : memref<2x3xf32, #tpu.memory_space<vmem>>, vector<2x3xf32>,
    return
  }
}

</mosaic_0001>

<bundles_post_ra>
// kernel: tpu_custom_call.1
= control target key start
LH: loop header
LB: loop body
LE: loop exit
PB: predicated region body
PF: predicated region fallthrough
CT: control target
= control target key end

     0   :  { %17 = vsyncpa [#allocation4], 0  ;;  %s7154_s0 = inlined_call_operand.hbm [shape: f32[2,8,32], index: 0, kind: input, shape index: {}]   ;;  %s7155_s1 = inlined_call_operand.vmem [shape: f32[2,2,128], index: 1, kind: input, shape index: {}]   ;;  %s7156_s2 = inlined_call_operand.vmem [shape: f32[32,512], index: 2, kind: input, shape index: {}]   ;;  %s7157_s3 = inlined_call_operand.hbm [shape: f32[128,512], index: 3, kind: input, shape index: {}]   ;;  %s7158_s4 = inlined_call_operand.vmem [shape: f32[1,512], index: 4, kind: input, shape index: {}]   ;;  %s7159_s5 = inlined_call_operand.hbm [shape: f32[128,512], index: 5, kind: input, shape index: {}]   ;;  %s7160_s6 = inlined_call_operand.hbm [shape: f32[128,512], index: 6, kind: input, shape index: {}]   ;;  %s7161_s7 = inlined_call_operand.vmem [shape: f32[1,512], index: 7, kind: input, shape index: {}]   ;;  %s7162_s8 = inlined_call_operand.hbm [shape: f32[128,128], index: 8, kind: input, shape index: {}]   ;;  %s7163_s9 = inlined_call_operand.vmem [shape: f32[1,128], index: 9, kind: input, shape index: {}]   ;;  %s7164_s10 = inlined_call_operand.vmem [shape: f32[128,3], index: 10, kind: input, shape index: {}]   ;;  %s7165_s11 = inlined_call_operand.vmem [shape: f32[1,3], index: 11, kind: input, shape index: {}]   ;;  %s7166_s12 = inlined_call_operand.hbm [shape: f32[2,3], index: 12, kind: output, shape index: {}]  }
   0x1   :  { %18 = vsyncpa [#allocation7], 0 }
   0x2   :  { %19 = vsyncpa [#allocation10], 0 }
   0x3   :  { %20 = vsyncpa [#allocation5], 0  ;;  %s5053_s21 = smov [#allocation6]  }
   0x4   :  { %s42_s22 = sshll.u32 %s5053_s21, 4  ;;  %s43_s22 = int_to_ptr.vmem [resolvable:$true] %s42_s22 }
   0x5   :  { %s4933_s23 = scalar_lea.vmem %s43_s22, 8192  ;;  %p4938_p1 = scmp.lt.s32.totalorder %s43_s22, %s43_s22 }
   0x6   :  { %p4934_p0 = scmp.ne.s32.totalorder %s43_s22, %s4933_s23  ;;  %p4939_p2 = scmp.lt.s32.totalorder %s4933_s23, %s4933_s23 }
   0x8   :  { %p4940_p3 = por %p4939_p2, %p4938_p1 }
   0xa   :  { %p4941_p4 = pnand %p4940_p3, %p4934_p0 }
   0xc   :  { %4944 = shalt.err (!%p4941_p4)
}
   0xd   :  { %s5054_s24 = smov 512   ;;  %s5055_s25 = smov 32  }
   0xe   :  { %48 = dma.hbm_to_vmem [thread:$0]  %s7157_s3, 8192, %s43_s22, [#allocation7], %s5054_s24, %s5054_s24, %s5055_s25  }
   0xf   :  { %s5056_s28 = smov [#allocation9]   ;;  %s5057_s30 = smov [#allocation3]  }
  0x10   :  { %s68_s29 = sshll.u32 %s5056_s28, 4  ;;  %s26_s13 = sshll.u32 %s5057_s30, 4  ;;  %s69_s29 = int_to_ptr.vmem [resolvable:$true] %s68_s29  ;;  %s27_s13 = int_to_ptr.vmem [resolvable:$true] %s26_s13 }
  0x11   :  { %s4953_s14 = scalar_lea.vmem %s69_s29, 8192  ;;  %p4958_p6 = scmp.lt.s32.totalorder %s69_s29, %s69_s29 }
  0x12   :  { %p4954_p5 = scmp.ne.s32.totalorder %s69_s29, %s4953_s14  ;;  %p4959_p7 = scmp.lt.s32.totalorder %s4953_s14, %s4953_s14 }
  0x14   :  { %p4960_p8 = por %p4959_p7, %p4958_p6 }
  0x16   :  { %p4961_p9 = pnand %p4960_p8, %p4954_p5 }
  0x18   :  { %4964 = shalt.err (!%p4961_p9)
}
  0x19   :  { %74 = dma.hbm_to_vmem [thread:$0]  %s7160_s6, 8192, %s69_s29, [#allocation10], %s5054_s24, %s5054_s24, %s5055_s25  }
  0x1a   :  { %s4973_s3 = scalar_lea.vmem %s27_s13, 256  ;;  %p4978_p11 = scmp.lt.s32.totalorder %s27_s13, %s27_s13 }
  0x1b   :  { %p4974_p10 = scmp.ne.s32.totalorder %s27_s13, %s4973_s3  ;;  %p4979_p12 = scmp.lt.s32.totalorder %s4973_s3, %s4973_s3 }
  0x1d   :  { %p4980_p13 = por %p4979_p12, %p4978_p11 }
  0x1f   :  { %p4981_p0 = pnand %p4980_p13, %p4974_p10 }
  0x21   :  { %4984 = shalt.err (!%p4981_p0)
}
  0x22   :  { %s5058_s17 = smov 128   ;;  %s5059_s18 = smov 8  }
  0x23   :  { %32 = dma.hbm_to_vmem [thread:$0]  %s7154_s0, 256, %s27_s13, [#allocation4], %s5058_s17, %s5058_s17, %s5059_s18  }
  0x24   :  { %s5060_s21 = smov [#allocation8]   ;;  %s5061_s23 = smov [#allocation11]  }
  0x25   :  { %s56_s22 = sshll.u32 %s5060_s21, 4  ;;  %s82_s26 = sshll.u32 %s5061_s23, 4  ;;  %s57_s22 = int_to_ptr.vmem [resolvable:$true] %s56_s22  ;;  %s83_s26 = int_to_ptr.vmem [resolvable:$true] %s82_s26 }
  0x26   :  { %s4993_s6 = scalar_lea.vmem %s57_s22, 8192  ;;  %p4998_p2 = scmp.lt.s32.totalorder %s57_s22, %s57_s22 }
  0x27   :  { %p4994_p1 = scmp.ne.s32.totalorder %s57_s22, %s4993_s6  ;;  %p4999_p3 = scmp.lt.s32.totalorder %s4993_s6, %s4993_s6 }
  0x29   :  { %p5000_p4 = por %p4999_p3, %p4998_p2 }
  0x2b   :  { %p5001_p5 = pnand %p5000_p4, %p4994_p1 }
  0x2d   :  { %5004 = shalt.err (!%p5001_p5)
}
  0x2e   :  { %62 = dma.hbm_to_vmem [thread:$0]  %s7159_s5, 8192, %s57_s22, [#allocation7], %s5054_s24, %s5054_s24, %s5055_s25  }
  0x2f   :  { %s5013_s0 = scalar_lea.vmem %s83_s26, 2048  ;;  %p5018_p7 = scmp.lt.s32.totalorder %s83_s26, %s83_s26 }
  0x30   :  { %p5014_p6 = scmp.ne.s32.totalorder %s83_s26, %s5013_s0  ;;  %p5019_p8 = scmp.lt.s32.totalorder %s5013_s0, %s5013_s0 }
  0x32   :  { %p5020_p9 = por %p5019_p8, %p5018_p7 }
  0x34   :  { %p5021_p10 = pnand %p5020_p9, %p5014_p6 }
  0x36   :  { %5024 = shalt.err (!%p5021_p10)
}
  0x37   :  { %88 = dma.hbm_to_vmem [thread:$0]  %s7162_s8, 2048, %s83_s26, [#allocation10], %s5058_s17, %s5058_s17, %s5059_s18  }
  0x38   :  { %5045 = dma.done.wait [#allocation4], 256  }
  0x39   :  { %5046 = vsyncadd [#allocation4], 4294967040 }
  0x3a   :  { %5047 = dma.done.wait [#allocation7], 16384  }
  0x3b   :  { %5048 = vsyncadd [#allocation7], 4294950912 }
  0x3c   :  { %5049 = dma.done.wait [#allocation10], 10240  }
  0x3d   :  { %5050 = vsyncadd [#allocation10], 4294957056  ;;  %v7169_v0 = vmov 0.0   ;;  %v123_v1 = vld [vmem:[%s7156_s2 + $0x68] sm:$0xff]  ;;  %v125_v2 = vld [vmem:[%s7156_s2 + $0x78] sm:$0xff]  ;;  %vm214_vm0 = vcmask 261120  }
  0x3e   :  { %285 = vmatprep.mubr.f32.mxu0 %v7169_v0  ;;  %362 = vmatprep.mubr.f32.mxu1 %v7169_v0  ;;  %v122_v3 = vld [vmem:[%s7156_s2 + $0x60] sm:$0xff]  ;;  %v124_v4 = vld [vmem:[%s7156_s2 + $0x70] sm:$0xff]  ;;  %v119_v5 = vld [vmem:[%s7156_s2 + $0x48] sm:$0xff]  ;;  %vm593_vm1 = vcmask 1041409   ;;  %vm820_vm2 = vcmask 1042434   ;;  %vm1054_vm3 = vcmask 1043459  }
  0x3f   :  { %245 = vmatprep.subr.mxu0 %v123_v1  ;;  %322 = vmatprep.subr.mxu1 %v125_v2  ;;  %v121_v6 = vld [vmem:[%s7156_s2 + $0x58] sm:$0xff]  ;;  %v118_v7 = vld [vmem:[%s7156_s2 + $0x40] sm:$0xff]  ;;  %v120_v8 = vld [vmem:[%s7156_s2 + $0x50] sm:$0xff]  ;;  %vm1289_vm4 = vcmask 1044484   ;;  %vm1524_vm5 = vcmask 1045509   ;;  %vm1759_vm6 = vcmask 1046534  }
  0x40   :  { %246 = vmatpush1.msra.mxu0 %v122_v3  ;;  %323 = vmatpush1.msra.mxu1 %v124_v4  ;;  %v115_v9 = vld [vmem:[%s7156_s2 + $0x28] sm:$0xff]  ;;  %v117_v10 = vld [vmem:[%s7156_s2 + $0x38] sm:$0xff]  ;;  %v114_v11 = vld [vmem:[%s7156_s2 + $0x20] sm:$0xff]  ;;  %vm1994_vm7 = vcmask 1047559   ;;  %vm5063_vm8 = vmmov 0   ;;  %s5064_s30 = smov [#allocation12]  }
  0x41   :  { %247 = vmatprep.subr.mxu0 %v119_v5  ;;  %324 = vmatprep.subr.mxu1 %v121_v6  ;;  %v116_v12 = vld [vmem:[%s7156_s2 + $0x30] sm:$0xff]  ;;  %v111_v13 = vld [vmem:[%s7156_s2 + $0x8] sm:$0xff]  ;;  %v113_v14 = vld [vmem:[%s7156_s2 + $0x18] sm:$0xff]  ;;  %s4207_s5 = sshll.u32 %s5064_s30, 4  ;;  %vm4199_vm9 = vcmask 17408   ;;  %s4208_s5 = int_to_ptr.vmem [resolvable:$true] %s4207_s5 }
  0x42   :  { %248 = vmatpush1.msra.mxu0 %v118_v7  ;;  %325 = vmatpush1.msra.mxu1 %v120_v8  ;;  %v110_v15 = vld [vmem:[%s7156_s2] sm:$0xff]  ;;  %v112_v16 = vld [vmem:[%s7156_s2 + $0x10] sm:$0xff]  ;;  %v5204_v18 = vld [vmem:[#allocation6 + $0x1e8] sm:$0xff]  ;;  %p5030_p12 = scmp.lt.s32.totalorder %s4208_s5, %s4208_s5 }
  0x43   :  { %249 = vmatprep.subr.mxu0 %v115_v9  ;;  %326 = vmatprep.subr.mxu1 %v117_v10  ;;  %v191_v17 = vld [vmem:[#allocation3] sm:$0xff]  ;;  %7415 = vst [vmem:[#allocation17_spill] sm:$0xff] %v5204_v18  ;;  %v5206_v19 = vld [vmem:[#allocation6 + $0x1f8] sm:$0xff]  ;;  %v5208_v20 = vld [vmem:[#allocation6 + $0x1e0] sm:$0xff] }
  0x44   :  { %250 = vmatpush1.msra.mxu0 %v114_v11  ;;  %327 = vmatpush1.msra.mxu1 %v116_v12  ;;  %7416 = vst [vmem:[#allocation18_spill] sm:$0xff] %v5206_v19  ;;  %v5210_v21 = vld [vmem:[#allocation6 + $0x1f0] sm:$0xff]  ;;  %v5214_v22 = vld [vmem:[#allocation6 + $0x1c8] sm:$0xff]  ;;  %v5216_v23 = vld [vmem:[#allocation6 + $0x1d8] sm:$0xff] }
  0x45   :  { %251 = vmatprep.subr.mxu0 %v111_v13  ;;  %328 = vmatprep.subr.mxu1 %v113_v14  ;;  %v5220_v24 = vld [vmem:[#allocation6 + $0x1c0] sm:$0xff]  ;;  %v5222_v25 = vld [vmem:[#allocation6 + $0x1d0] sm:$0xff]  ;;  %v5226_v26 = vld [vmem:[#allocation6 + $0x1a8] sm:$0xff] }
  0x46   :  { %252 = vmatpush1.msra.mxu0 %v110_v15  ;;  %329 = vmatpush1.msra.mxu1 %v112_v16  ;;  %v5228_v27 = vld [vmem:[#allocation6 + $0x1b8] sm:$0xff]  ;;  %v5232_v28 = vld [vmem:[#allocation6 + $0x1a0] sm:$0xff]  ;;  %v5234_v29 = vld [vmem:[#allocation6 + $0x1b0] sm:$0xff] }
  0x47   :  { %4218 = vmatmul.mubr.msk.f32.vlgmr.msra.gmra.mxu0 %vm214_vm0, %v191_v17  ;;  %376 = vmatprep.subr.mxu0 %v5204_v18  ;;  %v5238_v30 = vld [vmem:[#allocation6 + $0x188] sm:$0xff]  ;;  %v5240_v31 = vld [vmem:[#allocation6 + $0x198] sm:$0xff]  ;;  %v5244_v32 = vld [vmem:[#allocation6 + $0x180] sm:$0xff] }
  0x48   :  { %447 = vmatprep.subr.mxu1 %v5206_v19  ;;  %4220 = vmatmul.mubr.msk.f32.vlgmr.msra.gmra.mxu1 %vm214_vm0, %v191_v17  ;;  %v5246_v33 = vld [vmem:[#allocation6 + $0x190] sm:$0xff]  ;;  %v5250_v34 = vld [vmem:[#allocation6 + $0x168] sm:$0xff]  ;;  %v5252_v35 = vld [vmem:[#allocation6 + $0x178] sm:$0xff] }
  0x49   :  { %377 = vmatpush1.msra.mxu0 %v5208_v20  ;;  %448 = vmatpush1.msra.mxu1 %v5210_v21  ;;  %v5256_v36 = vld [vmem:[#allocation6 + $0x160] sm:$0xff]  ;;  %v5258_v37 = vld [vmem:[#allocation6 + $0x170] sm:$0xff]  ;;  %v5262_v38 = vld [vmem:[#allocation6 + $0x148] sm:$0xff] }
  0x4a   :  { %378 = vmatprep.subr.mxu0 %v5214_v22  ;;  %449 = vmatprep.subr.mxu1 %v5216_v23  ;;  %v5264_v39 = vld [vmem:[#allocation6 + $0x158] sm:$0xff]  ;;  %v5268_v40 = vld [vmem:[#allocation6 + $0x140] sm:$0xff]  ;;  %v5270_v41 = vld [vmem:[#allocation6 + $0x150] sm:$0xff] }
  0x4b   :  { %379 = vmatpush1.msra.mxu0 %v5220_v24  ;;  %450 = vmatpush1.msra.mxu1 %v5222_v25  ;;  %v5274_v42 = vld [vmem:[#allocation6 + $0x128] sm:$0xff]  ;;  %v5276_v43 = vld [vmem:[#allocation6 + $0x138] sm:$0xff]  ;;  %v5280_v44 = vld [vmem:[#allocation6 + $0x120] sm:$0xff] }
  0x4c   :  { %380 = vmatprep.subr.mxu0 %v5226_v26  ;;  %451 = vmatprep.subr.mxu1 %v5228_v27  ;;  %v5282_v45 = vld [vmem:[#allocation6 + $0x130] sm:$0xff]  ;;  %v5286_v46 = vld [vmem:[#allocation6 + $0x108] sm:$0xff]  ;;  %v5288_v47 = vld [vmem:[#allocation6 + $0x118] sm:$0xff] }
  0x4d   :  { %381 = vmatpush1.msra.mxu0 %v5232_v28  ;;  %452 = vmatpush1.msra.mxu1 %v5234_v29  ;;  %v5292_v48 = vld [vmem:[#allocation6 + $0x100] sm:$0xff]  ;;  %v5294_v49 = vld [vmem:[#allocation6 + $0x110] sm:$0xff]  ;;  %v5298_v50 = vld [vmem:[#allocation6 + $0xe8] sm:$0xff] }
  0x4e   :  { %382 = vmatprep.subr.mxu0 %v5238_v30  ;;  %453 = vmatprep.subr.mxu1 %v5240_v31  ;;  %v5300_v51 = vld [vmem:[#allocation6 + $0xf8] sm:$0xff]  ;;  %v5304_v52 = vld [vmem:[#allocation6 + $0xe0] sm:$0xff]  ;;  %v5306_v53 = vld [vmem:[#allocation6 + $0xf0] sm:$0xff] }
  0x4f   :  { %383 = vmatpush1.msra.mxu0 %v5244_v32  ;;  %454 = vmatpush1.msra.mxu1 %v5246_v33  ;;  %v5310_v54 = vld [vmem:[#allocation6 + $0xc8] sm:$0xff]  ;;  %v5312_v55 = vld [vmem:[#allocation6 + $0xd8] sm:$0xff]  ;;  %v5316_v56 = vld [vmem:[#allocation6 + $0xc0] sm:$0xff] }
  0x50   :  { %384 = vmatprep.subr.mxu0 %v5250_v34  ;;  %455 = vmatprep.subr.mxu1 %v5252_v35  ;;  %v5318_v57 = vld [vmem:[#allocation6 + $0xd0] sm:$0xff]  ;;  %v5322_v58 = vld [vmem:[#allocation6 + $0xa8] sm:$0xff]  ;;  %v5324_v59 = vld [vmem:[#allocation6 + $0xb8] sm:$0xff] }
  0x51   :  { %385 = vmatpush1.msra.mxu0 %v5256_v36  ;;  %456 = vmatpush1.msra.mxu1 %v5258_v37  ;;  %7417 = vst [vmem:[#allocation19_spill] sm:$0xff] %v5324_v59  ;;  %v5328_v60 = vld [vmem:[#allocation6 + $0xa0] sm:$0xff]  ;;  %v5330_v61 = vld [vmem:[#allocation6 + $0xb0] sm:$0xff]  ;;  %v5334_v62 = vld [vmem:[#allocation6 + $0x88] sm:$0xff] }
  0x52   :  { %386 = vmatprep.subr.mxu0 %v5262_v38  ;;  %457 = vmatprep.subr.mxu1 %v5264_v39  ;;  %7418 = vst [vmem:[#allocation20_spill] sm:$0xff] %v5328_v60  ;;  %7419 = vst [vmem:[#allocation21_spill] sm:$0xff] %v5330_v61  ;;  %v5336_v63 = vld [vmem:[#allocation6 + $0x98] sm:$0xff]  ;;  %v5340_v1 = vld [vmem:[#allocation6 + $0x80] sm:$0xff] }
  0x53   :  { %387 = vmatpush1.msra.mxu0 %v5268_v40  ;;  %458 = vmatpush1.msra.mxu1 %v5270_v41  ;;  %7420 = vst [vmem:[#allocation22_spill] sm:$0xff] %v5334_v62  ;;  %7421 = vst [vmem:[#allocation23_spill] sm:$0xff] %v5336_v63  ;;  %v5342_v2 = vld [vmem:[#allocation6 + $0x90] sm:$0xff]  ;;  %v5346_v3 = vld [vmem:[#allocation6 + $0x68] sm:$0xff] }
  0x54   :  { %388 = vmatprep.subr.mxu0 %v5274_v42  ;;  %459 = vmatprep.subr.mxu1 %v5276_v43  ;;  %7422 = vst [vmem:[#allocation24_spill] sm:$0xff] %v5340_v1  ;;  %7423 = vst [vmem:[#allocation25_spill] sm:$0xff] %v5342_v2  ;;  %v5348_v4 = vld [vmem:[#allocation6 + $0x78] sm:$0xff]  ;;  %v5352_v5 = vld [vmem:[#allocation6 + $0x60] sm:$0xff] }
  0x55   :  { %389 = vmatpush1.msra.mxu0 %v5280_v44  ;;  %460 = vmatpush1.msra.mxu1 %v5282_v45  ;;  %7424 = vst [vmem:[#allocation26_spill] sm:$0xff] %v5346_v3  ;;  %7425 = vst [vmem:[#allocation27_spill] sm:$0xff] %v5348_v4  ;;  %v5356_v6 = vld [vmem:[#allocation6 + $0x70] sm:$0xff]  ;;  %v192_v7 = vld [vmem:[#allocation3 + $0x8] sm:$0xff] }
  0x56   :  { %390 = vmatprep.subr.mxu0 %v5286_v46  ;;  %461 = vmatprep.subr.mxu1 %v5288_v47  ;;  %7426 = vst [vmem:[#allocation28_spill] sm:$0xff] %v5352_v5  ;;  %7427 = vst [vmem:[#allocation29_spill] sm:$0xff] %v5356_v6  ;;  %v5360_v8 = vld [vmem:[#allocation6 + $0x48] sm:$0xff]  ;;  %v5362_v9 = vld [vmem:[#allocation6 + $0x58] sm:$0xff] }
  0x57   :  { %391 = vmatpush1.msra.mxu0 %v5292_v48  ;;  %462 = vmatpush1.msra.mxu1 %v5294_v49  ;;  %7428 = vst [vmem:[#allocation30_spill] sm:$0xff] %v5360_v8  ;;  %7429 = vst [vmem:[#allocation31_spill] sm:$0xff] %v5362_v9  ;;  %v5366_v10 = vld [vmem:[#allocation6 + $0x40] sm:$0xff]  ;;  %v5370_v11 = vld [vmem:[#allocation6 + $0x50] sm:$0xff] }
  0x58   :  { %392 = vmatprep.subr.mxu0 %v5298_v50  ;;  %463 = vmatprep.subr.mxu1 %v5300_v51  ;;  %7430 = vst [vmem:[#allocation32_spill] sm:$0xff] %v5366_v10  ;;  %7431 = vst [vmem:[#allocation33_spill] sm:$0xff] %v5370_v11  ;;  %v5372_v12 = vld [vmem:[#allocation6 + $0x28] sm:$0xff]  ;;  %v5376_v13 = vld [vmem:[#allocation6 + $0x38] sm:$0xff] }
  0x59   :  { %393 = vmatpush1.msra.mxu0 %v5304_v52  ;;  %464 = vmatpush1.msra.mxu1 %v5306_v53  ;;  %7432 = vst [vmem:[#allocation34_spill] sm:$0xff] %v5372_v12  ;;  %7433 = vst [vmem:[#allocation35_spill] sm:$0xff] %v5376_v13  ;;  %v5380_v14 = vld [vmem:[#allocation6 + $0x20] sm:$0xff]  ;;  %v5382_v15 = vld [vmem:[#allocation6 + $0x30] sm:$0xff] }
  0x5a   :  { %394 = vmatprep.subr.mxu0 %v5310_v54  ;;  %465 = vmatprep.subr.mxu1 %v5312_v55  ;;  %7434 = vst [vmem:[#allocation36_spill] sm:$0xff] %v5380_v14  ;;  %7435 = vst [vmem:[#allocation37_spill] sm:$0xff] %v5382_v15  ;;  %v5386_v16 = vld [vmem:[#allocation6 + $0x8] sm:$0xff]  ;;  %v5388_v17 = vld [vmem:[#allocation6 + $0x18] sm:$0xff] }
  0x5b   :  { %395 = vmatpush1.msra.mxu0 %v5316_v56  ;;  %466 = vmatpush1.msra.mxu1 %v5318_v57  ;;  %7436 = vst [vmem:[#allocation38_spill] sm:$0xff] %v5386_v16  ;;  %7437 = vst [vmem:[#allocation39_spill] sm:$0xff] %v5388_v17 }
  0x5c   :  { %396 = vmatprep.subr.mxu0 %v5322_v58  ;;  %467 = vmatprep.subr.mxu1 %v5324_v59 }
  0x5d   :  { %397 = vmatpush1.msra.mxu0 %v5328_v60  ;;  %468 = vmatpush1.msra.mxu1 %v5330_v61 }
  0x5e   :  { %398 = vmatprep.subr.mxu0 %v5334_v62  ;;  %469 = vmatprep.subr.mxu1 %v5336_v63 }
  0x5f   :  { %399 = vmatpush1.msra.mxu0 %v5340_v1  ;;  %470 = vmatpush1.msra.mxu1 %v5342_v2 }
  0x60   :  { %400 = vmatprep.subr.mxu0 %v5346_v3  ;;  %471 = vmatprep.subr.mxu1 %v5348_v4 }
  0x61   :  { %291 = vmatprep.mubr.f32.mxu0 %v7169_v0  ;;  %401 = vmatpush1.msra.mxu0 %v5352_v5 }
  0x62   :  { %472 = vmatpush1.msra.mxu1 %v5356_v6  ;;  %4219 = vmatmul.mubr.msk.f32.gmra.mxu0 %vm214_vm0, %v192_v7 }
  0x63   :  { %402 = vmatprep.subr.mxu0 %v5360_v8  ;;  %473 = vmatprep.subr.mxu1 %v5362_v9  ;;  %v5392_v9 = vld [vmem:[#allocation6] sm:$0xff] }
  0x64   :  { %368 = vmatprep.mubr.f32.mxu1 %v7169_v0  ;;  %403 = vmatpush1.msra.mxu0 %v5366_v10  ;;  %7438 = vst [vmem:[#allocation40_spill] sm:$0xff] %v5392_v9  ;;  %v5396_v0 = vld [vmem:[#allocation6 + $0x10] sm:$0xff] }
  0x65   :  { %474 = vmatpush1.msra.mxu1 %v5370_v11  ;;  %404 = vmatprep.subr.mxu0 %v5372_v12  ;;  %7439 = vst [vmem:[#allocation41_spill] sm:$0xff] %v5396_v0  ;;  %v375_v12 = vld [vmem:[%s7155_s1] sm:$0x3] }
  0x66   :  { %4221 = vmatmul.mubr.msk.f32.gmra.mxu1 %vm214_vm0, %v192_v7  ;;  %475 = vmatprep.subr.mxu1 %v5376_v13  ;;  %v7440_v7 = vmov 0.0  }
  0x67   :  { %405 = vmatpush1.msra.mxu0 %v5380_v14  ;;  %476 = vmatpush1.msra.mxu1 %v5382_v15 }
  0x68   :  { %406 = vmatprep.subr.mxu0 %v5386_v16  ;;  %477 = vmatprep.subr.mxu1 %v5388_v17 }
  0x69   :  { %407 = vmatpush1.msra.mxu0 %v5392_v9  ;;  %440 = vmatprep.mubr.f32.mxu0 %v7440_v7 }
  0x6a   :  { %478 = vmatpush1.msra.mxu1 %v5396_v0  ;;  %511 = vmatprep.mubr.f32.mxu1 %v7440_v7 }
  0x6b   :  { %441 = vmatmul.mubr.f32.vlgmr.msra.gmra.mxu0 %v375_v12  ;;  %512 = vmatmul.mubr.f32.vlgmr.msra.gmra.mxu1 %v375_v12  ;;  %v7441_v12 = vld [vmem:[#allocation31_spill] sm:$0xff] }
  0x6c   :  { %597 = vmatprep.subr.mxu0 %v5204_v18  ;;  %668 = vmatprep.subr.mxu1 %v5206_v19 }
  0x6d   :  { %598 = vmatpush1.msra.mxu0 %v5208_v20  ;;  %669 = vmatpush1.msra.mxu1 %v5210_v21 }
  0x6e   :  { %599 = vmatprep.subr.mxu0 %v5214_v22  ;;  %670 = vmatprep.subr.mxu1 %v5216_v23 }
  0x6f   :  { %600 = vmatpush1.msra.mxu0 %v5220_v24  ;;  %671 = vmatpush1.msra.mxu1 %v5222_v25 }
  0x70   :  { %601 = vmatprep.subr.mxu0 %v5226_v26  ;;  %672 = vmatprep.subr.mxu1 %v5228_v27 }
  0x71   :  { %602 = vmatpush1.msra.mxu0 %v5232_v28  ;;  %673 = vmatpush1.msra.mxu1 %v5234_v29 }
  0x72   :  { %603 = vmatprep.subr.mxu0 %v5238_v30  ;;  %674 = vmatprep.subr.mxu1 %v5240_v31 }
  0x73   :  { %604 = vmatpush1.msra.mxu0 %v5244_v32  ;;  %675 = vmatpush1.msra.mxu1 %v5246_v33 }
  0x74   :  { %605 = vmatprep.subr.mxu0 %v5250_v34  ;;  %676 = vmatprep.subr.mxu1 %v5252_v35 }
  0x75   :  { %606 = vmatpush1.msra.mxu0 %v5256_v36  ;;  %677 = vmatpush1.msra.mxu1 %v5258_v37 }
  0x76   :  { %607 = vmatprep.subr.mxu0 %v5262_v38  ;;  %678 = vmatprep.subr.mxu1 %v5264_v39 }
  0x77   :  { %608 = vmatpush1.msra.mxu0 %v5268_v40  ;;  %679 = vmatpush1.msra.mxu1 %v5270_v41 }
  0x78   :  { %609 = vmatprep.subr.mxu0 %v5274_v42  ;;  %680 = vmatprep.subr.mxu1 %v5276_v43 }
  0x79   :  { %610 = vmatpush1.msra.mxu0 %v5280_v44  ;;  %681 = vmatpush1.msra.mxu1 %v5282_v45 }
  0x7a   :  { %611 = vmatprep.subr.mxu0 %v5286_v46  ;;  %682 = vmatprep.subr.mxu1 %v5288_v47 }
  0x7b   :  { %612 = vmatpush1.msra.mxu0 %v5292_v48  ;;  %683 = vmatpush1.msra.mxu1 %v5294_v49 }
  0x7c   :  { %613 = vmatprep.subr.mxu0 %v5298_v50  ;;  %684 = vmatprep.subr.mxu1 %v5300_v51 }
  0x7d   :  { %614 = vmatpush1.msra.mxu0 %v5304_v52  ;;  %685 = vmatpush1.msra.mxu1 %v5306_v53 }
  0x7e   :  { %615 = vmatprep.subr.mxu0 %v5310_v54  ;;  %686 = vmatprep.subr.mxu1 %v5312_v55 }
  0x7f   :  { %616 = vmatpush1.msra.mxu0 %v5316_v56  ;;  %687 = vmatpush1.msra.mxu1 %v5318_v57 }
  0x80   :  { %617 = vmatprep.subr.mxu0 %v5322_v58  ;;  %688 = vmatprep.subr.mxu1 %v5324_v59 }
  0x81   :  { %618 = vmatpush1.msra.mxu0 %v5328_v60  ;;  %689 = vmatpush1.msra.mxu1 %v5330_v61 }
  0x82   :  { %619 = vmatprep.subr.mxu0 %v5334_v62  ;;  %690 = vmatprep.subr.mxu1 %v5336_v63  ;;  %v7442_v63 = vld [vmem:[#allocation34_spill] sm:$0xff] }
  0x83   :  { %620 = vmatpush1.msra.mxu0 %v5340_v1  ;;  %691 = vmatpush1.msra.mxu1 %v5342_v2 }
  0x84   :  { %621 = vmatprep.subr.mxu0 %v5346_v3  ;;  %692 = vmatprep.subr.mxu1 %v5348_v4 }
  0x85   :  { %622 = vmatpush1.msra.mxu0 %v5352_v5  ;;  %693 = vmatpush1.msra.mxu1 %v5356_v6 }
  0x86   :  { %623 = vmatprep.subr.mxu0 %v5360_v8  ;;  %694 = vmatprep.subr.mxu1 %v7441_v12 }
  0x87   :  { %624 = vmatpush1.msra.mxu0 %v5366_v10  ;;  %695 = vmatpush1.msra.mxu1 %v5370_v11 }
  0x88   :  { %625 = vmatprep.subr.mxu0 %v7442_v63  ;;  %696 = vmatprep.subr.mxu1 %v5376_v13  ;;  %v194_v13 = vlaneseq }
  0x89   :  { %626 = vmatpush1.msra.mxu0 %v5380_v14  ;;  %697 = vmatpush1.msra.mxu1 %v5382_v15 }
  0x8a   :  { %627 = vmatprep.subr.mxu0 %v5386_v16  ;;  %698 = vmatprep.subr.mxu1 %v5388_v17  ;;  %v5475_v14 = vshrl.u32 %v194_v13, 7 }
  0x8b   :  { %628 = vmatpush1.msra.mxu0 %v5392_v9  ;;  %661 = vmatprep.mubr.f32.mxu0 %v7440_v7  ;;  %v190_v9 = vld [vmem:[%s7158_s4] sm:$0xf] }
  0x8c   :  { %699 = vmatpush1.msra.mxu1 %v5396_v0  ;;  %732 = vmatprep.mubr.f32.mxu1 %v7440_v7  ;;  %7443 = vst [vmem:[#allocation42_spill] sm:$0xff] %v5475_v14  ;;  %v7212_v16 = vsub.s32 0, %v5475_v14  ;;  %v7217_v0 = vsub.s32 1, %v5475_v14  ;;  %v7225_v62 = vsub.s32 3, %v5475_v14 }
  0x8d   :  { %827 = vmatprep.subr.mxu0 %v5204_v18  ;;  %898 = vmatprep.subr.mxu1 %v5206_v19 }
  0x8e   :  { %v197_v18 = vrot.slane %v190_v9, %v7212_v16  ;;  %v201_v13 = vrot.slane %v190_v9, %v7217_v0 }
 0x107   :  { %v287_v15 = vpop.f32.mrf.mxu0 }
 0x108   :  { %v364_v63 = vpop.f32.mrf.mxu1  ;;  %v5486_v12 = vadd.f32 %v287_v15, %v197_v18 }
 0x109   :  { %v289_v17 = vpop.f32.mrf.mxu0 }
 0x10a   :  { %v366_v11 = vpop.f32.mrf.mxu1  ;;  %7444 = vst [vmem:[#allocation43_spill] sm:$0xff] %v5486_v12  ;;  %v5491_v2 = vadd.f32 %v289_v17, %v201_v13 }
 0x10c   :  { %7446 = vst [vmem:[#allocation45_spill] sm:$0xff] %v5491_v2 }
 0x122   :  { %v293_v7 = vpop.f32.mrf.mxu0 }
 0x123   :  { %v5488_v5 = vadd.f32 %v293_v7, %v197_v18  ;;  %v7224_v18 = vsub.s32 2, %v5475_v14 }
 0x124   :  { %v295_v10 = vpop.f32.mrf.mxu0 }
 0x125   :  { %7445 = vst [vmem:[#allocation44_spill] sm:$0xff] %v5488_v5  ;;  %v5495_v60 = vadd.f32 %v295_v10, %v201_v13  ;;  %v205_v10 = vrot.slane %v190_v9, %v7224_v18 }
 0x126   :  { %v370_v19 = vpop.f32.mrf.mxu1 }
 0x127   :  { %7447 = vst [vmem:[#allocation46_spill] sm:$0xff] %v5495_v60 }
 0x128   :  { %v372_v8 = vpop.f32.mrf.mxu1 }
 0x12b   :  { %v442_v6 = vpop.f32.mrf.mxu0  ;;  %v513_v0 = vpop.f32.mrf.mxu1 }
 0x12c   :  { %v522_v4 = vrot.slane %v442_v6, 1  ;;  %v534_v3 = vadd.f32 %v442_v6, %v5486_v12  ;;  %v209_v12 = vrot.slane %v190_v9, %v7225_v62 }
 0x12d   :  { %v444_v1 = vpop.f32.mrf.mxu0 }
 0x12e   :  { %v538_v16 = vadd.f32 %v522_v4, %v5488_v5  ;;  %v4222_v61 = vmul.f32 -1.442695, %v534_v3  ;;  %v523_v15 = vrot.slane %v444_v1, 1  ;;  %v535_v59 = vadd.f32 %v444_v1, %v5491_v2  ;;  %v515_v3 = vpop.f32.mrf.mxu1 }
 0x12f   :  { %v5504_v13 = vadd.f32 %v372_v8, %v209_v12  ;;  %v525_v1 = vrot.slane %v515_v3, 1  ;;  %v5506_v2 = vadd.f32 %v370_v19, %v205_v10 }
 0x130   :  { %4413 = vpow2.f32 %v4222_v61  ;;  %v4223_v7 = vmul.f32 -1.442695, %v538_v16  ;;  %v539_v6 = vadd.f32 %v523_v15, %v5495_v60  ;;  %v4224_v17 = vmul.f32 -1.442695, %v535_v59 }
 0x131   :  { %7448 = vst [vmem:[#allocation47_spill] sm:$0xff] %v5506_v2  ;;  %v524_v61 = vrot.slane %v513_v0, 1  ;;  %v5508_v16 = vadd.f32 %v364_v63, %v205_v10  ;;  %v541_v59 = vadd.f32 %v525_v1, %v5504_v13  ;;  %v5511_v15 = vadd.f32 %v366_v11, %v209_v12 }
 0x132   :  { %4415 = vpow2.f32 %v4223_v7  ;;  %v4225_v4 = vmul.f32 -1.442695, %v539_v6 }
 0x133   :  { %4417 = vpow2.f32 %v4224_v17  ;;  %7449 = vst [vmem:[#allocation48_spill] sm:$0xff] %v5508_v16  ;;  %v536_v7 = vadd.f32 %v513_v0, %v5508_v16  ;;  %v540_v6 = vadd.f32 %v524_v61, %v5506_v2  ;;  %v537_v17 = vadd.f32 %v515_v3, %v5511_v15 }
 0x134   :  { %4419 = vpow2.f32 %v4225_v4  ;;  %v4227_v9 = vmul.f32 -1.442695, %v541_v59 }
 0x135   :  { %4421 = vtanh.f32 %v536_v7  ;;  %v4226_v63 = vmul.f32 -1.442695, %v537_v17 }
 0x136   :  { %4423 = vtanh.f32 %v540_v6 }
 0x137   :  { %4425 = vpow2.f32 %v4227_v9 }
 0x13d   :  { %v4414_v8 = vpop.eup %4413 }
 0x13e   :  { %v548_v18 = vadd.f32 1.0, %v4414_v8 }
 0x13f   :  { %v4416_v4 = vpop.eup %4415 }
 0x140   :  { %v4418_v19 = vpop.eup %4417  ;;  %v549_v62 = vadd.f32 1.0, %v4416_v4  ;;  %4427 = vrcp.f32 %v548_v18 }
 0x141   :  { %v560_v10 = vadd.f32 1.0, %v4418_v19  ;;  %v4420_v11 = vpop.eup %4419 }
 0x142   :  { %4429 = vrcp.f32 %v549_v62  ;;  %v561_v12 = vadd.f32 1.0, %v4420_v11  ;;  %v4422_v0 = vpop.eup %4421 }
 0x143   :  { %4431 = vrcp.f32 %v560_v10  ;;  %v4424_v3 = vpop.eup %4423 }
 0x144   :  { %4433 = vpow2.f32 %v4226_v63  ;;  %v4426_v1 = vpop.eup %4425 }
 0x145   :  { %4435 = vrcp.f32 %v561_v12  ;;  %v575_v4 = vadd.f32 1.0, %v4426_v1 }
 0x147   :  { %4437 = vrcp.f32 %v575_v4  ;;  %v7454_v4 = vld [vmem:[#allocation23_spill] sm:$0xff] }
 0x14d   :  { %v4428_v61 = vpop.eup %4427 }
 0x14e   :  { %v582_v14 = vmul.f32 %v4428_v61, %v4422_v0 }
 0x14f   :  { %v4430_v59 = vpop.eup %4429 }
 0x150   :  { %v4432_v7 = vpop.eup %4431  ;;  %v583_v18 = vmul.f32 %v4430_v59, %v4424_v3  ;;  %v7450_v3 = vld [vmem:[#allocation19_spill] sm:$0xff]  ;;  %v7451_v59 = vld [vmem:[#allocation20_spill] sm:$0xff] }
 0x151   :  { %v4434_v8 = vpop.eup %4433  ;;  %v580_v6 = vmul.f32 0.0, %v4432_v7 }
 0x152   :  { %v4436_v17 = vpop.eup %4435  ;;  %v574_v10 = vadd.f32 1.0, %v4434_v8  ;;  %v7452_v8 = vld [vmem:[#allocation21_spill] sm:$0xff] }
 0x153   :  { %v581_v9 = vmul.f32 0.0, %v4436_v17  ;;  %v5516_v19 = vadd.f32 %v582_v14, %v580_v6  ;;  %v7453_v6 = vld [vmem:[#allocation22_spill] sm:$0xff]  ;;  %v7455_v17 = vld [vmem:[#allocation24_spill] sm:$0xff] }
 0x154   :  { %v4438_v63 = vpop.eup %4437 }
 0x155   :  { %v5518_v62 = vadd.f32 %v583_v18, %v581_v9  ;;  %4439 = vtanh.f32 %v5516_v19  ;;  %v7456_v9 = vld [vmem:[#allocation25_spill] sm:$0xff]  ;;  %v7457_v18 = vld [vmem:[#allocation26_spill] sm:$0xff] }
 0x157   :  { %4441 = vtanh.f32 %v5518_v62 }
 0x158   :  { %4443 = vrcp.f32 %v574_v10  ;;  %v7458_v10 = vld [vmem:[#allocation27_spill] sm:$0xff] }
 0x162   :  { %v4440_v11 = vpop.eup %4439 }
 0x164   :  { %v4442_v12 = vpop.eup %4441 }
 0x165   :  { %v589_v7 = vmul.f32 %v4442_v12, %v4438_v63  ;;  %v4444_v0 = vpop.eup %4443  ;;  %v7459_v63 = vld [vmem:[#allocation28_spill] sm:$0xff]  ;;  %v7461_v12 = vld [vmem:[#allocation30_spill] sm:$0xff] }
 0x166   :  { %v588_v1 = vmul.f32 %v4444_v0, %v4440_v11  ;;  %v7460_v11 = vld [vmem:[#allocation29_spill] sm:$0xff]  ;;  %v7463_v0 = vld [vmem:[#allocation32_spill] sm:$0xff] }
 0x167   :  { %v592_v61 = vrot.slane %v589_v7, 7  ;;  %v7462_v7 = vld [vmem:[#allocation31_spill] sm:$0xff] }
 0x169   :  { %v594_v14 = vsel %vm593_vm1, %v592_v61, %v588_v1  ;;  %v7464_v1 = vld [vmem:[#allocation33_spill] sm:$0xff]  ;;  %v7465_v61 = vld [vmem:[#allocation34_spill] sm:$0xff] }
 0x16a   :  { %596 = vst [vmem:[#allocation2] sm:$0x3] %v594_v14  ;;  %662 = vmatmul.mubr.f32.vlgmr.msra.gmra.mxu0 %v594_v14  ;;  %733 = vmatmul.mubr.f32.vlgmr.msra.gmra.mxu1 %v594_v14  ;;  %v7466_v14 = vld [vmem:[#allocation35_spill] sm:$0xff] }
 0x16b   :  { %828 = vmatpush1.msra.mxu0 %v5208_v20  ;;  %899 = vmatpush1.msra.mxu1 %v5210_v21 }
 0x16c   :  { %829 = vmatprep.subr.mxu0 %v5214_v22  ;;  %900 = vmatprep.subr.mxu1 %v5216_v23 }
 0x16d   :  { %830 = vmatpush1.msra.mxu0 %v5220_v24  ;;  %901 = vmatpush1.msra.mxu1 %v5222_v25 }
 0x16e   :  { %831 = vmatprep.subr.mxu0 %v5226_v26  ;;  %902 = vmatprep.subr.mxu1 %v5228_v27 }
 0x16f   :  { %832 = vmatpush1.msra.mxu0 %v5232_v28  ;;  %903 = vmatpush1.msra.mxu1 %v5234_v29 }
 0x170   :  { %833 = vmatprep.subr.mxu0 %v5238_v30  ;;  %904 = vmatprep.subr.mxu1 %v5240_v31 }
 0x171   :  { %834 = vmatpush1.msra.mxu0 %v5244_v32  ;;  %905 = vmatpush1.msra.mxu1 %v5246_v33 }
 0x172   :  { %835 = vmatprep.subr.mxu0 %v5250_v34  ;;  %906 = vmatprep.subr.mxu1 %v5252_v35 }
 0x173   :  { %836 = vmatpush1.msra.mxu0 %v5256_v36  ;;  %907 = vmatpush1.msra.mxu1 %v5258_v37 }
 0x174   :  { %837 = vmatprep.subr.mxu0 %v5262_v38  ;;  %908 = vmatprep.subr.mxu1 %v5264_v39 }
 0x175   :  { %838 = vmatpush1.msra.mxu0 %v5268_v40  ;;  %909 = vmatpush1.msra.mxu1 %v5270_v41 }
 0x176   :  { %839 = vmatprep.subr.mxu0 %v5274_v42  ;;  %910 = vmatprep.subr.mxu1 %v5276_v43 }
 0x177   :  { %840 = vmatpush1.msra.mxu0 %v5280_v44  ;;  %911 = vmatpush1.msra.mxu1 %v5282_v45 }
 0x178   :  { %841 = vmatprep.subr.mxu0 %v5286_v46  ;;  %912 = vmatprep.subr.mxu1 %v5288_v47 }
 0x179   :  { %842 = vmatpush1.msra.mxu0 %v5292_v48  ;;  %913 = vmatpush1.msra.mxu1 %v5294_v49 }
 0x17a   :  { %843 = vmatprep.subr.mxu0 %v5298_v50  ;;  %914 = vmatprep.subr.mxu1 %v5300_v51 }
 0x17b   :  { %844 = vmatpush1.msra.mxu0 %v5304_v52  ;;  %915 = vmatpush1.msra.mxu1 %v5306_v53 }
 0x17c   :  { %845 = vmatprep.subr.mxu0 %v5310_v54  ;;  %916 = vmatprep.subr.mxu1 %v5312_v55 }
 0x17d   :  { %846 = vmatpush1.msra.mxu0 %v5316_v56  ;;  %917 = vmatpush1.msra.mxu1 %v5318_v57 }
 0x17e   :  { %847 = vmatprep.subr.mxu0 %v5322_v58  ;;  %918 = vmatprep.subr.mxu1 %v7450_v3 }
 0x17f   :  { %848 = vmatpush1.msra.mxu0 %v7451_v59  ;;  %919 = vmatpush1.msra.mxu1 %v7452_v8 }
 0x180   :  { %849 = vmatprep.subr.mxu0 %v7453_v6  ;;  %920 = vmatprep.subr.mxu1 %v7454_v4 }
 0x181   :  { %850 = vmatpush1.msra.mxu0 %v7455_v17  ;;  %921 = vmatpush1.msra.mxu1 %v7456_v9  ;;  %v7467_v9 = vld [vmem:[#allocation36_spill] sm:$0xff]  ;;  %v7476_v17 = vld [vmem:[#allocation43_spill] sm:$0xff] }
 0x182   :  { %851 = vmatprep.subr.mxu0 %v7457_v18  ;;  %922 = vmatprep.subr.mxu1 %v7458_v10  ;;  %v7468_v18 = vld [vmem:[#allocation37_spill] sm:$0xff]  ;;  %v7469_v10 = vld [vmem:[#allocation38_spill] sm:$0xff] }
 0x183   :  { %852 = vmatpush1.msra.mxu0 %v7459_v63  ;;  %923 = vmatpush1.msra.mxu1 %v7460_v11  ;;  %v7470_v63 = vld [vmem:[#allocation39_spill] sm:$0xff]  ;;  %v7471_v11 = vld [vmem:[#allocation40_spill] sm:$0xff] }
 0x184   :  { %853 = vmatprep.subr.mxu0 %v7461_v12  ;;  %924 = vmatprep.subr.mxu1 %v7462_v7  ;;  %v7472_v12 = vmov 0.0   ;;  %v7473_v7 = vld [vmem:[#allocation41_spill] sm:$0xff] }
 0x185   :  { %854 = vmatpush1.msra.mxu0 %v7463_v0  ;;  %925 = vmatpush1.msra.mxu1 %v7464_v1  ;;  %v7474_v1 = vld [vmem:[#allocation17_spill] sm:$0xff] }
 0x186   :  { %855 = vmatprep.subr.mxu0 %v7465_v61  ;;  %926 = vmatprep.subr.mxu1 %v7466_v14  ;;  %v7475_v61 = vld [vmem:[#allocation18_spill] sm:$0xff] }
 0x187   :  { %856 = vmatpush1.msra.mxu0 %v7467_v9  ;;  %927 = vmatpush1.msra.mxu1 %v7468_v18 }
 0x188   :  { %857 = vmatprep.subr.mxu0 %v7469_v10  ;;  %928 = vmatprep.subr.mxu1 %v7470_v63 }
 0x189   :  { %858 = vmatpush1.msra.mxu0 %v7471_v11  ;;  %891 = vmatprep.mubr.f32.mxu0 %v7472_v12 }
 0x18a   :  { %929 = vmatpush1.msra.mxu1 %v7473_v7  ;;  %962 = vmatprep.mubr.f32.mxu1 %v7472_v12  ;;  %v7477_v7 = vld [vmem:[#allocation45_spill] sm:$0xff] }
 0x18b   :  { %1062 = vmatprep.subr.mxu0 %v7474_v1  ;;  %1133 = vmatprep.subr.mxu1 %v7475_v61 }
 0x22a   :  { %v663_v14 = vpop.f32.mrf.mxu0  ;;  %v734_v0 = vpop.f32.mrf.mxu1 }
 0x22b   :  { %v743_v9 = vrot.slane %v663_v14, 7  ;;  %v759_v18 = vadd.f32 %v663_v14, %v5488_v5 }
 0x22c   :  { %v665_v10 = vpop.f32.mrf.mxu0  ;;  %v736_v1 = vpop.f32.mrf.mxu1 }
 0x22d   :  { %v755_v63 = vadd.f32 %v743_v9, %v7476_v17  ;;  %v4229_v4 = vmul.f32 -1.442695, %v759_v18  ;;  %v744_v11 = vrot.slane %v665_v10, 7  ;;  %v760_v6 = vadd.f32 %v665_v10, %v5495_v60 }
 0x22e   :  { %v746_v3 = vrot.slane %v736_v1, 7  ;;  %v762_v14 = vadd.f32 %v736_v1, %v5504_v13  ;;  %v761_v9 = vadd.f32 %v734_v0, %v5506_v2  ;;  %v745_v17 = vrot.slane %v734_v0, 7 }
 0x22f   :  { %v4228_v8 = vmul.f32 -1.442695, %v755_v63  ;;  %4445 = vpow2.f32 %v4229_v4  ;;  %v756_v12 = vadd.f32 %v744_v11, %v7477_v7  ;;  %v4231_v59 = vmul.f32 -1.442695, %v760_v6 }
 0x230   :  { %v758_v5 = vadd.f32 %v746_v3, %v5511_v15  ;;  %v4233_v18 = vmul.f32 -1.442695, %v762_v14 }
 0x231   :  { %4447 = vpow2.f32 %v4228_v8  ;;  %v4230_v61 = vmul.f32 -1.442695, %v756_v12 }
 0x232   :  { %4449 = vpow2.f32 %v4231_v59  ;;  %v4232_v10 = vmul.f32 -1.442695, %v758_v5  ;;  %v757_v59 = vadd.f32 %v745_v17, %v5508_v16  ;;  %v803_v17 = vrot.slane %v5516_v19, 7 }
 0x233   :  { %4451 = vpow2.f32 %v4230_v61 }
 0x234   :  { %4453 = vtanh.f32 %v761_v9 }
 0x235   :  { %4455 = vpow2.f32 %v4233_v18  ;;  %v804_v18 = vrot.slane %v5518_v62, 7 }
 0x236   :  { %4457 = vpow2.f32 %v4232_v10 }
 0x23c   :  { %v4446_v63 = vpop.eup %4445 }
 0x23d   :  { %v770_v4 = vadd.f32 1.0, %v4446_v63 }
 0x23e   :  { %v4448_v11 = vpop.eup %4447 }
 0x23f   :  { %v4450_v6 = vpop.eup %4449  ;;  %v769_v8 = vadd.f32 1.0, %v4448_v11  ;;  %4459 = vrcp.f32 %v770_v4 }
 0x240   :  { %v782_v12 = vadd.f32 1.0, %v4450_v6  ;;  %v4452_v1 = vpop.eup %4451 }
 0x241   :  { %4461 = vrcp.f32 %v769_v8  ;;  %v781_v3 = vadd.f32 1.0, %v4452_v1  ;;  %v4454_v0 = vpop.eup %4453 }
 0x242   :  { %4463 = vrcp.f32 %v782_v12  ;;  %v4456_v5 = vpop.eup %4455 }
 0x243   :  { %4465 = vtanh.f32 %v757_v59  ;;  %v4458_v61 = vpop.eup %4457  ;;  %v796_v11 = vadd.f32 1.0, %v4456_v5 }
 0x244   :  { %4467 = vrcp.f32 %v781_v3  ;;  %v795_v8 = vadd.f32 1.0, %v4458_v61 }
 0x245   :  { %4469 = vrcp.f32 %v796_v11 }
 0x24c   :  { %v4460_v14 = vpop.eup %4459 }
 0x24d   :  { %v810_v10 = vmul.f32 %v4460_v14, %v4454_v0 }
 0x24e   :  { %v4462_v9 = vpop.eup %4461 }
 0x24f   :  { %v4464_v63 = vpop.eup %4463 }
 0x250   :  { %v4466_v2 = vpop.eup %4465  ;;  %v808_v4 = vmul.f32 %v4464_v63, %v804_v18 }
 0x251   :  { %v4468_v6 = vpop.eup %4467  ;;  %v809_v1 = vmul.f32 %v4466_v2, %v4462_v9 }
 0x252   :  { %v807_v12 = vmul.f32 %v4468_v6, %v803_v17  ;;  %v5599_v59 = vadd.f32 %v810_v10, %v808_v4  ;;  %v4470_v62 = vpop.eup %4469 }
 0x254   :  { %v5601_v3 = vadd.f32 %v809_v1, %v807_v12  ;;  %4471 = vtanh.f32 %v5599_v59 }
 0x255   :  { %4473 = vrcp.f32 %v795_v8 }
 0x256   :  { %4475 = vtanh.f32 %v5601_v3 }
 0x261   :  { %v4472_v5 = vpop.eup %4471 }
 0x262   :  { %v4474_v16 = vpop.eup %4473  ;;  %v816_v19 = vmul.f32 %v4472_v5, %v4470_v62  ;;  %v7506_v5 = vld [vmem:[#allocation48_spill] sm:$0xff] }
 0x263   :  { %v4476_v0 = vpop.eup %4475 }
 0x264   :  { %v815_v14 = vmul.f32 %v4476_v0, %v4474_v16  ;;  %v819_v61 = vrot.slane %v816_v19, 7  ;;  %v7507_v0 = vld [vmem:[#allocation47_spill] sm:$0xff] }
 0x266   :  { %v821_v2 = vsel %vm820_vm2, %v819_v61, %v815_v14  ;;  %v824_v9 = vrot.slane %v815_v14, 1 }
 0x267   :  { %823 = vst [vmem:[#allocation2 + $0x1] sm:$0x6] %v821_v2 }
 0x268   :  { %v825_v18 = vsel %vm593_vm1, %v816_v19, %v824_v9 }
 0x269   :  { %892 = vmatmul.mubr.f32.vlgmr.msra.gmra.mxu0 %v825_v18  ;;  %963 = vmatmul.mubr.f32.vlgmr.msra.gmra.mxu1 %v825_v18 }
 0x26a   :  { %1063 = vmatpush1.msra.mxu0 %v5208_v20  ;;  %1134 = vmatpush1.msra.mxu1 %v5210_v21  ;;  %v7478_v20 = vld [vmem:[#allocation19_spill] sm:$0xff]  ;;  %v7479_v21 = vld [vmem:[#allocation20_spill] sm:$0xff] }
 0x26b   :  { %1064 = vmatprep.subr.mxu0 %v5214_v22  ;;  %1135 = vmatprep.subr.mxu1 %v5216_v23  ;;  %v7480_v22 = vld [vmem:[#allocation21_spill] sm:$0xff]  ;;  %v7481_v23 = vld [vmem:[#allocation22_spill] sm:$0xff] }
 0x26c   :  { %1065 = vmatpush1.msra.mxu0 %v5220_v24  ;;  %1136 = vmatpush1.msra.mxu1 %v5222_v25  ;;  %v7482_v24 = vld [vmem:[#allocation23_spill] sm:$0xff]  ;;  %v7483_v25 = vld [vmem:[#allocation24_spill] sm:$0xff] }
 0x26d   :  { %1066 = vmatprep.subr.mxu0 %v5226_v26  ;;  %1137 = vmatprep.subr.mxu1 %v5228_v27  ;;  %v7484_v26 = vld [vmem:[#allocation25_spill] sm:$0xff]  ;;  %v7485_v27 = vld [vmem:[#allocation26_spill] sm:$0xff] }
 0x26e   :  { %1067 = vmatpush1.msra.mxu0 %v5232_v28  ;;  %1138 = vmatpush1.msra.mxu1 %v5234_v29  ;;  %v7486_v28 = vld [vmem:[#allocation27_spill] sm:$0xff]  ;;  %v7487_v29 = vld [vmem:[#allocation28_spill] sm:$0xff] }
 0x26f   :  { %1068 = vmatprep.subr.mxu0 %v5238_v30  ;;  %1139 = vmatprep.subr.mxu1 %v5240_v31  ;;  %v7488_v30 = vld [vmem:[#allocation29_spill] sm:$0xff]  ;;  %v7489_v31 = vld [vmem:[#allocation30_spill] sm:$0xff] }
 0x270   :  { %1069 = vmatpush1.msra.mxu0 %v5244_v32  ;;  %1140 = vmatpush1.msra.mxu1 %v5246_v33  ;;  %v7490_v32 = vld [vmem:[#allocation31_spill] sm:$0xff]  ;;  %v7491_v33 = vld [vmem:[#allocation32_spill] sm:$0xff] }
 0x271   :  { %1070 = vmatprep.subr.mxu0 %v5250_v34  ;;  %1141 = vmatprep.subr.mxu1 %v5252_v35  ;;  %v7492_v34 = vld [vmem:[#allocation33_spill] sm:$0xff]  ;;  %v7493_v35 = vld [vmem:[#allocation34_spill] sm:$0xff] }
 0x272   :  { %1071 = vmatpush1.msra.mxu0 %v5256_v36  ;;  %1142 = vmatpush1.msra.mxu1 %v5258_v37  ;;  %v7494_v36 = vld [vmem:[#allocation35_spill] sm:$0xff]  ;;  %v7495_v37 = vld [vmem:[#allocation36_spill] sm:$0xff] }
 0x273   :  { %1072 = vmatprep.subr.mxu0 %v5262_v38  ;;  %1143 = vmatprep.subr.mxu1 %v5264_v39  ;;  %v7496_v38 = vld [vmem:[#allocation37_spill] sm:$0xff]  ;;  %v7497_v39 = vld [vmem:[#allocation38_spill] sm:$0xff] }
 0x274   :  { %1073 = vmatpush1.msra.mxu0 %v5268_v40  ;;  %1144 = vmatpush1.msra.mxu1 %v5270_v41  ;;  %v7498_v40 = vld [vmem:[#allocation39_spill] sm:$0xff]  ;;  %v7499_v41 = vld [vmem:[#allocation40_spill] sm:$0xff] }
 0x275   :  { %1074 = vmatprep.subr.mxu0 %v5274_v42  ;;  %1145 = vmatprep.subr.mxu1 %v5276_v43  ;;  %v7500_v42 = vmov 0.0   ;;  %v7501_v43 = vld [vmem:[#allocation41_spill] sm:$0xff] }
 0x276   :  { %1075 = vmatpush1.msra.mxu0 %v5280_v44  ;;  %1146 = vmatpush1.msra.mxu1 %v5282_v45  ;;  %v5670_v44 = vld [vmem:[#allocation6 + $0x1e8] sm:$0xff]  ;;  %v5673_v45 = vld [vmem:[#allocation6 + $0x1f8] sm:$0xff] }
 0x277   :  { %1076 = vmatprep.subr.mxu0 %v5286_v46  ;;  %1147 = vmatprep.subr.mxu1 %v5288_v47  ;;  %7502 = vst [vmem:[#allocation17_spill] sm:$0xff] %v5670_v44  ;;  %7503 = vst [vmem:[#allocation18_spill] sm:$0xff] %v5673_v45 }
 0x278   :  { %1077 = vmatpush1.msra.mxu0 %v5292_v48  ;;  %1148 = vmatpush1.msra.mxu1 %v5294_v49 }
 0x279   :  { %1078 = vmatprep.subr.mxu0 %v5298_v50  ;;  %1149 = vmatprep.subr.mxu1 %v5300_v51  ;;  %v7504_v50 = vld [vmem:[#allocation43_spill] sm:$0xff] }
 0x27a   :  { %1079 = vmatpush1.msra.mxu0 %v5304_v52  ;;  %1150 = vmatpush1.msra.mxu1 %v5306_v53  ;;  %v7505_v52 = vld [vmem:[#allocation44_spill] sm:$0xff] }
 0x27b   :  { %1080 = vmatprep.subr.mxu0 %v5310_v54  ;;  %1151 = vmatprep.subr.mxu1 %v5312_v55 }
 0x27c   :  { %1081 = vmatpush1.msra.mxu0 %v5316_v56  ;;  %1152 = vmatpush1.msra.mxu1 %v5318_v57 }
 0x27d   :  { %1082 = vmatprep.subr.mxu0 %v5322_v58  ;;  %1153 = vmatprep.subr.mxu1 %v7478_v20 }
 0x27e   :  { %1083 = vmatpush1.msra.mxu0 %v7479_v21  ;;  %1154 = vmatpush1.msra.mxu1 %v7480_v22 }
 0x27f   :  { %1084 = vmatprep.subr.mxu0 %v7481_v23  ;;  %1155 = vmatprep.subr.mxu1 %v7482_v24 }
 0x280   :  { %1085 = vmatpush1.msra.mxu0 %v7483_v25  ;;  %1156 = vmatpush1.msra.mxu1 %v7484_v26 }
 0x281   :  { %1086 = vmatprep.subr.mxu0 %v7485_v27  ;;  %1157 = vmatprep.subr.mxu1 %v7486_v28 }
 0x282   :  { %1087 = vmatpush1.msra.mxu0 %v7487_v29  ;;  %1158 = vmatpush1.msra.mxu1 %v7488_v30 }
 0x283   :  { %1088 = vmatprep.subr.mxu0 %v7489_v31  ;;  %1159 = vmatprep.subr.mxu1 %v7490_v32  ;;  %v1037_v32 = vrot.slane %v5601_v3, 7 }
 0x284   :  { %1089 = vmatpush1.msra.mxu0 %v7491_v33  ;;  %1160 = vmatpush1.msra.mxu1 %v7492_v34 }
 0x285   :  { %1090 = vmatprep.subr.mxu0 %v7493_v35  ;;  %1161 = vmatprep.subr.mxu1 %v7494_v36  ;;  %v1038_v35 = vrot.slane %v5599_v59, 7 }
 0x286   :  { %1091 = vmatpush1.msra.mxu0 %v7495_v37  ;;  %1162 = vmatpush1.msra.mxu1 %v7496_v38 }
 0x287   :  { %1092 = vmatprep.subr.mxu0 %v7497_v39  ;;  %1163 = vmatprep.subr.mxu1 %v7498_v40 }
 0x288   :  { %1093 = vmatpush1.msra.mxu0 %v7499_v41  ;;  %1126 = vmatprep.mubr.f32.mxu0 %v7500_v42 }
 0x289   :  { %1164 = vmatpush1.msra.mxu1 %v7501_v43  ;;  %1197 = vmatprep.mubr.f32.mxu1 %v7500_v42 }
 0x28a   :  { %1297 = vmatprep.subr.mxu0 %v5670_v44  ;;  %1368 = vmatprep.subr.mxu1 %v5673_v45 }
 0x329   :  { %v893_v46 = vpop.f32.mrf.mxu0  ;;  %v964_v54 = vpop.f32.mrf.mxu1 }
 0x32a   :  { %v973_v47 = vrot.slane %v893_v46, 6  ;;  %v977_v48 = vrot.slane %v893_v46, 7  ;;  %v975_v8 = vrot.slane %v964_v54, 6  ;;  %v979_v1 = vrot.slane %v964_v54, 7 }
 0x32b   :  { %v895_v49 = vpop.f32.mrf.mxu0  ;;  %v966_v11 = vpop.f32.mrf.mxu1 }
 0x32c   :  { %v989_v51 = vadd.f32 %v973_v47, %v7504_v50  ;;  %v993_v53 = vadd.f32 %v977_v48, %v7505_v52  ;;  %v974_v55 = vrot.slane %v895_v49, 6  ;;  %v978_v56 = vrot.slane %v895_v49, 7 }
 0x32d   :  { %v976_v4 = vrot.slane %v966_v11, 6  ;;  %v980_v6 = vrot.slane %v966_v11, 7  ;;  %v991_v19 = vadd.f32 %v975_v8, %v7506_v5  ;;  %v995_v14 = vadd.f32 %v979_v1, %v7507_v0  ;;  %v5702_v11 = vld [vmem:[#allocation6 + $0x1d8] sm:$0xff]  ;;  %v5717_v8 = vld [vmem:[#allocation6 + $0x1a0] sm:$0xff]  ;;  %v5720_v1 = vld [vmem:[#allocation6 + $0x1b0] sm:$0xff] }
 0x32e   :  { %v4234_v57 = vmul.f32 -1.442695, %v989_v51  ;;  %v4235_v58 = vmul.f32 -1.442695, %v993_v53  ;;  %v990_v16 = vadd.f32 %v974_v55, %v7477_v7  ;;  %v994_v63 = vadd.f32 %v978_v56, %v5495_v60 }
 0x32f   :  { %v992_v12 = vadd.f32 %v976_v4, %v5511_v15  ;;  %v996_v62 = vadd.f32 %v980_v6, %v5504_v13  ;;  %v5711_v4 = vld [vmem:[#allocation6 + $0x1a8] sm:$0xff]  ;;  %v5714_v6 = vld [vmem:[#allocation6 + $0x1b8] sm:$0xff] }
 0x330   :  { %4477 = vpow2.f32 %v4234_v57  ;;  %v4236_v17 = vmul.f32 -1.442695, %v990_v16  ;;  %v4237_v10 = vmul.f32 -1.442695, %v994_v63  ;;  %v5696_v16 = vld [vmem:[#allocation6 + $0x1f0] sm:$0xff]  ;;  %v5699_v63 = vld [vmem:[#allocation6 + $0x1c8] sm:$0xff] }
 0x331   :  { %4479 = vpow2.f32 %v4235_v58  ;;  %v4238_v61 = vmul.f32 -1.442695, %v992_v12  ;;  %v4239_v2 = vmul.f32 -1.442695, %v996_v62  ;;  %v5693_v58 = vld [vmem:[#allocation6 + $0x1e0] sm:$0xff]  ;;  %v5723_v12 = vld [vmem:[#allocation6 + $0x188] sm:$0xff] }
 0x332   :  { %4481 = vpow2.f32 %v4236_v17  ;;  %v5705_v17 = vld [vmem:[#allocation6 + $0x1c0] sm:$0xff]  ;;  %v5726_v62 = vld [vmem:[#allocation6 + $0x198] sm:$0xff] }
 0x333   :  { %4483 = vpow2.f32 %v4237_v10  ;;  %v5708_v10 = vld [vmem:[#allocation6 + $0x1d0] sm:$0xff] }
 0x334   :  { %4485 = vtanh.f32 %v991_v19  ;;  %v5729_v19 = vld [vmem:[#allocation6 + $0x180] sm:$0xff] }
 0x335   :  { %4487 = vtanh.f32 %v995_v14  ;;  %v5732_v14 = vld [vmem:[#allocation6 + $0x190] sm:$0xff] }
 0x336   :  { %4489 = vpow2.f32 %v4238_v61  ;;  %v5735_v61 = vld [vmem:[#allocation6 + $0x168] sm:$0xff] }
 0x337   :  { %4491 = vpow2.f32 %v4239_v2  ;;  %v5738_v2 = vld [vmem:[#allocation6 + $0x178] sm:$0xff] }
 0x33d   :  { %v4478_v9 = vpop.eup %4477 }
 0x33e   :  { %v4480_v18 = vpop.eup %4479  ;;  %v1003_v20 = vadd.f32 1.0, %v4478_v9  ;;  %v5741_v9 = vld [vmem:[#allocation6 + $0x160] sm:$0xff] }
 0x33f   :  { %v1004_v21 = vadd.f32 1.0, %v4480_v18  ;;  %v4482_v22 = vpop.eup %4481  ;;  %v5744_v18 = vld [vmem:[#allocation6 + $0x170] sm:$0xff] }
 0x340   :  { %v4484_v23 = vpop.eup %4483  ;;  %4493 = vrcp.f32 %v1003_v20  ;;  %v1015_v24 = vadd.f32 1.0, %v4482_v22  ;;  %v5747_v20 = vld [vmem:[#allocation6 + $0x148] sm:$0xff]  ;;  %v5753_v22 = vld [vmem:[#allocation6 + $0x140] sm:$0xff] }
 0x341   :  { %4495 = vrcp.f32 %v1004_v21  ;;  %v1016_v25 = vadd.f32 1.0, %v4484_v23  ;;  %v4486_v26 = vpop.eup %4485  ;;  %v5750_v21 = vld [vmem:[#allocation6 + $0x158] sm:$0xff]  ;;  %v5756_v23 = vld [vmem:[#allocation6 + $0x150] sm:$0xff] }
 0x342   :  { %4497 = vrcp.f32 %v1015_v24  ;;  %v4488_v27 = vpop.eup %4487  ;;  %v5759_v24 = vld [vmem:[#allocation6 + $0x128] sm:$0xff] }
 0x343   :  { %4499 = vrcp.f32 %v1016_v25  ;;  %v4490_v28 = vpop.eup %4489  ;;  %v5762_v25 = vld [vmem:[#allocation6 + $0x138] sm:$0xff] }
 0x344   :  { %v4492_v29 = vpop.eup %4491  ;;  %v1029_v33 = vadd.f32 1.0, %v4490_v28  ;;  %v5771_v28 = vld [vmem:[#allocation6 + $0x108] sm:$0xff] }
 0x345   :  { %v1030_v36 = vadd.f32 1.0, %v4492_v29  ;;  %v5774_v29 = vld [vmem:[#allocation6 + $0x118] sm:$0xff] }
 0x346   :  { %4501 = vrcp.f32 %v1029_v33  ;;  %v5786_v33 = vld [vmem:[#allocation6 + $0xf8] sm:$0xff] }
 0x347   :  { %4503 = vrcp.f32 %v1030_v36  ;;  %v5795_v36 = vld [vmem:[#allocation6 + $0xc8] sm:$0xff] }
 0x34d   :  { %v4494_v30 = vpop.eup %4493 }
 0x34e   :  { %v4496_v31 = vpop.eup %4495  ;;  %v1043_v38 = vmul.f32 %v4494_v30, %v4486_v26  ;;  %v5765_v26 = vld [vmem:[#allocation6 + $0x120] sm:$0xff] }
 0x34f   :  { %v4498_v34 = vpop.eup %4497  ;;  %v1044_v40 = vmul.f32 %v4496_v31, %v4488_v27  ;;  %v5768_v27 = vld [vmem:[#allocation6 + $0x130] sm:$0xff]  ;;  %v5777_v30 = vld [vmem:[#allocation6 + $0x100] sm:$0xff] }
 0x350   :  { %v4500_v37 = vpop.eup %4499  ;;  %v1041_v39 = vmul.f32 %v4498_v34, %v1037_v32  ;;  %v5780_v31 = vld [vmem:[#allocation6 + $0x110] sm:$0xff]  ;;  %v5783_v32 = vld [vmem:[#allocation6 + $0xe8] sm:$0xff]  ;;  %v5789_v34 = vld [vmem:[#allocation6 + $0xe0] sm:$0xff] }
 0x351   :  { %v1042_v41 = vmul.f32 %v4500_v37, %v1038_v35  ;;  %v5792_v35 = vld [vmem:[#allocation6 + $0xf0] sm:$0xff]  ;;  %v5798_v37 = vld [vmem:[#allocation6 + $0xd8] sm:$0xff] }
 0x352   :  { %v5686_v43 = vadd.f32 %v1043_v38, %v1041_v39  ;;  %v5801_v38 = vld [vmem:[#allocation6 + $0xc0] sm:$0xff]  ;;  %v5804_v39 = vld [vmem:[#allocation6 + $0xd0] sm:$0xff] }
 0x353   :  { %v5688_v46 = vadd.f32 %v1044_v40, %v1042_v41  ;;  %v4502_v3 = vpop.eup %4501  ;;  %v5807_v40 = vld [vmem:[#allocation6 + $0xa8] sm:$0xff]  ;;  %v5810_v41 = vld [vmem:[#allocation6 + $0xb8] sm:$0xff] }
 0x354   :  { %4505 = vtanh.f32 %v5686_v43  ;;  %v4504_v47 = vpop.eup %4503  ;;  %7508 = vst [vmem:[#allocation19_spill] sm:$0xff] %v5807_v40  ;;  %7509 = vst [vmem:[#allocation20_spill] sm:$0xff] %v5810_v41 }
 0x355   :  { %4507 = vtanh.f32 %v5688_v46 }
 0x361   :  { %v4506_v48 = vpop.eup %4505 }
 0x362   :  { %v4508_v59 = vpop.eup %4507  ;;  %v1049_v49 = vmul.f32 %v4506_v48, %v4502_v3  ;;  %v5813_v3 = vld [vmem:[#allocation6 + $0xa0] sm:$0xff]  ;;  %v5819_v48 = vld [vmem:[#allocation6 + $0x88] sm:$0xff] }
 0x363   :  { %v1050_v51 = vmul.f32 %v4508_v59, %v4504_v47  ;;  %7510 = vst [vmem:[#allocation21_spill] sm:$0xff] %v5813_v3  ;;  %v5816_v47 = vld [vmem:[#allocation6 + $0xb0] sm:$0xff]  ;;  %7512 = vst [vmem:[#allocation23_spill] sm:$0xff] %v5819_v48  ;;  %v5822_v59 = vld [vmem:[#allocation6 + $0x98] sm:$0xff] }
 0x364   :  { %v1058_v53 = vrot.slane %v1049_v49, 2  ;;  %7511 = vst [vmem:[#allocation22_spill] sm:$0xff] %v5816_v47  ;;  %7513 = vst [vmem:[#allocation24_spill] sm:$0xff] %v5822_v59 }
 0x365   :  { %v1053_v54 = vrot.slane %v1050_v51, 7  ;;  %v1059_v55 = vrot.slane %v1050_v51, 1  ;;  %v5828_v51 = vld [vmem:[#allocation6 + $0x90] sm:$0xff] }
 0x366   :  { %7515 = vst [vmem:[#allocation26_spill] sm:$0xff] %v5828_v51 }
 0x367   :  { %v1055_v56 = vsel %vm1054_vm3, %v1053_v54, %v1049_v49  ;;  %v1060_v57 = vsel %vm593_vm1, %v1059_v55, %v1058_v53  ;;  %v5825_v49 = vld [vmem:[#allocation6 + $0x80] sm:$0xff]  ;;  %v5831_v53 = vld [vmem:[#allocation6 + $0x68] sm:$0xff]  ;;  %v5834_v54 = vld [vmem:[#allocation6 + $0x78] sm:$0xff] }
 0x368   :  { %1057 = vst [vmem:[#allocation2 + $0x2] sm:$0xc] %v1055_v56  ;;  %1127 = vmatmul.mubr.f32.vlgmr.msra.gmra.mxu0 %v1060_v57  ;;  %1198 = vmatmul.mubr.f32.vlgmr.msra.gmra.mxu1 %v1060_v57  ;;  %7514 = vst [vmem:[#allocation25_spill] sm:$0xff] %v5825_v49  ;;  %v5837_v55 = vld [vmem:[#allocation6 + $0x60] sm:$0xff]  ;;  %v5840_v56 = vld [vmem:[#allocation6 + $0x70] sm:$0xff] }
 0x369   :  { %1298 = vmatpush1.msra.mxu0 %v5693_v58  ;;  %1369 = vmatpush1.msra.mxu1 %v5696_v16  ;;  %7516 = vst [vmem:[#allocation27_spill] sm:$0xff] %v5831_v53  ;;  %7517 = vst [vmem:[#allocation28_spill] sm:$0xff] %v5834_v54  ;;  %v5843_v57 = vld [vmem:[#allocation6 + $0x48] sm:$0xff] }
 0x36a   :  { %1299 = vmatprep.subr.mxu0 %v5699_v63  ;;  %1370 = vmatprep.subr.mxu1 %v5702_v11  ;;  %7518 = vst [vmem:[#allocation29_spill] sm:$0xff] %v5837_v55  ;;  %7519 = vst [vmem:[#allocation30_spill] sm:$0xff] %v5840_v56 }
 0x36b   :  { %1300 = vmatpush1.msra.mxu0 %v5705_v17  ;;  %1371 = vmatpush1.msra.mxu1 %v5708_v10  ;;  %7520 = vst [vmem:[#allocation31_spill] sm:$0xff] %v5843_v57 }
 0x36c   :  { %1301 = vmatprep.subr.mxu0 %v5711_v4  ;;  %1372 = vmatprep.subr.mxu1 %v5714_v6 }
 0x36d   :  { %1302 = vmatpush1.msra.mxu0 %v5717_v8  ;;  %1373 = vmatpush1.msra.mxu1 %v5720_v1 }
 0x36e   :  { %1303 = vmatprep.subr.mxu0 %v5723_v12  ;;  %1374 = vmatprep.subr.mxu1 %v5726_v62 }
 0x36f   :  { %1304 = vmatpush1.msra.mxu0 %v5729_v19  ;;  %1375 = vmatpush1.msra.mxu1 %v5732_v14 }
 0x370   :  { %1305 = vmatprep.subr.mxu0 %v5735_v61  ;;  %1376 = vmatprep.subr.mxu1 %v5738_v2 }
 0x371   :  { %1306 = vmatpush1.msra.mxu0 %v5741_v9  ;;  %1377 = vmatpush1.msra.mxu1 %v5744_v18 }
 0x372   :  { %1307 = vmatprep.subr.mxu0 %v5747_v20  ;;  %1378 = vmatprep.subr.mxu1 %v5750_v21 }
 0x373   :  { %1308 = vmatpush1.msra.mxu0 %v5753_v22  ;;  %1379 = vmatpush1.msra.mxu1 %v5756_v23 }
 0x374   :  { %1309 = vmatprep.subr.mxu0 %v5759_v24  ;;  %1380 = vmatprep.subr.mxu1 %v5762_v25 }
 0x375   :  { %1310 = vmatpush1.msra.mxu0 %v5765_v26  ;;  %1381 = vmatpush1.msra.mxu1 %v5768_v27 }
 0x376   :  { %1311 = vmatprep.subr.mxu0 %v5771_v28  ;;  %1382 = vmatprep.subr.mxu1 %v5774_v29 }
 0x377   :  { %1312 = vmatpush1.msra.mxu0 %v5777_v30  ;;  %1383 = vmatpush1.msra.mxu1 %v5780_v31 }
 0x378   :  { %1313 = vmatprep.subr.mxu0 %v5783_v32  ;;  %1384 = vmatprep.subr.mxu1 %v5786_v33 }
 0x379   :  { %1314 = vmatpush1.msra.mxu0 %v5789_v34  ;;  %1385 = vmatpush1.msra.mxu1 %v5792_v35 }
 0x37a   :  { %1315 = vmatprep.subr.mxu0 %v5795_v36  ;;  %1386 = vmatprep.subr.mxu1 %v5798_v37 }
 0x37b   :  { %1316 = vmatpush1.msra.mxu0 %v5801_v38  ;;  %1387 = vmatpush1.msra.mxu1 %v5804_v39 }
 0x37c   :  { %1317 = vmatprep.subr.mxu0 %v5807_v40  ;;  %1388 = vmatprep.subr.mxu1 %v5810_v41 }
 0x37d   :  { %1318 = vmatpush1.msra.mxu0 %v5813_v3  ;;  %1389 = vmatpush1.msra.mxu1 %v5816_v47 }
 0x37e   :  { %1319 = vmatprep.subr.mxu0 %v5819_v48  ;;  %1390 = vmatprep.subr.mxu1 %v5822_v59 }
 0x37f   :  { %1320 = vmatpush1.msra.mxu0 %v5825_v49  ;;  %1391 = vmatpush1.msra.mxu1 %v5828_v51  ;;  %v5846_v51 = vld [vmem:[#allocation6 + $0x58] sm:$0xff] }
 0x380   :  { %1321 = vmatprep.subr.mxu0 %v5831_v53  ;;  %1392 = vmatprep.subr.mxu1 %v5834_v54  ;;  %7521 = vst [vmem:[#allocation32_spill] sm:$0xff] %v5846_v51  ;;  %v5849_v53 = vld [vmem:[#allocation6 + $0x40] sm:$0xff]  ;;  %v5852_v54 = vld [vmem:[#allocation6 + $0x50] sm:$0xff] }
 0x381   :  { %1322 = vmatpush1.msra.mxu0 %v5837_v55  ;;  %1393 = vmatpush1.msra.mxu1 %v5840_v56  ;;  %7522 = vst [vmem:[#allocation33_spill] sm:$0xff] %v5849_v53  ;;  %7523 = vst [vmem:[#allocation34_spill] sm:$0xff] %v5852_v54  ;;  %v5855_v55 = vld [vmem:[#allocation6 + $0x28] sm:$0xff]  ;;  %v5858_v56 = vld [vmem:[#allocation6 + $0x38] sm:$0xff] }
 0x382   :  { %1323 = vmatprep.subr.mxu0 %v5843_v57  ;;  %1394 = vmatprep.subr.mxu1 %v5846_v51  ;;  %7524 = vst [vmem:[#allocation35_spill] sm:$0xff] %v5855_v55  ;;  %7525 = vst [vmem:[#allocation36_spill] sm:$0xff] %v5858_v56  ;;  %v5861_v57 = vld [vmem:[#allocation6 + $0x20] sm:$0xff]  ;;  %v5864_v51 = vld [vmem:[#allocation6 + $0x30] sm:$0xff] }
 0x383   :  { %1324 = vmatpush1.msra.mxu0 %v5849_v53  ;;  %1395 = vmatpush1.msra.mxu1 %v5852_v54  ;;  %7526 = vst [vmem:[#allocation37_spill] sm:$0xff] %v5861_v57  ;;  %7527 = vst [vmem:[#allocation38_spill] sm:$0xff] %v5864_v51  ;;  %v5867_v53 = vld [vmem:[#allocation6 + $0x8] sm:$0xff]  ;;  %v5870_v54 = vld [vmem:[#allocation6 + $0x18] sm:$0xff] }
 0x384   :  { %1325 = vmatprep.subr.mxu0 %v5855_v55  ;;  %1396 = vmatprep.subr.mxu1 %v5858_v56  ;;  %7528 = vst [vmem:[#allocation39_spill] sm:$0xff] %v5867_v53  ;;  %7529 = vst [vmem:[#allocation40_spill] sm:$0xff] %v5870_v54  ;;  %v5873_v55 = vld [vmem:[#allocation6] sm:$0xff]  ;;  %v5877_v56 = vld [vmem:[#allocation6 + $0x10] sm:$0xff] }
 0x385   :  { %1326 = vmatpush1.msra.mxu0 %v5861_v57  ;;  %1397 = vmatpush1.msra.mxu1 %v5864_v51  ;;  %7530 = vst [vmem:[#allocation41_spill] sm:$0xff] %v5873_v55  ;;  %7531 = vst [vmem:[#allocation49_spill] sm:$0xff] %v5877_v56 }
 0x386   :  { %1327 = vmatprep.subr.mxu0 %v5867_v53  ;;  %1398 = vmatprep.subr.mxu1 %v5870_v54 }
 0x387   :  { %1328 = vmatpush1.msra.mxu0 %v5873_v55  ;;  %1361 = vmatprep.mubr.f32.mxu0 %v7500_v42 }
 0x388   :  { %1399 = vmatpush1.msra.mxu1 %v5877_v56  ;;  %1432 = vmatprep.mubr.f32.mxu1 %v7500_v42 }
 0x389   :  { %1532 = vmatprep.subr.mxu0 %v5670_v44  ;;  %1603 = vmatprep.subr.mxu1 %v5673_v45 }
 0x428   :  { %v1128_v53 = vpop.f32.mrf.mxu0  ;;  %v1199_v59 = vpop.f32.mrf.mxu1 }
 0x429   :  { %v1208_v51 = vrot.slane %v1128_v53, 5  ;;  %v1212_v57 = vrot.slane %v1128_v53, 6 }
 0x42a   :  { %v1130_v54 = vpop.f32.mrf.mxu0  ;;  %v1201_v44 = vpop.f32.mrf.mxu1 }
 0x42b   :  { %v1224_v49 = vadd.f32 %v1208_v51, %v7504_v50  ;;  %v1228_v55 = vadd.f32 %v1212_v57, %v7505_v52  ;;  %v1209_v48 = vrot.slane %v1130_v54, 5  ;;  %v1213_v47 = vrot.slane %v1130_v54, 6 }
 0x42c   :  { %v1211_v53 = vrot.slane %v1201_v44, 5  ;;  %v1215_v51 = vrot.slane %v1201_v44, 6  ;;  %v1210_v50 = vrot.slane %v1199_v59, 5  ;;  %v1214_v57 = vrot.slane %v1199_v59, 6 }
 0x42d   :  { %v4240_v3 = vmul.f32 -1.442695, %v1224_v49  ;;  %v4241_v41 = vmul.f32 -1.442695, %v1228_v55  ;;  %v1225_v56 = vadd.f32 %v1209_v48, %v7477_v7  ;;  %v1229_v42 = vadd.f32 %v1213_v47, %v5495_v60 }
 0x42e   :  { %v1227_v52 = vadd.f32 %v1211_v53, %v5511_v15  ;;  %v1231_v49 = vadd.f32 %v1215_v51, %v5504_v13  ;;  %v1226_v54 = vadd.f32 %v1210_v50, %v7506_v5  ;;  %v1230_v48 = vadd.f32 %v1214_v57, %v7507_v0 }
 0x42f   :  { %4509 = vpow2.f32 %v4240_v3  ;;  %v4242_v45 = vmul.f32 -1.442695, %v1225_v56  ;;  %v4243_v40 = vmul.f32 -1.442695, %v1229_v42 }
 0x430   :  { %4511 = vpow2.f32 %v4241_v41  ;;  %v4244_v47 = vmul.f32 -1.442695, %v1227_v52  ;;  %v4245_v3 = vmul.f32 -1.442695, %v1231_v49 }
 0x431   :  { %4513 = vpow2.f32 %v4242_v45 }
 0x432   :  { %4515 = vpow2.f32 %v4243_v40 }
 0x433   :  { %4517 = vtanh.f32 %v1226_v54  ;;  %v1272_v54 = vrot.slane %v5686_v43, 7 }
 0x434   :  { %4519 = vtanh.f32 %v1230_v48 }
 0x435   :  { %4521 = vpow2.f32 %v4244_v47  ;;  %v1273_v47 = vrot.slane %v5688_v46, 7 }
 0x436   :  { %4523 = vpow2.f32 %v4245_v3 }
 0x43c   :  { %v4510_v55 = vpop.eup %4509 }
 0x43d   :  { %v4512_v41 = vpop.eup %4511  ;;  %v1238_v42 = vadd.f32 1.0, %v4510_v55 }
 0x43e   :  { %v1239_v45 = vadd.f32 1.0, %v4512_v41  ;;  %v4514_v44 = vpop.eup %4513 }
 0x43f   :  { %v4516_v40 = vpop.eup %4515  ;;  %4525 = vrcp.f32 %v1238_v42  ;;  %v1250_v59 = vadd.f32 1.0, %v4514_v44 }
 0x440   :  { %4527 = vrcp.f32 %v1239_v45  ;;  %v1251_v56 = vadd.f32 1.0, %v4516_v40  ;;  %v4518_v50 = vpop.eup %4517 }
 0x441   :  { %4529 = vrcp.f32 %v1250_v59  ;;  %v4520_v53 = vpop.eup %4519 }
 0x442   :  { %4531 = vrcp.f32 %v1251_v56  ;;  %v4522_v52 = vpop.eup %4521 }
 0x443   :  { %v4524_v51 = vpop.eup %4523  ;;  %v1264_v48 = vadd.f32 1.0, %v4522_v52 }
 0x444   :  { %v1265_v3 = vadd.f32 1.0, %v4524_v51 }
 0x445   :  { %4533 = vrcp.f32 %v1264_v48  ;;  %v7534_v48 = vld [vmem:[#allocation21_spill] sm:$0xff] }
 0x446   :  { %4535 = vrcp.f32 %v1265_v3  ;;  %v7537_v3 = vld [vmem:[#allocation24_spill] sm:$0xff] }
 0x44c   :  { %v4526_v57 = vpop.eup %4525 }
 0x44d   :  { %v4528_v49 = vpop.eup %4527  ;;  %v1278_v42 = vmul.f32 %v4526_v57, %v4518_v50 }
 0x44e   :  { %v4530_v55 = vpop.eup %4529  ;;  %v1279_v45 = vmul.f32 %v4528_v49, %v4520_v53 }
 0x44f   :  { %v4532_v41 = vpop.eup %4531  ;;  %v1276_v44 = vmul.f32 %v4530_v55, %v1272_v54  ;;  %v7535_v55 = vld [vmem:[#allocation22_spill] sm:$0xff] }
 0x450   :  { %v1277_v40 = vmul.f32 %v4532_v41, %v1273_v47  ;;  %v7536_v47 = vld [vmem:[#allocation23_spill] sm:$0xff]  ;;  %v7538_v41 = vld [vmem:[#allocation25_spill] sm:$0xff] }
 0x451   :  { %v5893_v59 = vadd.f32 %v1278_v42, %v1276_v44  ;;  %v7539_v42 = vld [vmem:[#allocation26_spill] sm:$0xff]  ;;  %v7540_v44 = vld [vmem:[#allocation27_spill] sm:$0xff] }
 0x452   :  { %v5895_v56 = vadd.f32 %v1279_v45, %v1277_v40  ;;  %v4534_v43 = vpop.eup %4533  ;;  %v7541_v45 = vld [vmem:[#allocation28_spill] sm:$0xff]  ;;  %v7542_v40 = vld [vmem:[#allocation29_spill] sm:$0xff] }
 0x453   :  { %4537 = vtanh.f32 %v5893_v59  ;;  %v4536_v52 = vpop.eup %4535 }
 0x454   :  { %4539 = vtanh.f32 %v5895_v56 }
 0x460   :  { %v4538_v0 = vpop.eup %4537 }
 0x461   :  { %v4540_v46 = vpop.eup %4539  ;;  %v1284_v51 = vmul.f32 %v4538_v0, %v4534_v43  ;;  %v7533_v0 = vld [vmem:[#allocation20_spill] sm:$0xff]  ;;  %v7543_v43 = vld [vmem:[#allocation30_spill] sm:$0xff] }
 0x462   :  { %v1285_v5 = vmul.f32 %v4540_v46, %v4536_v52  ;;  %v7544_v52 = vld [vmem:[#allocation31_spill] sm:$0xff]  ;;  %v7545_v46 = vld [vmem:[#allocation32_spill] sm:$0xff] }
 0x463   :  { %v1293_v50 = vrot.slane %v1284_v51, 3 }
 0x464   :  { %v1288_v53 = vrot.slane %v1285_v5, 7  ;;  %v1294_v57 = vrot.slane %v1285_v5, 2  ;;  %v7532_v5 = vld [vmem:[#allocation19_spill] sm:$0xff] }
 0x466   :  { %v1290_v49 = vsel %vm1289_vm4, %v1288_v53, %v1284_v51  ;;  %v1295_v54 = vsel %vm593_vm1, %v1294_v57, %v1293_v50  ;;  %v7546_v51 = vld [vmem:[#allocation33_spill] sm:$0xff]  ;;  %v7547_v50 = vld [vmem:[#allocation34_spill] sm:$0xff]  ;;  %v7548_v53 = vld [vmem:[#allocation35_spill] sm:$0xff] }
 0x467   :  { %1292 = vst [vmem:[#allocation2 + $0x3] sm:$0x18] %v1290_v49  ;;  %1362 = vmatmul.mubr.f32.vlgmr.msra.gmra.mxu0 %v1295_v54  ;;  %1433 = vmatmul.mubr.f32.vlgmr.msra.gmra.mxu1 %v1295_v54  ;;  %v7549_v57 = vld [vmem:[#allocation36_spill] sm:$0xff]  ;;  %v7550_v49 = vld [vmem:[#allocation37_spill] sm:$0xff]  ;;  %v7551_v54 = vld [vmem:[#allocation38_spill] sm:$0xff] }
 0x468   :  { %1533 = vmatpush1.msra.mxu0 %v5693_v58  ;;  %1604 = vmatpush1.msra.mxu1 %v5696_v16 }
 0x469   :  { %1534 = vmatprep.subr.mxu0 %v5699_v63  ;;  %1605 = vmatprep.subr.mxu1 %v5702_v11 }
 0x46a   :  { %1535 = vmatpush1.msra.mxu0 %v5705_v17  ;;  %1606 = vmatpush1.msra.mxu1 %v5708_v10 }
 0x46b   :  { %1536 = vmatprep.subr.mxu0 %v5711_v4  ;;  %1607 = vmatprep.subr.mxu1 %v5714_v6 }
 0x46c   :  { %1537 = vmatpush1.msra.mxu0 %v5717_v8  ;;  %1608 = vmatpush1.msra.mxu1 %v5720_v1 }
 0x46d   :  { %1538 = vmatprep.subr.mxu0 %v5723_v12  ;;  %1609 = vmatprep.subr.mxu1 %v5726_v62 }
 0x46e   :  { %1539 = vmatpush1.msra.mxu0 %v5729_v19  ;;  %1610 = vmatpush1.msra.mxu1 %v5732_v14 }
 0x46f   :  { %1540 = vmatprep.subr.mxu0 %v5735_v61  ;;  %1611 = vmatprep.subr.mxu1 %v5738_v2 }
 0x470   :  { %1541 = vmatpush1.msra.mxu0 %v5741_v9  ;;  %1612 = vmatpush1.msra.mxu1 %v5744_v18 }
 0x471   :  { %1542 = vmatprep.subr.mxu0 %v5747_v20  ;;  %1613 = vmatprep.subr.mxu1 %v5750_v21 }
 0x472   :  { %1543 = vmatpush1.msra.mxu0 %v5753_v22  ;;  %1614 = vmatpush1.msra.mxu1 %v5756_v23 }
 0x473   :  { %1544 = vmatprep.subr.mxu0 %v5759_v24  ;;  %1615 = vmatprep.subr.mxu1 %v5762_v25 }
 0x474   :  { %1545 = vmatpush1.msra.mxu0 %v5765_v26  ;;  %1616 = vmatpush1.msra.mxu1 %v5768_v27 }
 0x475   :  { %1546 = vmatprep.subr.mxu0 %v5771_v28  ;;  %1617 = vmatprep.subr.mxu1 %v5774_v29 }
 0x476   :  { %1547 = vmatpush1.msra.mxu0 %v5777_v30  ;;  %1618 = vmatpush1.msra.mxu1 %v5780_v31 }
 0x477   :  { %1548 = vmatprep.subr.mxu0 %v5783_v32  ;;  %1619 = vmatprep.subr.mxu1 %v5786_v33 }
 0x478   :  { %1549 = vmatpush1.msra.mxu0 %v5789_v34  ;;  %1620 = vmatpush1.msra.mxu1 %v5792_v35 }
 0x479   :  { %1550 = vmatprep.subr.mxu0 %v5795_v36  ;;  %1621 = vmatprep.subr.mxu1 %v5798_v37 }
 0x47a   :  { %1551 = vmatpush1.msra.mxu0 %v5801_v38  ;;  %1622 = vmatpush1.msra.mxu1 %v5804_v39 }
 0x47b   :  { %1552 = vmatprep.subr.mxu0 %v7532_v5  ;;  %1623 = vmatprep.subr.mxu1 %v7533_v0 }
 0x47c   :  { %1553 = vmatpush1.msra.mxu0 %v7534_v48  ;;  %1624 = vmatpush1.msra.mxu1 %v7535_v55 }
 0x47d   :  { %1554 = vmatprep.subr.mxu0 %v7536_v47  ;;  %1625 = vmatprep.subr.mxu1 %v7537_v3 }
 0x47e   :  { %1555 = vmatpush1.msra.mxu0 %v7538_v41  ;;  %1626 = vmatpush1.msra.mxu1 %v7539_v42  ;;  %v7560_v42 = vld [vmem:[#allocation44_spill] sm:$0xff] }
 0x47f   :  { %1556 = vmatprep.subr.mxu0 %v7540_v44  ;;  %1627 = vmatprep.subr.mxu1 %v7541_v45  ;;  %v7552_v45 = vld [vmem:[#allocation39_spill] sm:$0xff] }
 0x480   :  { %1557 = vmatpush1.msra.mxu0 %v7542_v40  ;;  %1628 = vmatpush1.msra.mxu1 %v7543_v43  ;;  %v7553_v40 = vld [vmem:[#allocation40_spill] sm:$0xff]  ;;  %v7554_v43 = vld [vmem:[#allocation41_spill] sm:$0xff]  ;;  %v7559_v44 = vld [vmem:[#allocation43_spill] sm:$0xff] }
 0x481   :  { %1558 = vmatprep.subr.mxu0 %v7544_v52  ;;  %1629 = vmatprep.subr.mxu1 %v7545_v46  ;;  %v7555_v52 = vmov 0.0   ;;  %v7556_v46 = vld [vmem:[#allocation49_spill] sm:$0xff] }
 0x482   :  { %1559 = vmatpush1.msra.mxu0 %v7546_v51  ;;  %1630 = vmatpush1.msra.mxu1 %v7547_v50  ;;  %v7557_v50 = vld [vmem:[#allocation17_spill] sm:$0xff] }
 0x483   :  { %1560 = vmatprep.subr.mxu0 %v7548_v53  ;;  %1631 = vmatprep.subr.mxu1 %v7549_v57  ;;  %v7558_v53 = vld [vmem:[#allocation18_spill] sm:$0xff] }
 0x484   :  { %1561 = vmatpush1.msra.mxu0 %v7550_v49  ;;  %1632 = vmatpush1.msra.mxu1 %v7551_v54 }
 0x485   :  { %1562 = vmatprep.subr.mxu0 %v7552_v45  ;;  %1633 = vmatprep.subr.mxu1 %v7553_v40 }
 0x486   :  { %1563 = vmatpush1.msra.mxu0 %v7554_v43  ;;  %1596 = vmatprep.mubr.f32.mxu0 %v7555_v52 }
 0x487   :  { %1634 = vmatpush1.msra.mxu1 %v7556_v46  ;;  %1667 = vmatprep.mubr.f32.mxu1 %v7555_v52 }
 0x488   :  { %1767 = vmatprep.subr.mxu0 %v7557_v50  ;;  %1838 = vmatprep.subr.mxu1 %v7558_v53 }
 0x527   :  { %v1363_v57 = vpop.f32.mrf.mxu0  ;;  %v1434_v41 = vpop.f32.mrf.mxu1 }
 0x528   :  { %v1443_v49 = vrot.slane %v1363_v57, 4  ;;  %v1447_v51 = vrot.slane %v1363_v57, 5 }
 0x529   :  { %v1365_v54 = vpop.f32.mrf.mxu0  ;;  %v1436_v50 = vpop.f32.mrf.mxu1 }
 0x52a   :  { %v1459_v45 = vadd.f32 %v1443_v49, %v7559_v44  ;;  %v1463_v40 = vadd.f32 %v1447_v51, %v7560_v42  ;;  %v1444_v43 = vrot.slane %v1365_v54, 4  ;;  %v1448_v3 = vrot.slane %v1365_v54, 5 }
 0x52b   :  { %v1446_v57 = vrot.slane %v1436_v50, 4  ;;  %v1450_v49 = vrot.slane %v1436_v50, 5  ;;  %v1445_v44 = vrot.slane %v1434_v41, 4  ;;  %v1449_v51 = vrot.slane %v1434_v41, 5 }
 0x52c   :  { %v4246_v47 = vmul.f32 -1.442695, %v1459_v45  ;;  %v4247_v55 = vmul.f32 -1.442695, %v1463_v40  ;;  %v1460_v46 = vadd.f32 %v1444_v43, %v7477_v7  ;;  %v1464_v52 = vadd.f32 %v1448_v3, %v5495_v60  ;;  %v7561_v40 = vld [vmem:[#allocation48_spill] sm:$0xff]  ;;  %v7562_v43 = vld [vmem:[#allocation47_spill] sm:$0xff] }
 0x52d   :  { %v1462_v42 = vadd.f32 %v1446_v57, %v5511_v15  ;;  %v1466_v45 = vadd.f32 %v1450_v49, %v5504_v13  ;;  %v1461_v54 = vadd.f32 %v1445_v44, %v7561_v40  ;;  %v1465_v7 = vadd.f32 %v1449_v51, %v7562_v43 }
 0x52e   :  { %4541 = vpow2.f32 %v4246_v47  ;;  %v4248_v53 = vmul.f32 -1.442695, %v1460_v46  ;;  %v4249_v48 = vmul.f32 -1.442695, %v1464_v52 }
 0x52f   :  { %4543 = vpow2.f32 %v4247_v55  ;;  %v4250_v3 = vmul.f32 -1.442695, %v1462_v42  ;;  %v4251_v47 = vmul.f32 -1.442695, %v1466_v45 }
 0x530   :  { %4545 = vpow2.f32 %v4248_v53 }
 0x531   :  { %4547 = vpow2.f32 %v4249_v48 }
 0x532   :  { %4549 = vtanh.f32 %v1461_v54 }
 0x533   :  { %4551 = vtanh.f32 %v1465_v7 }
 0x534   :  { %4553 = vpow2.f32 %v4250_v3  ;;  %v1508_v3 = vrot.slane %v5895_v56, 7 }
 0x535   :  { %4555 = vpow2.f32 %v4251_v47 }
 0x53b   :  { %v4542_v60 = vpop.eup %4541 }
 0x53c   :  { %v4544_v55 = vpop.eup %4543  ;;  %v1473_v52 = vadd.f32 1.0, %v4542_v60  ;;  %v1507_v60 = vrot.slane %v5893_v59, 7 }
 0x53d   :  { %v1474_v46 = vadd.f32 1.0, %v4544_v55  ;;  %v4546_v48 = vpop.eup %4545 }
 0x53e   :  { %v4548_v41 = vpop.eup %4547  ;;  %4557 = vrcp.f32 %v1473_v52  ;;  %v1485_v50 = vadd.f32 1.0, %v4546_v48 }
 0x53f   :  { %4559 = vrcp.f32 %v1474_v46  ;;  %v1486_v53 = vadd.f32 1.0, %v4548_v41  ;;  %v4550_v44 = vpop.eup %4549 }
 0x540   :  { %4561 = vrcp.f32 %v1485_v50  ;;  %v4552_v57 = vpop.eup %4551 }
 0x541   :  { %4563 = vrcp.f32 %v1486_v53  ;;  %v4554_v42 = vpop.eup %4553 }
 0x542   :  { %v4556_v49 = vpop.eup %4555  ;;  %v1499_v7 = vadd.f32 1.0, %v4554_v42 }
 0x543   :  { %v1500_v47 = vadd.f32 1.0, %v4556_v49 }
 0x544   :  { %4565 = vrcp.f32 %v1499_v7  ;;  %v7565_v7 = vld [vmem:[#allocation23_spill] sm:$0xff] }
 0x545   :  { %4567 = vrcp.f32 %v1500_v47  ;;  %v7568_v47 = vld [vmem:[#allocation26_spill] sm:$0xff] }
 0x54b   :  { %v4558_v51 = vpop.eup %4557 }
 0x54c   :  { %v4560_v45 = vpop.eup %4559  ;;  %v1513_v52 = vmul.f32 %v4558_v51, %v4550_v44 }
 0x54d   :  { %v4562_v54 = vpop.eup %4561  ;;  %v1514_v46 = vmul.f32 %v4560_v45, %v4552_v57 }
 0x54e   :  { %v4564_v55 = vpop.eup %4563  ;;  %v1511_v48 = vmul.f32 %v4562_v54, %v1507_v60  ;;  %v7566_v54 = vld [vmem:[#allocation24_spill] sm:$0xff] }
 0x54f   :  { %v1512_v41 = vmul.f32 %v4564_v55, %v1508_v3  ;;  %v7567_v3 = vld [vmem:[#allocation25_spill] sm:$0xff]  ;;  %v7569_v55 = vld [vmem:[#allocation27_spill] sm:$0xff] }
 0x550   :  { %v5976_v50 = vadd.f32 %v1513_v52, %v1511_v48  ;;  %v7570_v52 = vld [vmem:[#allocation28_spill] sm:$0xff]  ;;  %v7571_v48 = vld [vmem:[#allocation29_spill] sm:$0xff] }
 0x551   :  { %v5978_v53 = vadd.f32 %v1514_v46, %v1512_v41  ;;  %v4566_v59 = vpop.eup %4565  ;;  %v7572_v46 = vld [vmem:[#allocation30_spill] sm:$0xff]  ;;  %v7573_v41 = vld [vmem:[#allocation31_spill] sm:$0xff] }
 0x552   :  { %4569 = vtanh.f32 %v5976_v50  ;;  %v4568_v42 = vpop.eup %4567 }
 0x553   :  { %4571 = vtanh.f32 %v5978_v53 }
 0x55f   :  { %v4570_v43 = vpop.eup %4569 }
 0x560   :  { %v4572_v56 = vpop.eup %4571  ;;  %v1519_v49 = vmul.f32 %v4570_v43, %v4566_v59  ;;  %v7564_v43 = vld [vmem:[#allocation22_spill] sm:$0xff]  ;;  %v7574_v59 = vld [vmem:[#allocation32_spill] sm:$0xff] }
 0x561   :  { %v1520_v40 = vmul.f32 %v4572_v56, %v4568_v42  ;;  %v7575_v42 = vld [vmem:[#allocation33_spill] sm:$0xff]  ;;  %v7576_v56 = vld [vmem:[#allocation34_spill] sm:$0xff] }
 0x562   :  { %v1528_v44 = vrot.slane %v1519_v49, 4 }
 0x563   :  { %v1523_v57 = vrot.slane %v1520_v40, 7  ;;  %v1529_v51 = vrot.slane %v1520_v40, 3  ;;  %v7563_v40 = vld [vmem:[#allocation21_spill] sm:$0xff] }
 0x565   :  { %v1525_v45 = vsel %vm1524_vm5, %v1523_v57, %v1519_v49  ;;  %v1530_v60 = vsel %vm593_vm1, %v1529_v51, %v1528_v44  ;;  %v7577_v49 = vld [vmem:[#allocation35_spill] sm:$0xff]  ;;  %v7578_v44 = vld [vmem:[#allocation36_spill] sm:$0xff]  ;;  %v7579_v57 = vld [vmem:[#allocation37_spill] sm:$0xff] }
 0x566   :  { %1527 = vst [vmem:[#allocation2 + $0x4] sm:$0x30] %v1525_v45  ;;  %1597 = vmatmul.mubr.f32.vlgmr.msra.gmra.mxu0 %v1530_v60  ;;  %1668 = vmatmul.mubr.f32.vlgmr.msra.gmra.mxu1 %v1530_v60  ;;  %v7580_v51 = vld [vmem:[#allocation38_spill] sm:$0xff]  ;;  %v7581_v45 = vld [vmem:[#allocation39_spill] sm:$0xff]  ;;  %v7582_v60 = vld [vmem:[#allocation40_spill] sm:$0xff] }
 0x567   :  { %1768 = vmatpush1.msra.mxu0 %v5693_v58  ;;  %1839 = vmatpush1.msra.mxu1 %v5696_v16 }
 0x568   :  { %1769 = vmatprep.subr.mxu0 %v5699_v63  ;;  %1840 = vmatprep.subr.mxu1 %v5702_v11 }
 0x569   :  { %1770 = vmatpush1.msra.mxu0 %v5705_v17  ;;  %1841 = vmatpush1.msra.mxu1 %v5708_v10 }
 0x56a   :  { %1771 = vmatprep.subr.mxu0 %v5711_v4  ;;  %1842 = vmatprep.subr.mxu1 %v5714_v6 }
 0x56b   :  { %1772 = vmatpush1.msra.mxu0 %v5717_v8  ;;  %1843 = vmatpush1.msra.mxu1 %v5720_v1 }
 0x56c   :  { %1773 = vmatprep.subr.mxu0 %v5723_v12  ;;  %1844 = vmatprep.subr.mxu1 %v5726_v62 }
 0x56d   :  { %1774 = vmatpush1.msra.mxu0 %v5729_v19  ;;  %1845 = vmatpush1.msra.mxu1 %v5732_v14 }
 0x56e   :  { %1775 = vmatprep.subr.mxu0 %v5735_v61  ;;  %1846 = vmatprep.subr.mxu1 %v5738_v2 }
 0x56f   :  { %1776 = vmatpush1.msra.mxu0 %v5741_v9  ;;  %1847 = vmatpush1.msra.mxu1 %v5744_v18 }
 0x570   :  { %1777 = vmatprep.subr.mxu0 %v5747_v20  ;;  %1848 = vmatprep.subr.mxu1 %v5750_v21 }
 0x571   :  { %1778 = vmatpush1.msra.mxu0 %v5753_v22  ;;  %1849 = vmatpush1.msra.mxu1 %v5756_v23 }
 0x572   :  { %1779 = vmatprep.subr.mxu0 %v5759_v24  ;;  %1850 = vmatprep.subr.mxu1 %v5762_v25 }
 0x573   :  { %1780 = vmatpush1.msra.mxu0 %v5765_v26  ;;  %1851 = vmatpush1.msra.mxu1 %v5768_v27 }
 0x574   :  { %1781 = vmatprep.subr.mxu0 %v5771_v28  ;;  %1852 = vmatprep.subr.mxu1 %v5774_v29 }
 0x575   :  { %1782 = vmatpush1.msra.mxu0 %v5777_v30  ;;  %1853 = vmatpush1.msra.mxu1 %v5780_v31 }
 0x576   :  { %1783 = vmatprep.subr.mxu0 %v5783_v32  ;;  %1854 = vmatprep.subr.mxu1 %v5786_v33 }
 0x577   :  { %1784 = vmatpush1.msra.mxu0 %v5789_v34  ;;  %1855 = vmatpush1.msra.mxu1 %v5792_v35 }
 0x578   :  { %1785 = vmatprep.subr.mxu0 %v5795_v36  ;;  %1856 = vmatprep.subr.mxu1 %v5798_v37 }
 0x579   :  { %1786 = vmatpush1.msra.mxu0 %v5801_v38  ;;  %1857 = vmatpush1.msra.mxu1 %v5804_v39 }
 0x57a   :  { %1787 = vmatprep.subr.mxu0 %v7532_v5  ;;  %1858 = vmatprep.subr.mxu1 %v7533_v0 }
 0x57b   :  { %1788 = vmatpush1.msra.mxu0 %v7563_v40  ;;  %1859 = vmatpush1.msra.mxu1 %v7564_v43 }
 0x57c   :  { %1789 = vmatprep.subr.mxu0 %v7565_v7  ;;  %1860 = vmatprep.subr.mxu1 %v7566_v54 }
 0x57d   :  { %1790 = vmatpush1.msra.mxu0 %v7567_v3  ;;  %1861 = vmatpush1.msra.mxu1 %v7568_v47 }
 0x57e   :  { %1791 = vmatprep.subr.mxu0 %v7569_v55  ;;  %1862 = vmatprep.subr.mxu1 %v7570_v52  ;;  %v7589_v52 = vld [vmem:[#allocation44_spill] sm:$0xff] }
 0x57f   :  { %1792 = vmatpush1.msra.mxu0 %v7571_v48  ;;  %1863 = vmatpush1.msra.mxu1 %v7572_v46  ;;  %v7583_v46 = vld [vmem:[#allocation41_spill] sm:$0xff]  ;;  %v7588_v48 = vld [vmem:[#allocation43_spill] sm:$0xff] }
 0x580   :  { %1793 = vmatprep.subr.mxu0 %v7573_v41  ;;  %1864 = vmatprep.subr.mxu1 %v7574_v59  ;;  %v7584_v41 = vmov 0.0   ;;  %v7585_v59 = vld [vmem:[#allocation49_spill] sm:$0xff] }
 0x581   :  { %1794 = vmatpush1.msra.mxu0 %v7575_v42  ;;  %1865 = vmatpush1.msra.mxu1 %v7576_v56  ;;  %v7586_v56 = vld [vmem:[#allocation17_spill] sm:$0xff] }
 0x582   :  { %1795 = vmatprep.subr.mxu0 %v7577_v49  ;;  %1866 = vmatprep.subr.mxu1 %v7578_v44  ;;  %v7587_v49 = vld [vmem:[#allocation18_spill] sm:$0xff] }
 0x583   :  { %1796 = vmatpush1.msra.mxu0 %v7579_v57  ;;  %1867 = vmatpush1.msra.mxu1 %v7580_v51 }
 0x584   :  { %1797 = vmatprep.subr.mxu0 %v7581_v45  ;;  %1868 = vmatprep.subr.mxu1 %v7582_v60 }
 0x585   :  { %1798 = vmatpush1.msra.mxu0 %v7583_v46  ;;  %1831 = vmatprep.mubr.f32.mxu0 %v7584_v41 }
 0x586   :  { %1869 = vmatpush1.msra.mxu1 %v7585_v59  ;;  %1902 = vmatprep.mubr.f32.mxu1 %v7584_v41  ;;  %v7590_v59 = vld [vmem:[#allocation45_spill] sm:$0xff]  ;;  %v7591_v41 = vld [vmem:[#allocation46_spill] sm:$0xff] }
 0x587   :  { %2002 = vmatprep.subr.mxu0 %v7586_v56  ;;  %2073 = vmatprep.subr.mxu1 %v7587_v49 }
 0x626   :  { %v1598_v44 = vpop.f32.mrf.mxu0  ;;  %v1669_v55 = vpop.f32.mrf.mxu1 }
 0x627   :  { %v1678_v57 = vrot.slane %v1598_v44, 3  ;;  %v1682_v42 = vrot.slane %v1598_v44, 4 }
 0x628   :  { %v1600_v51 = vpop.f32.mrf.mxu0  ;;  %v1671_v56 = vpop.f32.mrf.mxu1 }
 0x629   :  { %v1694_v45 = vadd.f32 %v1678_v57, %v7588_v48  ;;  %v1698_v60 = vadd.f32 %v1682_v42, %v7589_v52  ;;  %v1679_v46 = vrot.slane %v1600_v51, 3  ;;  %v1683_v47 = vrot.slane %v1600_v51, 4 }
 0x62a   :  { %v1681_v44 = vrot.slane %v1671_v56, 3  ;;  %v1685_v57 = vrot.slane %v1671_v56, 4  ;;  %v1680_v48 = vrot.slane %v1669_v55, 3  ;;  %v1684_v42 = vrot.slane %v1669_v55, 4 }
 0x62b   :  { %v4252_v3 = vmul.f32 -1.442695, %v1694_v45  ;;  %v4253_v54 = vmul.f32 -1.442695, %v1698_v60  ;;  %v1695_v7 = vadd.f32 %v1679_v46, %v7590_v59  ;;  %v1699_v43 = vadd.f32 %v1683_v47, %v7591_v41  ;;  %v7592_v45 = vld [vmem:[#allocation48_spill] sm:$0xff]  ;;  %v7593_v46 = vld [vmem:[#allocation47_spill] sm:$0xff] }
 0x62c   :  { %v1697_v52 = vadd.f32 %v1681_v44, %v5511_v15  ;;  %v1701_v51 = vadd.f32 %v1685_v57, %v5504_v13  ;;  %v1696_v60 = vadd.f32 %v1680_v48, %v7592_v45  ;;  %v1700_v59 = vadd.f32 %v1684_v42, %v7593_v46 }
 0x62d   :  { %4573 = vpow2.f32 %v4252_v3  ;;  %v4254_v49 = vmul.f32 -1.442695, %v1695_v7  ;;  %v4255_v40 = vmul.f32 -1.442695, %v1699_v43 }
 0x62e   :  { %4575 = vpow2.f32 %v4253_v54  ;;  %v4256_v47 = vmul.f32 -1.442695, %v1697_v52  ;;  %v4257_v3 = vmul.f32 -1.442695, %v1701_v51 }
 0x62f   :  { %4577 = vpow2.f32 %v4254_v49 }
 0x630   :  { %4579 = vpow2.f32 %v4255_v40 }
 0x631   :  { %4581 = vtanh.f32 %v1696_v60 }
 0x632   :  { %4583 = vtanh.f32 %v1700_v59 }
 0x633   :  { %4585 = vpow2.f32 %v4256_v47  ;;  %v1743_v47 = vrot.slane %v5978_v53, 7 }
 0x634   :  { %4587 = vpow2.f32 %v4257_v3 }
 0x63a   :  { %v4574_v41 = vpop.eup %4573 }
 0x63b   :  { %v4576_v7 = vpop.eup %4575  ;;  %v1708_v43 = vadd.f32 1.0, %v4574_v41  ;;  %v1742_v41 = vrot.slane %v5976_v50, 7 }
 0x63c   :  { %v1709_v54 = vadd.f32 1.0, %v4576_v7  ;;  %v4578_v40 = vpop.eup %4577 }
 0x63d   :  { %v4580_v55 = vpop.eup %4579  ;;  %4589 = vrcp.f32 %v1708_v43  ;;  %v1720_v56 = vadd.f32 1.0, %v4578_v40 }
 0x63e   :  { %4591 = vrcp.f32 %v1709_v54  ;;  %v1721_v49 = vadd.f32 1.0, %v4580_v55  ;;  %v4582_v48 = vpop.eup %4581 }
 0x63f   :  { %4593 = vrcp.f32 %v1720_v56  ;;  %v4584_v44 = vpop.eup %4583 }
 0x640   :  { %4595 = vrcp.f32 %v1721_v49  ;;  %v4586_v52 = vpop.eup %4585 }
 0x641   :  { %v4588_v57 = vpop.eup %4587  ;;  %v1734_v59 = vadd.f32 1.0, %v4586_v52 }
 0x642   :  { %v1735_v3 = vadd.f32 1.0, %v4588_v57 }
 0x643   :  { %4597 = vrcp.f32 %v1734_v59 }
 0x644   :  { %4599 = vrcp.f32 %v1735_v3 }
 0x64a   :  { %v4590_v42 = vpop.eup %4589 }
 0x64b   :  { %v4592_v51 = vpop.eup %4591  ;;  %v1748_v43 = vmul.f32 %v4590_v42, %v4582_v48 }
 0x64c   :  { %v4594_v60 = vpop.eup %4593  ;;  %v1749_v54 = vmul.f32 %v4592_v51, %v4584_v44 }
 0x64d   :  { %v4596_v7 = vpop.eup %4595  ;;  %v1746_v40 = vmul.f32 %v4594_v60, %v1742_v41 }
 0x64e   :  { %v1747_v55 = vmul.f32 %v4596_v7, %v1743_v47 }
 0x64f   :  { %v6059_v56 = vadd.f32 %v1748_v43, %v1746_v40 }
 0x650   :  { %v6061_v49 = vadd.f32 %v1749_v54, %v1747_v55  ;;  %v4598_v50 = vpop.eup %4597 }
 0x651   :  { %4601 = vtanh.f32 %v6059_v56  ;;  %v4600_v52 = vpop.eup %4599 }
 0x652   :  { %4603 = vtanh.f32 %v6061_v49 }
 0x65e   :  { %v4602_v46 = vpop.eup %4601 }
 0x65f   :  { %v4604_v53 = vpop.eup %4603  ;;  %v1754_v57 = vmul.f32 %v4602_v46, %v4598_v50  ;;  %v7621_v50 = vld [vmem:[#allocation48_spill] sm:$0xff] }
 0x660   :  { %v1755_v45 = vmul.f32 %v4604_v53, %v4600_v52  ;;  %v7622_v53 = vld [vmem:[#allocation47_spill] sm:$0xff] }
 0x661   :  { %v1763_v48 = vrot.slane %v1754_v57, 5 }
 0x662   :  { %v1758_v44 = vrot.slane %v1755_v45, 7  ;;  %v1764_v42 = vrot.slane %v1755_v45, 4  ;;  %v7620_v45 = vld [vmem:[#allocation46_spill] sm:$0xff] }
 0x664   :  { %v1760_v51 = vsel %vm1759_vm6, %v1758_v44, %v1754_v57  ;;  %v1765_v41 = vsel %vm593_vm1, %v1764_v42, %v1763_v48 }
 0x665   :  { %1762 = vst [vmem:[#allocation2 + $0x5] sm:$0x60] %v1760_v51  ;;  %1832 = vmatmul.mubr.f32.vlgmr.msra.gmra.mxu0 %v1765_v41  ;;  %1903 = vmatmul.mubr.f32.vlgmr.msra.gmra.mxu1 %v1765_v41 }
 0x666   :  { %2003 = vmatpush1.msra.mxu0 %v5693_v58  ;;  %2074 = vmatpush1.msra.mxu1 %v5696_v16  ;;  %v7594_v58 = vld [vmem:[#allocation21_spill] sm:$0xff]  ;;  %v7595_v16 = vld [vmem:[#allocation22_spill] sm:$0xff] }
 0x667   :  { %2004 = vmatprep.subr.mxu0 %v5699_v63  ;;  %2075 = vmatprep.subr.mxu1 %v5702_v11  ;;  %v7596_v63 = vld [vmem:[#allocation23_spill] sm:$0xff]  ;;  %v7597_v11 = vld [vmem:[#allocation24_spill] sm:$0xff] }
 0x668   :  { %2005 = vmatpush1.msra.mxu0 %v5705_v17  ;;  %2076 = vmatpush1.msra.mxu1 %v5708_v10  ;;  %v7598_v17 = vld [vmem:[#allocation25_spill] sm:$0xff]  ;;  %v7599_v10 = vld [vmem:[#allocation26_spill] sm:$0xff] }
 0x669   :  { %2006 = vmatprep.subr.mxu0 %v5711_v4  ;;  %2077 = vmatprep.subr.mxu1 %v5714_v6  ;;  %v7600_v4 = vld [vmem:[#allocation27_spill] sm:$0xff]  ;;  %v7601_v6 = vld [vmem:[#allocation28_spill] sm:$0xff] }
 0x66a   :  { %2007 = vmatpush1.msra.mxu0 %v5717_v8  ;;  %2078 = vmatpush1.msra.mxu1 %v5720_v1  ;;  %v7602_v8 = vld [vmem:[#allocation29_spill] sm:$0xff]  ;;  %v7603_v1 = vld [vmem:[#allocation30_spill] sm:$0xff] }
 0x66b   :  { %2008 = vmatprep.subr.mxu0 %v5723_v12  ;;  %2079 = vmatprep.subr.mxu1 %v5726_v62  ;;  %v7604_v12 = vld [vmem:[#allocation31_spill] sm:$0xff]  ;;  %v7605_v62 = vld [vmem:[#allocation32_spill] sm:$0xff] }
 0x66c   :  { %2009 = vmatpush1.msra.mxu0 %v5729_v19  ;;  %2080 = vmatpush1.msra.mxu1 %v5732_v14  ;;  %v7606_v19 = vld [vmem:[#allocation33_spill] sm:$0xff]  ;;  %v7607_v14 = vld [vmem:[#allocation34_spill] sm:$0xff] }
 0x66d   :  { %2010 = vmatprep.subr.mxu0 %v5735_v61  ;;  %2081 = vmatprep.subr.mxu1 %v5738_v2  ;;  %v7608_v61 = vld [vmem:[#allocation35_spill] sm:$0xff]  ;;  %v7609_v2 = vld [vmem:[#allocation36_spill] sm:$0xff] }
 0x66e   :  { %2011 = vmatpush1.msra.mxu0 %v5741_v9  ;;  %2082 = vmatpush1.msra.mxu1 %v5744_v18  ;;  %v7610_v9 = vld [vmem:[#allocation37_spill] sm:$0xff]  ;;  %v7611_v18 = vld [vmem:[#allocation38_spill] sm:$0xff] }
 0x66f   :  { %2012 = vmatprep.subr.mxu0 %v5747_v20  ;;  %2083 = vmatprep.subr.mxu1 %v5750_v21  ;;  %v7612_v20 = vld [vmem:[#allocation39_spill] sm:$0xff]  ;;  %v7613_v21 = vld [vmem:[#allocation40_spill] sm:$0xff] }
 0x670   :  { %2013 = vmatpush1.msra.mxu0 %v5753_v22  ;;  %2084 = vmatpush1.msra.mxu1 %v5756_v23  ;;  %v7614_v22 = vld [vmem:[#allocation41_spill] sm:$0xff] }
 0x671   :  { %2014 = vmatprep.subr.mxu0 %v5759_v24  ;;  %2085 = vmatprep.subr.mxu1 %v5762_v25  ;;  %v7615_v23 = vld [vmem:[#allocation49_spill] sm:$0xff]  ;;  %v7616_v24 = vmov 0.0  }
 0x672   :  { %2015 = vmatpush1.msra.mxu0 %v5765_v26  ;;  %2086 = vmatpush1.msra.mxu1 %v5768_v27  ;;  %v2294_v25 = vld [vmem:[#allocation8 + $0x1e8] sm:$0xff]  ;;  %v2296_v26 = vld [vmem:[#allocation8 + $0x1f8] sm:$0xff] }
 0x673   :  { %2016 = vmatprep.subr.mxu0 %v5771_v28  ;;  %2087 = vmatprep.subr.mxu1 %v5774_v29 }
 0x674   :  { %2017 = vmatpush1.msra.mxu0 %v5777_v30  ;;  %2088 = vmatpush1.msra.mxu1 %v5780_v31  ;;  %v7617_v31 = vld [vmem:[#allocation43_spill] sm:$0xff] }
 0x675   :  { %2018 = vmatprep.subr.mxu0 %v5783_v32  ;;  %2089 = vmatprep.subr.mxu1 %v5786_v33  ;;  %v7618_v33 = vld [vmem:[#allocation44_spill] sm:$0xff] }
 0x676   :  { %2019 = vmatpush1.msra.mxu0 %v5789_v34  ;;  %2090 = vmatpush1.msra.mxu1 %v5792_v35 }
 0x677   :  { %2020 = vmatprep.subr.mxu0 %v5795_v36  ;;  %2091 = vmatprep.subr.mxu1 %v5798_v37 }
 0x678   :  { %2021 = vmatpush1.msra.mxu0 %v5801_v38  ;;  %2092 = vmatpush1.msra.mxu1 %v5804_v39 }
 0x679   :  { %2022 = vmatprep.subr.mxu0 %v7532_v5  ;;  %2093 = vmatprep.subr.mxu1 %v7533_v0  ;;  %v7619_v5 = vld [vmem:[#allocation45_spill] sm:$0xff] }
 0x67a   :  { %2023 = vmatpush1.msra.mxu0 %v7594_v58  ;;  %2094 = vmatpush1.msra.mxu1 %v7595_v16 }
 0x67b   :  { %2024 = vmatprep.subr.mxu0 %v7596_v63  ;;  %2095 = vmatprep.subr.mxu1 %v7597_v11 }
 0x67c   :  { %2025 = vmatpush1.msra.mxu0 %v7598_v17  ;;  %2096 = vmatpush1.msra.mxu1 %v7599_v10 }
 0x67d   :  { %2026 = vmatprep.subr.mxu0 %v7600_v4  ;;  %2097 = vmatprep.subr.mxu1 %v7601_v6 }
 0x67e   :  { %2027 = vmatpush1.msra.mxu0 %v7602_v8  ;;  %2098 = vmatpush1.msra.mxu1 %v7603_v1 }
 0x67f   :  { %2028 = vmatprep.subr.mxu0 %v7604_v12  ;;  %2099 = vmatprep.subr.mxu1 %v7605_v62  ;;  %v1977_v62 = vrot.slane %v6059_v56, 7 }
 0x680   :  { %2029 = vmatpush1.msra.mxu0 %v7606_v19  ;;  %2100 = vmatpush1.msra.mxu1 %v7607_v14 }
 0x681   :  { %2030 = vmatprep.subr.mxu0 %v7608_v61  ;;  %2101 = vmatprep.subr.mxu1 %v7609_v2  ;;  %v1978_v61 = vrot.slane %v6061_v49, 7 }
 0x682   :  { %2031 = vmatpush1.msra.mxu0 %v7610_v9  ;;  %2102 = vmatpush1.msra.mxu1 %v7611_v18 }
 0x683   :  { %2032 = vmatprep.subr.mxu0 %v7612_v20  ;;  %2103 = vmatprep.subr.mxu1 %v7613_v21 }
 0x684   :  { %2033 = vmatpush1.msra.mxu0 %v7614_v22  ;;  %2104 = vmatpush1.msra.mxu1 %v7615_v23 }
 0x685   :  { %2066 = vmatprep.mubr.f32.mxu0 %v7616_v24  ;;  %2137 = vmatprep.mubr.f32.mxu1 %v7616_v24 }
 0x686   :  { %2385 = vmatprep.subr.mxu0 %v2294_v25  ;;  %2462 = vmatprep.subr.mxu1 %v2296_v26 }
 0x725   :  { %v1833_v27 = vpop.f32.mrf.mxu0  ;;  %v1904_v35 = vpop.f32.mrf.mxu1 }
 0x726   :  { %v1913_v28 = vrot.slane %v1833_v27, 2  ;;  %v1917_v29 = vrot.slane %v1833_v27, 3  ;;  %v1915_v43 = vrot.slane %v1904_v35, 2  ;;  %v1919_v40 = vrot.slane %v1904_v35, 3  ;;  %v2293_v35 = vld [vmem:[#allocation8 + $0x1e0] sm:$0xff] }
 0x727   :  { %v1835_v30 = vpop.f32.mrf.mxu0  ;;  %v1906_v59 = vpop.f32.mrf.mxu1 }
 0x728   :  { %v1929_v32 = vadd.f32 %v1913_v28, %v7617_v31  ;;  %v1933_v34 = vadd.f32 %v1917_v29, %v7618_v33  ;;  %v1914_v36 = vrot.slane %v1835_v30, 2  ;;  %v1918_v37 = vrot.slane %v1835_v30, 3 }
 0x729   :  { %v1916_v3 = vrot.slane %v1906_v59, 2  ;;  %v1920_v7 = vrot.slane %v1906_v59, 3  ;;  %v1931_v52 = vadd.f32 %v1915_v43, %v7621_v50  ;;  %v1935_v57 = vadd.f32 %v1919_v40, %v7622_v53  ;;  %v2291_v59 = vld [vmem:[#allocation8 + $0x1d0] sm:$0xff]  ;;  %v2282_v43 = vld [vmem:[#allocation8 + $0x188] sm:$0xff]  ;;  %v2284_v40 = vld [vmem:[#allocation8 + $0x198] sm:$0xff] }
 0x72a   :  { %v4258_v38 = vmul.f32 -1.442695, %v1929_v32  ;;  %v4259_v39 = vmul.f32 -1.442695, %v1933_v34  ;;  %v1930_v0 = vadd.f32 %v1914_v36, %v7619_v5  ;;  %v1934_v46 = vadd.f32 %v1918_v37, %v7620_v45  ;;  %v2295_v36 = vld [vmem:[#allocation8 + $0x1f0] sm:$0xff] }
 0x72b   :  { %v1932_v54 = vadd.f32 %v1916_v3, %v5511_v15  ;;  %v1936_v55 = vadd.f32 %v1920_v7, %v5504_v13  ;;  %v2285_v3 = vld [vmem:[#allocation8 + $0x1a0] sm:$0xff]  ;;  %v2287_v7 = vld [vmem:[#allocation8 + $0x1b0] sm:$0xff] }
 0x72c   :  { %4605 = vpow2.f32 %v4258_v38  ;;  %v4260_v60 = vmul.f32 -1.442695, %v1930_v0  ;;  %v4261_v47 = vmul.f32 -1.442695, %v1934_v46  ;;  %v2292_v0 = vld [vmem:[#allocation8 + $0x1d8] sm:$0xff]  ;;  %v2289_v46 = vld [vmem:[#allocation8 + $0x1c0] sm:$0xff] }
 0x72d   :  { %4607 = vpow2.f32 %v4259_v39  ;;  %v4262_v48 = vmul.f32 -1.442695, %v1932_v54  ;;  %v4263_v44 = vmul.f32 -1.442695, %v1936_v55  ;;  %v2290_v39 = vld [vmem:[#allocation8 + $0x1c8] sm:$0xff]  ;;  %v2281_v54 = vld [vmem:[#allocation8 + $0x180] sm:$0xff] }
 0x72e   :  { %4609 = vpow2.f32 %v4260_v60  ;;  %v2286_v60 = vld [vmem:[#allocation8 + $0x1a8] sm:$0xff]  ;;  %v2283_v55 = vld [vmem:[#allocation8 + $0x190] sm:$0xff] }
 0x72f   :  { %4611 = vpow2.f32 %v4261_v47  ;;  %v2288_v47 = vld [vmem:[#allocation8 + $0x1b8] sm:$0xff] }
 0x730   :  { %4613 = vtanh.f32 %v1931_v52  ;;  %v2278_v52 = vld [vmem:[#allocation8 + $0x168] sm:$0xff] }
 0x731   :  { %4615 = vtanh.f32 %v1935_v57  ;;  %v2280_v57 = vld [vmem:[#allocation8 + $0x178] sm:$0xff] }
 0x732   :  { %4617 = vpow2.f32 %v4262_v48  ;;  %v2277_v48 = vld [vmem:[#allocation8 + $0x160] sm:$0xff] }
 0x733   :  { %4619 = vpow2.f32 %v4263_v44  ;;  %v2279_v44 = vld [vmem:[#allocation8 + $0x170] sm:$0xff] }
 0x739   :  { %v4606_v42 = vpop.eup %4605 }
 0x73a   :  { %v4608_v51 = vpop.eup %4607  ;;  %v1943_v41 = vadd.f32 1.0, %v4606_v42  ;;  %v2274_v42 = vld [vmem:[#allocation8 + $0x148] sm:$0xff] }
 0x73b   :  { %v1944_v58 = vadd.f32 1.0, %v4608_v51  ;;  %v4610_v16 = vpop.eup %4609  ;;  %v2276_v51 = vld [vmem:[#allocation8 + $0x158] sm:$0xff] }
 0x73c   :  { %v4612_v63 = vpop.eup %4611  ;;  %4621 = vrcp.f32 %v1943_v41  ;;  %v1955_v11 = vadd.f32 1.0, %v4610_v16  ;;  %v2273_v41 = vld [vmem:[#allocation8 + $0x140] sm:$0xff]  ;;  %v2270_v16 = vld [vmem:[#allocation8 + $0x128] sm:$0xff] }
 0x73d   :  { %4623 = vrcp.f32 %v1944_v58  ;;  %v1956_v17 = vadd.f32 1.0, %v4612_v63  ;;  %v4614_v10 = vpop.eup %4613  ;;  %v2275_v58 = vld [vmem:[#allocation8 + $0x150] sm:$0xff]  ;;  %v2272_v63 = vld [vmem:[#allocation8 + $0x138] sm:$0xff] }
 0x73e   :  { %4625 = vrcp.f32 %v1955_v11  ;;  %v4616_v4 = vpop.eup %4615  ;;  %v2269_v11 = vld [vmem:[#allocation8 + $0x120] sm:$0xff] }
 0x73f   :  { %4627 = vrcp.f32 %v1956_v17  ;;  %v4618_v6 = vpop.eup %4617  ;;  %v2271_v17 = vld [vmem:[#allocation8 + $0x130] sm:$0xff] }
 0x740   :  { %v4620_v8 = vpop.eup %4619  ;;  %v1969_v19 = vadd.f32 1.0, %v4618_v6  ;;  %v2265_v6 = vld [vmem:[#allocation8 + $0x100] sm:$0xff] }
 0x741   :  { %v1970_v2 = vadd.f32 1.0, %v4620_v8  ;;  %v2267_v8 = vld [vmem:[#allocation8 + $0x110] sm:$0xff] }
 0x742   :  { %4629 = vrcp.f32 %v1969_v19  ;;  %v2263_v19 = vld [vmem:[#allocation8 + $0xf0] sm:$0xff] }
 0x743   :  { %4631 = vrcp.f32 %v1970_v2  ;;  %v2257_v2 = vld [vmem:[#allocation8 + $0xc0] sm:$0xff] }
 0x749   :  { %v4622_v1 = vpop.eup %4621 }
 0x74a   :  { %v4624_v12 = vpop.eup %4623  ;;  %v1983_v18 = vmul.f32 %v4622_v1, %v4614_v10  ;;  %v2266_v10 = vld [vmem:[#allocation8 + $0x108] sm:$0xff] }
 0x74b   :  { %v4626_v14 = vpop.eup %4625  ;;  %v1984_v21 = vmul.f32 %v4624_v12, %v4616_v4  ;;  %v2268_v4 = vld [vmem:[#allocation8 + $0x118] sm:$0xff]  ;;  %v2262_v1 = vld [vmem:[#allocation8 + $0xe8] sm:$0xff] }
 0x74c   :  { %v4628_v9 = vpop.eup %4627  ;;  %v1981_v20 = vmul.f32 %v4626_v14, %v1977_v62  ;;  %v2264_v12 = vld [vmem:[#allocation8 + $0xf8] sm:$0xff]  ;;  %v2261_v62 = vld [vmem:[#allocation8 + $0xe0] sm:$0xff]  ;;  %v2258_v14 = vld [vmem:[#allocation8 + $0xc8] sm:$0xff] }
 0x74d   :  { %v1982_v22 = vmul.f32 %v4628_v9, %v1978_v61  ;;  %v2260_v61 = vld [vmem:[#allocation8 + $0xd8] sm:$0xff]  ;;  %v2259_v9 = vld [vmem:[#allocation8 + $0xd0] sm:$0xff] }
 0x74e   :  { %v6140_v23 = vadd.f32 %v1983_v18, %v1981_v20  ;;  %v2254_v18 = vld [vmem:[#allocation8 + $0xa8] sm:$0xff]  ;;  %v2256_v20 = vld [vmem:[#allocation8 + $0xb8] sm:$0xff] }
 0x74f   :  { %v6142_v25 = vadd.f32 %v1984_v21, %v1982_v22  ;;  %v4630_v56 = vpop.eup %4629  ;;  %v2253_v21 = vld [vmem:[#allocation8 + $0xa0] sm:$0xff]  ;;  %v2255_v22 = vld [vmem:[#allocation8 + $0xb0] sm:$0xff] }
 0x750   :  { %4633 = vtanh.f32 %v6140_v23  ;;  %v4632_v26 = vpop.eup %4631 }
 0x751   :  { %4635 = vtanh.f32 %v6142_v25 }
 0x75d   :  { %v4634_v27 = vpop.eup %4633 }
 0x75e   :  { %v4636_v49 = vpop.eup %4635  ;;  %v1989_v28 = vmul.f32 %v4634_v27, %v4630_v56  ;;  %v2250_v56 = vld [vmem:[#allocation8 + $0x88] sm:$0xff]  ;;  %v2249_v27 = vld [vmem:[#allocation8 + $0x80] sm:$0xff] }
 0x75f   :  { %v1990_v29 = vmul.f32 %v4636_v49, %v4632_v26  ;;  %v2252_v26 = vld [vmem:[#allocation8 + $0x98] sm:$0xff]  ;;  %v2251_v49 = vld [vmem:[#allocation8 + $0x90] sm:$0xff] }
 0x760   :  { %v1998_v30 = vrot.slane %v1989_v28, 6 }
 0x761   :  { %v1993_v32 = vrot.slane %v1990_v29, 7  ;;  %v1999_v34 = vrot.slane %v1990_v29, 5  ;;  %v2248_v29 = vld [vmem:[#allocation8 + $0x78] sm:$0xff] }
 0x763   :  { %v1995_v37 = vsel %vm1994_vm7, %v1993_v32, %v1989_v28  ;;  %v2000_v38 = vsel %vm593_vm1, %v1999_v34, %v1998_v30  ;;  %v2246_v28 = vld [vmem:[#allocation8 + $0x68] sm:$0xff]  ;;  %v2245_v30 = vld [vmem:[#allocation8 + $0x60] sm:$0xff]  ;;  %v2247_v32 = vld [vmem:[#allocation8 + $0x70] sm:$0xff] }
 0x764   :  { %1997 = vst [vmem:[#allocation2 + $0x6] sm:$0xc0] %v1995_v37  ;;  %2067 = vmatmul.mubr.f32.vlgmr.msra.gmra.mxu0 %v2000_v38  ;;  %2138 = vmatmul.mubr.f32.vlgmr.msra.gmra.mxu1 %v2000_v38  ;;  %v2242_v34 = vld [vmem:[#allocation8 + $0x48] sm:$0xff]  ;;  %v2243_v37 = vld [vmem:[#allocation8 + $0x50] sm:$0xff] }
 0x765   :  { %2386 = vmatpush1.msra.mxu0 %v2293_v35  ;;  %2463 = vmatpush1.msra.mxu1 %v2295_v36  ;;  %v2244_v35 = vld [vmem:[#allocation8 + $0x58] sm:$0xff]  ;;  %v2241_v36 = vld [vmem:[#allocation8 + $0x40] sm:$0xff]  ;;  %v2238_v38 = vld [vmem:[#allocation8 + $0x28] sm:$0xff] }
 0x766   :  { %2387 = vmatprep.subr.mxu0 %v2290_v39  ;;  %2464 = vmatprep.subr.mxu1 %v2292_v0  ;;  %v2240_v39 = vld [vmem:[#allocation8 + $0x38] sm:$0xff]  ;;  %v2237_v0 = vld [vmem:[#allocation8 + $0x20] sm:$0xff] }
 0x767   :  { %2388 = vmatpush1.msra.mxu0 %v2289_v46  ;;  %2465 = vmatpush1.msra.mxu1 %v2291_v59  ;;  %v2239_v46 = vld [vmem:[#allocation8 + $0x30] sm:$0xff]  ;;  %v2234_v59 = vld [vmem:[#allocation8 + $0x8] sm:$0xff] }
 0x768   :  { %2389 = vmatprep.subr.mxu0 %v2286_v60  ;;  %2466 = vmatprep.subr.mxu1 %v2288_v47  ;;  %v2236_v60 = vld [vmem:[#allocation8 + $0x18] sm:$0xff]  ;;  %v2233_v47 = vld [vmem:[#allocation8] sm:$0xff] }
 0x769   :  { %2390 = vmatpush1.msra.mxu0 %v2285_v3  ;;  %2467 = vmatpush1.msra.mxu1 %v2287_v7  ;;  %v2235_v3 = vld [vmem:[#allocation8 + $0x10] sm:$0xff]  ;;  %v2362_v7 = vld [vmem:[#allocation2] sm:$0xff] }
 0x76a   :  { %2391 = vmatprep.subr.mxu0 %v2282_v43  ;;  %2468 = vmatprep.subr.mxu1 %v2284_v40  ;;  %v6151_v43 = vld [vmem:[#allocation9 + $0x1e8] sm:$0xff]  ;;  %v6153_v40 = vld [vmem:[#allocation9 + $0x1f8] sm:$0xff] }
 0x76b   :  { %2392 = vmatpush1.msra.mxu0 %v2281_v54  ;;  %2469 = vmatpush1.msra.mxu1 %v2283_v55  ;;  %7623 = vst [vmem:[#allocation19_spill] sm:$0xff] %v6151_v43  ;;  %7624 = vst [vmem:[#allocation20_spill] sm:$0xff] %v6153_v40  ;;  %v6157_v54 = vld [vmem:[#allocation9 + $0x1e0] sm:$0xff]  ;;  %v6159_v55 = vld [vmem:[#allocation9 + $0x1f0] sm:$0xff] }
 0x76c   :  { %2393 = vmatprep.subr.mxu0 %v2278_v52  ;;  %2470 = vmatprep.subr.mxu1 %v2280_v57  ;;  %v6163_v52 = vld [vmem:[#allocation9 + $0x1c8] sm:$0xff]  ;;  %v6165_v57 = vld [vmem:[#allocation9 + $0x1d8] sm:$0xff] }
 0x76d   :  { %2394 = vmatpush1.msra.mxu0 %v2277_v48  ;;  %2471 = vmatpush1.msra.mxu1 %v2279_v44  ;;  %v6169_v48 = vld [vmem:[#allocation9 + $0x1c0] sm:$0xff]  ;;  %v6171_v44 = vld [vmem:[#allocation9 + $0x1d0] sm:$0xff] }
 0x76e   :  { %2395 = vmatprep.subr.mxu0 %v2274_v42  ;;  %2472 = vmatprep.subr.mxu1 %v2276_v51  ;;  %v6175_v42 = vld [vmem:[#allocation9 + $0x1a8] sm:$0xff]  ;;  %v6177_v51 = vld [vmem:[#allocation9 + $0x1b8] sm:$0xff] }
 0x76f   :  { %2396 = vmatpush1.msra.mxu0 %v2273_v41  ;;  %2473 = vmatpush1.msra.mxu1 %v2275_v58  ;;  %v6181_v41 = vld [vmem:[#allocation9 + $0x1a0] sm:$0xff]  ;;  %v6183_v58 = vld [vmem:[#allocation9 + $0x1b0] sm:$0xff] }
 0x770   :  { %2397 = vmatprep.subr.mxu0 %v2270_v16  ;;  %2474 = vmatprep.subr.mxu1 %v2272_v63  ;;  %v6187_v16 = vld [vmem:[#allocation9 + $0x188] sm:$0xff]  ;;  %v6189_v63 = vld [vmem:[#allocation9 + $0x198] sm:$0xff] }
 0x771   :  { %2398 = vmatpush1.msra.mxu0 %v2269_v11  ;;  %2475 = vmatpush1.msra.mxu1 %v2271_v17  ;;  %v6193_v11 = vld [vmem:[#allocation9 + $0x180] sm:$0xff]  ;;  %v6195_v17 = vld [vmem:[#allocation9 + $0x190] sm:$0xff] }
 0x772   :  { %2399 = vmatprep.subr.mxu0 %v2266_v10  ;;  %2476 = vmatprep.subr.mxu1 %v2268_v4  ;;  %v6199_v10 = vld [vmem:[#allocation9 + $0x168] sm:$0xff]  ;;  %v6201_v4 = vld [vmem:[#allocation9 + $0x178] sm:$0xff] }
 0x773   :  { %2400 = vmatpush1.msra.mxu0 %v2265_v6  ;;  %2477 = vmatpush1.msra.mxu1 %v2267_v8  ;;  %v6205_v6 = vld [vmem:[#allocation9 + $0x160] sm:$0xff]  ;;  %v6207_v8 = vld [vmem:[#allocation9 + $0x170] sm:$0xff] }
 0x774   :  { %2401 = vmatprep.subr.mxu0 %v2262_v1  ;;  %2478 = vmatprep.subr.mxu1 %v2264_v12  ;;  %v6211_v1 = vld [vmem:[#allocation9 + $0x148] sm:$0xff]  ;;  %v6213_v12 = vld [vmem:[#allocation9 + $0x158] sm:$0xff] }
 0x775   :  { %2402 = vmatpush1.msra.mxu0 %v2261_v62  ;;  %2479 = vmatpush1.msra.mxu1 %v2263_v19  ;;  %v6217_v62 = vld [vmem:[#allocation9 + $0x140] sm:$0xff]  ;;  %v6219_v19 = vld [vmem:[#allocation9 + $0x150] sm:$0xff] }
 0x776   :  { %2403 = vmatprep.subr.mxu0 %v2258_v14  ;;  %2480 = vmatprep.subr.mxu1 %v2260_v61  ;;  %v6223_v14 = vld [vmem:[#allocation9 + $0x128] sm:$0xff]  ;;  %v6225_v61 = vld [vmem:[#allocation9 + $0x138] sm:$0xff] }
 0x777   :  { %2404 = vmatpush1.msra.mxu0 %v2257_v2  ;;  %2481 = vmatpush1.msra.mxu1 %v2259_v9  ;;  %v6229_v2 = vld [vmem:[#allocation9 + $0x120] sm:$0xff]  ;;  %v6231_v9 = vld [vmem:[#allocation9 + $0x130] sm:$0xff] }
 0x778   :  { %2405 = vmatprep.subr.mxu0 %v2254_v18  ;;  %2482 = vmatprep.subr.mxu1 %v2256_v20  ;;  %v6235_v18 = vld [vmem:[#allocation9 + $0x108] sm:$0xff]  ;;  %v6237_v20 = vld [vmem:[#allocation9 + $0x118] sm:$0xff] }
 0x779   :  { %2406 = vmatpush1.msra.mxu0 %v2253_v21  ;;  %2483 = vmatpush1.msra.mxu1 %v2255_v22  ;;  %v6241_v21 = vld [vmem:[#allocation9 + $0x100] sm:$0xff]  ;;  %v6243_v22 = vld [vmem:[#allocation9 + $0x110] sm:$0xff] }
 0x77a   :  { %2407 = vmatprep.subr.mxu0 %v2250_v56  ;;  %2484 = vmatprep.subr.mxu1 %v2252_v26  ;;  %v6247_v56 = vld [vmem:[#allocation9 + $0xe8] sm:$0xff]  ;;  %v6249_v26 = vld [vmem:[#allocation9 + $0xf8] sm:$0xff] }
 0x77b   :  { %2408 = vmatpush1.msra.mxu0 %v2249_v27  ;;  %2485 = vmatpush1.msra.mxu1 %v2251_v49  ;;  %v6253_v27 = vld [vmem:[#allocation9 + $0xe0] sm:$0xff]  ;;  %v6255_v49 = vld [vmem:[#allocation9 + $0xf0] sm:$0xff] }
 0x77c   :  { %2409 = vmatprep.subr.mxu0 %v2246_v28  ;;  %2486 = vmatprep.subr.mxu1 %v2248_v29  ;;  %v6259_v28 = vld [vmem:[#allocation9 + $0xc8] sm:$0xff]  ;;  %v6261_v29 = vld [vmem:[#allocation9 + $0xd8] sm:$0xff] }
 0x77d   :  { %2410 = vmatpush1.msra.mxu0 %v2245_v30  ;;  %2487 = vmatpush1.msra.mxu1 %v2247_v32  ;;  %v6265_v30 = vld [vmem:[#allocation9 + $0xc0] sm:$0xff]  ;;  %v6267_v32 = vld [vmem:[#allocation9 + $0xd0] sm:$0xff] }
 0x77e   :  { %2411 = vmatprep.subr.mxu0 %v2242_v34  ;;  %2488 = vmatprep.subr.mxu1 %v2244_v35  ;;  %7625 = vst [vmem:[#allocation17_spill] sm:$0xff] %v6267_v32  ;;  %v6269_v34 = vld [vmem:[#allocation9 + $0xa8] sm:$0xff]  ;;  %v6273_v35 = vld [vmem:[#allocation9 + $0xb8] sm:$0xff] }
 0x77f   :  { %2412 = vmatpush1.msra.mxu0 %v2241_v36  ;;  %2489 = vmatpush1.msra.mxu1 %v2243_v37  ;;  %7626 = vst [vmem:[#allocation18_spill] sm:$0xff] %v6269_v34  ;;  %7627 = vst [vmem:[#allocation21_spill] sm:$0xff] %v6273_v35  ;;  %v6275_v36 = vld [vmem:[#allocation9 + $0xa0] sm:$0xff]  ;;  %v6277_v37 = vld [vmem:[#allocation9 + $0xb0] sm:$0xff] }
 0x780   :  { %2413 = vmatprep.subr.mxu0 %v2238_v38  ;;  %2490 = vmatprep.subr.mxu1 %v2240_v39  ;;  %7628 = vst [vmem:[#allocation22_spill] sm:$0xff] %v6275_v36  ;;  %7629 = vst [vmem:[#allocation23_spill] sm:$0xff] %v6277_v37  ;;  %v6281_v38 = vld [vmem:[#allocation9 + $0x88] sm:$0xff]  ;;  %v6283_v39 = vld [vmem:[#allocation9 + $0x98] sm:$0xff] }
 0x781   :  { %2414 = vmatpush1.msra.mxu0 %v2237_v0  ;;  %2491 = vmatpush1.msra.mxu1 %v2239_v46  ;;  %7630 = vst [vmem:[#allocation24_spill] sm:$0xff] %v6281_v38  ;;  %7631 = vst [vmem:[#allocation25_spill] sm:$0xff] %v6283_v39  ;;  %v6285_v0 = vld [vmem:[#allocation9 + $0x80] sm:$0xff]  ;;  %v6289_v46 = vld [vmem:[#allocation9 + $0x90] sm:$0xff] }
 0x782   :  { %2415 = vmatprep.subr.mxu0 %v2234_v59  ;;  %2492 = vmatprep.subr.mxu1 %v2236_v60  ;;  %7632 = vst [vmem:[#allocation26_spill] sm:$0xff] %v6285_v0  ;;  %7633 = vst [vmem:[#allocation27_spill] sm:$0xff] %v6289_v46  ;;  %v6291_v59 = vld [vmem:[#allocation9 + $0x68] sm:$0xff]  ;;  %v6293_v60 = vld [vmem:[#allocation9 + $0x78] sm:$0xff] }
 0x783   :  { %2416 = vmatpush1.msra.mxu0 %v2233_v47  ;;  %2449 = vmatprep.mubr.f32.mxu0 %v7616_v24  ;;  %7634 = vst [vmem:[#allocation28_spill] sm:$0xff] %v6291_v59  ;;  %7635 = vst [vmem:[#allocation29_spill] sm:$0xff] %v6293_v60  ;;  %v6297_v47 = vld [vmem:[#allocation9 + $0x60] sm:$0xff] }
 0x784   :  { %2493 = vmatpush1.msra.mxu1 %v2235_v3  ;;  %2526 = vmatprep.mubr.f32.mxu1 %v7616_v24  ;;  %7636 = vst [vmem:[#allocation30_spill] sm:$0xff] %v6297_v47  ;;  %v6299_v3 = vld [vmem:[#allocation9 + $0x70] sm:$0xff] }
 0x785   :  { %2450 = vmatmul.mubr.f32.vlgmr.msra.gmra.mxu0 %v2362_v7  ;;  %2527 = vmatmul.mubr.f32.vlgmr.msra.gmra.mxu1 %v2362_v7  ;;  %7637 = vst [vmem:[#allocation31_spill] sm:$0xff] %v6299_v3  ;;  %v6303_v7 = vld [vmem:[#allocation9 + $0x48] sm:$0xff] }
 0x786   :  { %2455 = vmatprep.mubr.f32.mxu0 %v7616_v24  ;;  %2532 = vmatprep.mubr.f32.mxu1 %v7616_v24  ;;  %7638 = vst [vmem:[#allocation32_spill] sm:$0xff] %v6303_v7 }
 0x787   :  { %2541 = vmatprep.subr.mxu0 %v6151_v43  ;;  %2612 = vmatprep.subr.mxu1 %v6153_v40 }
 0x788   :  { %2542 = vmatpush1.msra.mxu0 %v6157_v54  ;;  %2613 = vmatpush1.msra.mxu1 %v6159_v55 }
 0x789   :  { %2543 = vmatprep.subr.mxu0 %v6163_v52  ;;  %2614 = vmatprep.subr.mxu1 %v6165_v57 }
 0x78a   :  { %2544 = vmatpush1.msra.mxu0 %v6169_v48  ;;  %2615 = vmatpush1.msra.mxu1 %v6171_v44 }
 0x78b   :  { %2545 = vmatprep.subr.mxu0 %v6175_v42  ;;  %2616 = vmatprep.subr.mxu1 %v6177_v51 }
 0x78c   :  { %2546 = vmatpush1.msra.mxu0 %v6181_v41  ;;  %2617 = vmatpush1.msra.mxu1 %v6183_v58 }
 0x78d   :  { %2547 = vmatprep.subr.mxu0 %v6187_v16  ;;  %2618 = vmatprep.subr.mxu1 %v6189_v63 }
 0x78e   :  { %2548 = vmatpush1.msra.mxu0 %v6193_v11  ;;  %2619 = vmatpush1.msra.mxu1 %v6195_v17 }
 0x78f   :  { %2549 = vmatprep.subr.mxu0 %v6199_v10  ;;  %2620 = vmatprep.subr.mxu1 %v6201_v4 }
 0x790   :  { %2550 = vmatpush1.msra.mxu0 %v6205_v6  ;;  %2621 = vmatpush1.msra.mxu1 %v6207_v8 }
 0x791   :  { %2551 = vmatprep.subr.mxu0 %v6211_v1  ;;  %2622 = vmatprep.subr.mxu1 %v6213_v12 }
 0x792   :  { %2552 = vmatpush1.msra.mxu0 %v6217_v62  ;;  %2623 = vmatpush1.msra.mxu1 %v6219_v19 }
 0x793   :  { %2553 = vmatprep.subr.mxu0 %v6223_v14  ;;  %2624 = vmatprep.subr.mxu1 %v6225_v61 }
 0x794   :  { %2554 = vmatpush1.msra.mxu0 %v6229_v2  ;;  %2625 = vmatpush1.msra.mxu1 %v6231_v9 }
 0x795   :  { %2555 = vmatprep.subr.mxu0 %v6235_v18  ;;  %2626 = vmatprep.subr.mxu1 %v6237_v20 }
 0x796   :  { %2556 = vmatpush1.msra.mxu0 %v6241_v21  ;;  %2627 = vmatpush1.msra.mxu1 %v6243_v22 }
 0x797   :  { %2557 = vmatprep.subr.mxu0 %v6247_v56  ;;  %2628 = vmatprep.subr.mxu1 %v6249_v26 }
 0x798   :  { %2558 = vmatpush1.msra.mxu0 %v6253_v27  ;;  %2629 = vmatpush1.msra.mxu1 %v6255_v49 }
 0x799   :  { %2559 = vmatprep.subr.mxu0 %v6259_v28  ;;  %2630 = vmatprep.subr.mxu1 %v6261_v29 }
 0x79a   :  { %2560 = vmatpush1.msra.mxu0 %v6265_v30  ;;  %2631 = vmatpush1.msra.mxu1 %v6267_v32 }
 0x79b   :  { %2561 = vmatprep.subr.mxu0 %v6269_v34  ;;  %2632 = vmatprep.subr.mxu1 %v6273_v35 }
 0x79c   :  { %2562 = vmatpush1.msra.mxu0 %v6275_v36  ;;  %2633 = vmatpush1.msra.mxu1 %v6277_v37  ;;  %v6305_v37 = vld [vmem:[#allocation9 + $0x58] sm:$0xff]  ;;  %v6309_v36 = vld [vmem:[#allocation9 + $0x40] sm:$0xff] }
 0x79d   :  { %2563 = vmatprep.subr.mxu0 %v6281_v38  ;;  %2634 = vmatprep.subr.mxu1 %v6283_v39  ;;  %7639 = vst [vmem:[#allocation33_spill] sm:$0xff] %v6305_v37  ;;  %7640 = vst [vmem:[#allocation34_spill] sm:$0xff] %v6309_v36  ;;  %v6311_v38 = vld [vmem:[#allocation9 + $0x50] sm:$0xff]  ;;  %v6321_v39 = vld [vmem:[#allocation9 + $0x20] sm:$0xff] }
 0x79e   :  { %2564 = vmatpush1.msra.mxu0 %v6285_v0  ;;  %2635 = vmatpush1.msra.mxu1 %v6289_v46  ;;  %7641 = vst [vmem:[#allocation35_spill] sm:$0xff] %v6311_v38  ;;  %v6317_v46 = vld [vmem:[#allocation9 + $0x28] sm:$0xff]  ;;  %v6319_v0 = vld [vmem:[#allocation9 + $0x38] sm:$0xff]  ;;  %7644 = vst [vmem:[#allocation38_spill] sm:$0xff] %v6321_v39 }
 0x79f   :  { %2565 = vmatprep.subr.mxu0 %v6291_v59  ;;  %2636 = vmatprep.subr.mxu1 %v6293_v60  ;;  %7642 = vst [vmem:[#allocation36_spill] sm:$0xff] %v6317_v46  ;;  %7643 = vst [vmem:[#allocation37_spill] sm:$0xff] %v6319_v0  ;;  %v6325_v60 = vld [vmem:[#allocation9 + $0x30] sm:$0xff]  ;;  %v6327_v59 = vld [vmem:[#allocation9 + $0x8] sm:$0xff] }
 0x7a0   :  { %2566 = vmatpush1.msra.mxu0 %v6297_v47  ;;  %2637 = vmatpush1.msra.mxu1 %v6299_v3  ;;  %7645 = vst [vmem:[#allocation39_spill] sm:$0xff] %v6325_v60  ;;  %7646 = vst [vmem:[#allocation40_spill] sm:$0xff] %v6327_v59  ;;  %v6329_v47 = vld [vmem:[#allocation9 + $0x18] sm:$0xff] }
 0x7a1   :  { %2567 = vmatprep.subr.mxu0 %v6303_v7  ;;  %2638 = vmatprep.subr.mxu1 %v6305_v37  ;;  %7647 = vst [vmem:[#allocation41_spill] sm:$0xff] %v6329_v47  ;;  %v6333_v37 = vld [vmem:[#allocation9] sm:$0xff]  ;;  %v6335_v7 = vld [vmem:[#allocation9 + $0x10] sm:$0xff] }
 0x7a2   :  { %2568 = vmatpush1.msra.mxu0 %v6309_v36  ;;  %2639 = vmatpush1.msra.mxu1 %v6311_v38  ;;  %7648 = vst [vmem:[#allocation49_spill] sm:$0xff] %v6333_v37  ;;  %7649 = vst [vmem:[#allocation43_spill] sm:$0xff] %v6335_v7 }
 0x7a3   :  { %2569 = vmatprep.subr.mxu0 %v6317_v46  ;;  %2640 = vmatprep.subr.mxu1 %v6319_v0 }
 0x7a4   :  { %2570 = vmatpush1.msra.mxu0 %v6321_v39  ;;  %2641 = vmatpush1.msra.mxu1 %v6325_v60 }
 0x7a5   :  { %2571 = vmatprep.subr.mxu0 %v6327_v59  ;;  %2642 = vmatprep.subr.mxu1 %v6329_v47 }
 0x7a6   :  { %2572 = vmatpush1.msra.mxu0 %v6333_v37  ;;  %2643 = vmatpush1.msra.mxu1 %v6335_v7 }
 0x7a7   :  { %2711 = vmatprep.subr.mxu0 %v6151_v43  ;;  %2782 = vmatprep.subr.mxu1 %v6153_v40 }
 0x824   :  { %v2068_v0 = vpop.f32.mrf.mxu0  ;;  %v2139_v3 = vpop.f32.mrf.mxu1 }
 0x825   :  { %v2148_v46 = vrot.slane %v2068_v0, 1  ;;  %v2152_v38 = vrot.slane %v2068_v0, 2 }
 0x826   :  { %v2070_v36 = vpop.f32.mrf.mxu0  ;;  %v2141_v43 = vpop.f32.mrf.mxu1 }
 0x827   :  { %v2164_v39 = vadd.f32 %v2148_v46, %v7617_v31  ;;  %v2168_v60 = vadd.f32 %v2152_v38, %v7618_v33  ;;  %v2149_v59 = vrot.slane %v2070_v36, 1  ;;  %v2153_v35 = vrot.slane %v2070_v36, 2 }
 0x828   :  { %v2151_v0 = vrot.slane %v2141_v43, 1  ;;  %v2155_v31 = vrot.slane %v2141_v43, 2  ;;  %v2150_v46 = vrot.slane %v2139_v3, 1  ;;  %v2154_v33 = vrot.slane %v2139_v3, 2 }
 0x829   :  { %v4264_v47 = vmul.f32 -1.442695, %v2164_v39  ;;  %v4265_v34 = vmul.f32 -1.442695, %v2168_v60  ;;  %v2165_v37 = vadd.f32 %v2149_v59, %v7619_v5  ;;  %v2169_v7 = vadd.f32 %v2153_v35, %v7620_v45 }
 0x82a   :  { %v2167_v38 = vadd.f32 %v2151_v0, %v5511_v15  ;;  %v2171_v36 = vadd.f32 %v2155_v31, %v5504_v13  ;;  %v2166_v39 = vadd.f32 %v2150_v46, %v7621_v50  ;;  %v2170_v5 = vadd.f32 %v2154_v33, %v7622_v53 }
 0x82b   :  { %4637 = vpow2.f32 %v4264_v47  ;;  %v4266_v40 = vmul.f32 -1.442695, %v2165_v37  ;;  %v4267_v32 = vmul.f32 -1.442695, %v2169_v7  ;;  %v2212_v0 = vrot.slane %v6140_v23, 7 }
 0x82c   :  { %4639 = vpow2.f32 %v4265_v34  ;;  %v4268_v45 = vmul.f32 -1.442695, %v2167_v38  ;;  %v4269_v35 = vmul.f32 -1.442695, %v2171_v36  ;;  %v2213_v33 = vrot.slane %v6142_v25, 7 }
 0x82d   :  { %4641 = vpow2.f32 %v4266_v40 }
 0x82e   :  { %4643 = vpow2.f32 %v4267_v32 }
 0x82f   :  { %4645 = vtanh.f32 %v2166_v39 }
 0x830   :  { %4647 = vtanh.f32 %v2170_v5 }
 0x831   :  { %4649 = vpow2.f32 %v4268_v45 }
 0x832   :  { %4651 = vpow2.f32 %v4269_v35 }
 0x838   :  { %v4638_v59 = vpop.eup %4637 }
 0x839   :  { %v4640_v34 = vpop.eup %4639  ;;  %v2178_v37 = vadd.f32 1.0, %v4638_v59 }
 0x83a   :  { %v2179_v40 = vadd.f32 1.0, %v4640_v34  ;;  %v4642_v43 = vpop.eup %4641 }
 0x83b   :  { %v4644_v32 = vpop.eup %4643  ;;  %4653 = vrcp.f32 %v2178_v37  ;;  %v2190_v15 = vadd.f32 1.0, %v4642_v43 }
 0x83c   :  { %4655 = vrcp.f32 %v2179_v40  ;;  %v2191_v13 = vadd.f32 1.0, %v4644_v32  ;;  %v4646_v50 = vpop.eup %4645 }
 0x83d   :  { %4657 = vrcp.f32 %v2190_v15  ;;  %v4648_v53 = vpop.eup %4647 }
 0x83e   :  { %4659 = vrcp.f32 %v2191_v13  ;;  %v4650_v60 = vpop.eup %4649 }
 0x83f   :  { %v4652_v47 = vpop.eup %4651  ;;  %v2204_v31 = vadd.f32 1.0, %v4650_v60  ;;  %v7651_v60 = vld [vmem:[#allocation18_spill] sm:$0xff] }
 0x840   :  { %v2205_v38 = vadd.f32 1.0, %v4652_v47  ;;  %v7652_v47 = vld [vmem:[#allocation21_spill] sm:$0xff] }
 0x841   :  { %4661 = vrcp.f32 %v2204_v31  ;;  %v7656_v31 = vld [vmem:[#allocation25_spill] sm:$0xff] }
 0x842   :  { %4663 = vrcp.f32 %v2205_v38  ;;  %v7659_v38 = vld [vmem:[#allocation28_spill] sm:$0xff] }
 0x848   :  { %v4654_v3 = vpop.eup %4653 }
 0x849   :  { %v4656_v7 = vpop.eup %4655  ;;  %v2218_v39 = vmul.f32 %v4654_v3, %v4646_v50  ;;  %v4270_v50 = vld [vmem:[%s7155_s1 + $0x2] sm:$0x3]  ;;  %v7653_v3 = vld [vmem:[#allocation22_spill] sm:$0xff] }
 0x84a   :  { %v4658_v46 = vpop.eup %4657  ;;  %v2219_v45 = vmul.f32 %v4656_v7, %v4648_v53  ;;  %v7650_v53 = vld [vmem:[#allocation17_spill] sm:$0xff]  ;;  %v7654_v7 = vld [vmem:[#allocation23_spill] sm:$0xff] }
 0x84b   :  { %v4660_v36 = vpop.eup %4659  ;;  %v2216_v5 = vmul.f32 %v4658_v46, %v2212_v0  ;;  %v7655_v0 = vld [vmem:[#allocation24_spill] sm:$0xff]  ;;  %v7657_v46 = vld [vmem:[#allocation26_spill] sm:$0xff] }
 0x84c   :  { %v2217_v35 = vmul.f32 %v4660_v36, %v2213_v33  ;;  %v7658_v33 = vld [vmem:[#allocation27_spill] sm:$0xff]  ;;  %v7660_v36 = vld [vmem:[#allocation29_spill] sm:$0xff] }
 0x84d   :  { %v2220_v59 = vadd.f32 %v2218_v39, %v2216_v5  ;;  %v7661_v39 = vld [vmem:[#allocation30_spill] sm:$0xff]  ;;  %v7662_v5 = vld [vmem:[#allocation31_spill] sm:$0xff] }
 0x84e   :  { %v2221_v34 = vadd.f32 %v2219_v45, %v2217_v35  ;;  %v4662_v37 = vpop.eup %4661  ;;  %v7663_v45 = vld [vmem:[#allocation32_spill] sm:$0xff]  ;;  %v7664_v35 = vld [vmem:[#allocation33_spill] sm:$0xff] }
 0x84f   :  { %4665 = vtanh.f32 %v2220_v59  ;;  %v4664_v40 = vpop.eup %4663  ;;  %v7665_v59 = vld [vmem:[#allocation34_spill] sm:$0xff] }
 0x850   :  { %4667 = vtanh.f32 %v2221_v34  ;;  %v7666_v34 = vld [vmem:[#allocation35_spill] sm:$0xff] }
 0x85c   :  { %v4666_v43 = vpop.eup %4665 }
 0x85d   :  { %v4668_v23 = vpop.eup %4667  ;;  %v2224_v32 = vmul.f32 %v4666_v43, %v4662_v37  ;;  %v7667_v37 = vld [vmem:[#allocation36_spill] sm:$0xff]  ;;  %v7669_v43 = vld [vmem:[#allocation38_spill] sm:$0xff] }
 0x85e   :  { %v2225_v15 = vmul.f32 %v4668_v23, %v4664_v40  ;;  %v7668_v40 = vld [vmem:[#allocation37_spill] sm:$0xff]  ;;  %v7670_v23 = vld [vmem:[#allocation39_spill] sm:$0xff] }
 0x85f   :  { %2231 = vst [vmem:[#allocation2 + $0x7] sm:$0x80] %v2224_v32  ;;  %v7671_v32 = vld [vmem:[#allocation40_spill] sm:$0xff] }
 0x860   :  { %v2228_v25 = vrot.slane %v2225_v15, 7  ;;  %v7672_v15 = vld [vmem:[#allocation41_spill] sm:$0xff] }
 0x862   :  { %2232 = vst [vmem:[#allocation2 + $0xf] sm:$0x1] %v2228_v25  ;;  %v7673_v25 = vld [vmem:[#allocation49_spill] sm:$0xff] }
 0x869   :  { %v2363_v13 = vld [vmem:[#allocation2 + $0x8] sm:$0xff] }
 0x86a   :  { %2456 = vmatmul.mubr.f32.gmra.mxu0 %v2363_v13  ;;  %2533 = vmatmul.mubr.f32.gmra.mxu1 %v2363_v13  ;;  %v7674_v13 = vld [vmem:[#allocation43_spill] sm:$0xff] }
 0x86b   :  { %2605 = vmatprep.mubr.f32.mxu0 %v7616_v24  ;;  %2676 = vmatprep.mubr.f32.mxu1 %v7616_v24 }
 0x86e   :  { %2606 = vmatmul.mubr.f32.vlgmr.msra.gmra.mxu0 %v4270_v50  ;;  %2677 = vmatmul.mubr.f32.vlgmr.msra.gmra.mxu1 %v4270_v50  ;;  %v7675_v50 = vld [vmem:[#allocation19_spill] sm:$0xff] }
 0x86f   :  { %2712 = vmatpush1.msra.mxu0 %v6157_v54  ;;  %2783 = vmatpush1.msra.mxu1 %v6159_v55 }
 0x870   :  { %2713 = vmatprep.subr.mxu0 %v6163_v52  ;;  %2784 = vmatprep.subr.mxu1 %v6165_v57 }
 0x871   :  { %2714 = vmatpush1.msra.mxu0 %v6169_v48  ;;  %2785 = vmatpush1.msra.mxu1 %v6171_v44 }
 0x872   :  { %2715 = vmatprep.subr.mxu0 %v6175_v42  ;;  %2786 = vmatprep.subr.mxu1 %v6177_v51 }
 0x873   :  { %2716 = vmatpush1.msra.mxu0 %v6181_v41  ;;  %2787 = vmatpush1.msra.mxu1 %v6183_v58 }
 0x874   :  { %2717 = vmatprep.subr.mxu0 %v6187_v16  ;;  %2788 = vmatprep.subr.mxu1 %v6189_v63 }
 0x875   :  { %2718 = vmatpush1.msra.mxu0 %v6193_v11  ;;  %2789 = vmatpush1.msra.mxu1 %v6195_v17 }
 0x876   :  { %2719 = vmatprep.subr.mxu0 %v6199_v10  ;;  %2790 = vmatprep.subr.mxu1 %v6201_v4 }
 0x877   :  { %2720 = vmatpush1.msra.mxu0 %v6205_v6  ;;  %2791 = vmatpush1.msra.mxu1 %v6207_v8 }
 0x878   :  { %2721 = vmatprep.subr.mxu0 %v6211_v1  ;;  %2792 = vmatprep.subr.mxu1 %v6213_v12 }
 0x879   :  { %2722 = vmatpush1.msra.mxu0 %v6217_v62  ;;  %2793 = vmatpush1.msra.mxu1 %v6219_v19 }
 0x87a   :  { %2723 = vmatprep.subr.mxu0 %v6223_v14  ;;  %2794 = vmatprep.subr.mxu1 %v6225_v61 }
 0x87b   :  { %2724 = vmatpush1.msra.mxu0 %v6229_v2  ;;  %2795 = vmatpush1.msra.mxu1 %v6231_v9 }
 0x87c   :  { %2725 = vmatprep.subr.mxu0 %v6235_v18  ;;  %2796 = vmatprep.subr.mxu1 %v6237_v20 }
 0x87d   :  { %2726 = vmatpush1.msra.mxu0 %v6241_v21  ;;  %2797 = vmatpush1.msra.mxu1 %v6243_v22 }
 0x87e   :  { %2727 = vmatprep.subr.mxu0 %v6247_v56  ;;  %2798 = vmatprep.subr.mxu1 %v6249_v26 }
 0x87f   :  { %2728 = vmatpush1.msra.mxu0 %v6253_v27  ;;  %2799 = vmatpush1.msra.mxu1 %v6255_v49 }
 0x880   :  { %2729 = vmatprep.subr.mxu0 %v6259_v28  ;;  %2800 = vmatprep.subr.mxu1 %v6261_v29 }
 0x881   :  { %2730 = vmatpush1.msra.mxu0 %v6265_v30  ;;  %2801 = vmatpush1.msra.mxu1 %v7650_v53 }
 0x882   :  { %2731 = vmatprep.subr.mxu0 %v7651_v60  ;;  %2802 = vmatprep.subr.mxu1 %v7652_v47 }
 0x883   :  { %2732 = vmatpush1.msra.mxu0 %v7653_v3  ;;  %2803 = vmatpush1.msra.mxu1 %v7654_v7 }
 0x884   :  { %2733 = vmatprep.subr.mxu0 %v7655_v0  ;;  %2804 = vmatprep.subr.mxu1 %v7656_v31 }
 0x885   :  { %2734 = vmatpush1.msra.mxu0 %v7657_v46  ;;  %2805 = vmatpush1.msra.mxu1 %v7658_v33 }
 0x886   :  { %2735 = vmatprep.subr.mxu0 %v7659_v38  ;;  %2806 = vmatprep.subr.mxu1 %v7660_v36 }
 0x887   :  { %2736 = vmatpush1.msra.mxu0 %v7661_v39  ;;  %2807 = vmatpush1.msra.mxu1 %v7662_v5 }
 0x888   :  { %2737 = vmatprep.subr.mxu0 %v7663_v45  ;;  %2808 = vmatprep.subr.mxu1 %v7664_v35 }
 0x889   :  { %2738 = vmatpush1.msra.mxu0 %v7665_v59  ;;  %2809 = vmatpush1.msra.mxu1 %v7666_v34 }
 0x88a   :  { %2739 = vmatprep.subr.mxu0 %v7667_v37  ;;  %2810 = vmatprep.subr.mxu1 %v7668_v40  ;;  %v7676_v37 = vld [vmem:[#allocation20_spill] sm:$0xff]  ;;  %v2451_v40 = vpop.f32.mrf.mxu0 }
 0x88b   :  { %2740 = vmatpush1.msra.mxu0 %v7669_v43  ;;  %2811 = vmatpush1.msra.mxu1 %v7670_v23  ;;  %v2528_v43 = vpop.f32.mrf.mxu1 }
 0x88c   :  { %2741 = vmatprep.subr.mxu0 %v7671_v32  ;;  %2812 = vmatprep.subr.mxu1 %v7672_v15  ;;  %v2361_v32 = vld [vmem:[%s7161_s7] sm:$0xf]  ;;  %v2453_v23 = vpop.f32.mrf.mxu0  ;;  %v7677_v15 = vld [vmem:[#allocation42_spill] sm:$0xff] }
 0x88d   :  { %2742 = vmatpush1.msra.mxu0 %v7673_v25  ;;  %2775 = vmatprep.mubr.f32.mxu0 %v7616_v24  ;;  %v7678_v34 = vsub.s32 0, %v7677_v15  ;;  %v2530_v59 = vpop.f32.mrf.mxu1 }
 0x88e   :  { %2813 = vmatpush1.msra.mxu1 %v7674_v13  ;;  %2846 = vmatprep.mubr.f32.mxu1 %v7616_v24  ;;  %v7681_v13 = vsub.s32 1, %v7677_v15 }
 0x88f   :  { %2899 = vmatprep.subr.mxu0 %v7675_v50  ;;  %2970 = vmatprep.subr.mxu1 %v7676_v37  ;;  %v6431_v25 = vrot.slane %v2361_v32, %v7678_v34 }
 0x890   :  { %v6437_v24 = vrot.slane %v2361_v32, %v7681_v13 }
 0x891   :  { %7679 = vst [vmem:[#allocation44_spill] sm:$0xff] %v6431_v25  ;;  %v6444_v45 = vadd.f32 %v2451_v40, %v6431_v25 }
 0x892   :  { %7682 = vst [vmem:[#allocation46_spill] sm:$0xff] %v6437_v24  ;;  %v6447_v39 = vadd.f32 %v2453_v23, %v6437_v24 }
 0x92a   :  { %v6433_v35 = vpop.f32.mrf.mxu0  ;;  %v6439_v50 = vpop.f32.mrf.mxu1 }
 0x92b   :  { %7680 = vst [vmem:[#allocation45_spill] sm:$0xff] %v6433_v35  ;;  %7683 = vst [vmem:[#allocation48_spill] sm:$0xff] %v6439_v50 }
 0x92c   :  { %v6441_v37 = vpop.f32.mrf.mxu0  ;;  %v6449_v34 = vpop.f32.mrf.mxu1 }
 0x92d   :  { %7684 = vst [vmem:[#allocation47_spill] sm:$0xff] %v6441_v37  ;;  %7685 = vst [vmem:[#allocation17_spill] sm:$0xff] %v6449_v34  ;;  %v7686_v37 = vsub.s32 3, %v7677_v15  ;;  %v7689_v34 = vsub.s32 2, %v7677_v15 }
 0x92e   :  { %v2607_v5 = vpop.f32.mrf.mxu0  ;;  %v2678_v33 = vpop.f32.mrf.mxu1 }
 0x92f   :  { %v2683_v36 = vadd.f32 %v2607_v5, %v6444_v45  ;;  %v6455_v46 = vrot.slane %v2361_v32, %v7686_v37  ;;  %v6462_v24 = vrot.slane %v2361_v32, %v7689_v34 }
 0x930   :  { %v2609_v35 = vpop.f32.mrf.mxu0  ;;  %v2680_v40 = vpop.f32.mrf.mxu1 }
 0x931   :  { %v4271_v38 = vmul.f32 -1.442695, %v2683_v36  ;;  %v2684_v13 = vadd.f32 %v2609_v35, %v6447_v39  ;;  %7687 = vst [vmem:[#allocation18_spill] sm:$0xff] %v6455_v46  ;;  %v6458_v23 = vadd.f32 %v2530_v59, %v6455_v46  ;;  %7690 = vst [vmem:[#allocation22_spill] sm:$0xff] %v6462_v24  ;;  %v6466_v5 = vadd.f32 %v2528_v43, %v6462_v24  ;;  %v7706_v24 = vld [vmem:[#allocation41_spill] sm:$0xff] }
 0x933   :  { %4669 = vpow2.f32 %v4271_v38  ;;  %v4272_v50 = vmul.f32 -1.442695, %v2684_v13  ;;  %7688 = vst [vmem:[#allocation21_spill] sm:$0xff] %v6458_v23  ;;  %v2686_v36 = vadd.f32 %v2680_v40, %v6458_v23  ;;  %v2685_v13 = vadd.f32 %v2678_v33, %v6466_v5 }
 0x935   :  { %4671 = vpow2.f32 %v4272_v50  ;;  %v4273_v38 = vmul.f32 -1.442695, %v2686_v36 }
 0x937   :  { %4673 = vpow2.f32 %v4273_v38  ;;  %v7694_v38 = vld [vmem:[#allocation29_spill] sm:$0xff] }
 0x940   :  { %v4670_v35 = vpop.eup %4669 }
 0x941   :  { %v2690_v37 = vadd.f32 1.0, %v4670_v35 }
 0x942   :  { %v4672_v25 = vpop.eup %4671 }
 0x943   :  { %4675 = vrcp.f32 %v2690_v37  ;;  %v2696_v50 = vadd.f32 1.0, %v4672_v25  ;;  %v7692_v25 = vld [vmem:[#allocation27_spill] sm:$0xff] }
 0x944   :  { %4677 = vtanh.f32 %v2685_v13  ;;  %v4674_v59 = vpop.eup %4673  ;;  %v7695_v13 = vld [vmem:[#allocation30_spill] sm:$0xff]  ;;  %v7696_v37 = vld [vmem:[#allocation31_spill] sm:$0xff] }
 0x945   :  { %4679 = vrcp.f32 %v2696_v50  ;;  %v2703_v46 = vadd.f32 1.0, %v4674_v59  ;;  %v7697_v50 = vld [vmem:[#allocation32_spill] sm:$0xff]  ;;  %v7698_v59 = vld [vmem:[#allocation33_spill] sm:$0xff] }
 0x947   :  { %4681 = vrcp.f32 %v2703_v46  ;;  %v7691_v46 = vld [vmem:[#allocation26_spill] sm:$0xff] }
 0x950   :  { %v4676_v15 = vpop.eup %4675 }
 0x951   :  { %v4678_v32 = vpop.eup %4677 }
 0x952   :  { %v4680_v34 = vpop.eup %4679  ;;  %v2707_v23 = vmul.f32 %v4678_v32, %v4676_v15  ;;  %v7699_v15 = vld [vmem:[#allocation34_spill] sm:$0xff]  ;;  %v7700_v32 = vld [vmem:[#allocation35_spill] sm:$0xff] }
 0x953   :  { %v2706_v40 = vmul.f32 0.0, %v4680_v34  ;;  %v7701_v34 = vld [vmem:[#allocation36_spill] sm:$0xff] }
 0x954   :  { %v4682_v33 = vpop.eup %4681 }
 0x955   :  { %v6469_v43 = vadd.f32 %v2707_v23, %v2706_v40  ;;  %v7693_v23 = vld [vmem:[#allocation28_spill] sm:$0xff]  ;;  %v7702_v40 = vld [vmem:[#allocation37_spill] sm:$0xff] }
 0x957   :  { %4683 = vtanh.f32 %v6469_v43 }
 0x964   :  { %v4684_v36 = vpop.eup %4683 }
 0x965   :  { %v2710_v35 = vmul.f32 %v4684_v36, %v4682_v33  ;;  %v7703_v33 = vld [vmem:[#allocation38_spill] sm:$0xff]  ;;  %v7704_v36 = vld [vmem:[#allocation39_spill] sm:$0xff] }
 0x967   :  { %2776 = vmatmul.mubr.f32.vlgmr.msra.gmra.mxu0 %v2710_v35  ;;  %2847 = vmatmul.mubr.f32.vlgmr.msra.gmra.mxu1 %v2710_v35  ;;  %v7705_v35 = vld [vmem:[#allocation40_spill] sm:$0xff] }
 0x968   :  { %2900 = vmatpush1.msra.mxu0 %v6157_v54  ;;  %2971 = vmatpush1.msra.mxu1 %v6159_v55 }
 0x969   :  { %2901 = vmatprep.subr.mxu0 %v6163_v52  ;;  %2972 = vmatprep.subr.mxu1 %v6165_v57 }
 0x96a   :  { %2902 = vmatpush1.msra.mxu0 %v6169_v48  ;;  %2973 = vmatpush1.msra.mxu1 %v6171_v44 }
 0x96b   :  { %2903 = vmatprep.subr.mxu0 %v6175_v42  ;;  %2974 = vmatprep.subr.mxu1 %v6177_v51 }
 0x96c   :  { %2904 = vmatpush1.msra.mxu0 %v6181_v41  ;;  %2975 = vmatpush1.msra.mxu1 %v6183_v58 }
 0x96d   :  { %2905 = vmatprep.subr.mxu0 %v6187_v16  ;;  %2976 = vmatprep.subr.mxu1 %v6189_v63 }
 0x96e   :  { %2906 = vmatpush1.msra.mxu0 %v6193_v11  ;;  %2977 = vmatpush1.msra.mxu1 %v6195_v17 }
 0x96f   :  { %2907 = vmatprep.subr.mxu0 %v6199_v10  ;;  %2978 = vmatprep.subr.mxu1 %v6201_v4 }
 0x970   :  { %2908 = vmatpush1.msra.mxu0 %v6205_v6  ;;  %2979 = vmatpush1.msra.mxu1 %v6207_v8 }
 0x971   :  { %2909 = vmatprep.subr.mxu0 %v6211_v1  ;;  %2980 = vmatprep.subr.mxu1 %v6213_v12 }
 0x972   :  { %2910 = vmatpush1.msra.mxu0 %v6217_v62  ;;  %2981 = vmatpush1.msra.mxu1 %v6219_v19 }
 0x973   :  { %2911 = vmatprep.subr.mxu0 %v6223_v14  ;;  %2982 = vmatprep.subr.mxu1 %v6225_v61 }
 0x974   :  { %2912 = vmatpush1.msra.mxu0 %v6229_v2  ;;  %2983 = vmatpush1.msra.mxu1 %v6231_v9 }
 0x975   :  { %2913 = vmatprep.subr.mxu0 %v6235_v18  ;;  %2984 = vmatprep.subr.mxu1 %v6237_v20 }
 0x976   :  { %2914 = vmatpush1.msra.mxu0 %v6241_v21  ;;  %2985 = vmatpush1.msra.mxu1 %v6243_v22 }
 0x977   :  { %2915 = vmatprep.subr.mxu0 %v6247_v56  ;;  %2986 = vmatprep.subr.mxu1 %v6249_v26 }
 0x978   :  { %2916 = vmatpush1.msra.mxu0 %v6253_v27  ;;  %2987 = vmatpush1.msra.mxu1 %v6255_v49 }
 0x979   :  { %2917 = vmatprep.subr.mxu0 %v6259_v28  ;;  %2988 = vmatprep.subr.mxu1 %v6261_v29 }
 0x97a   :  { %2918 = vmatpush1.msra.mxu0 %v6265_v30  ;;  %2989 = vmatpush1.msra.mxu1 %v7650_v53 }
 0x97b   :  { %2919 = vmatprep.subr.mxu0 %v7651_v60  ;;  %2990 = vmatprep.subr.mxu1 %v7652_v47 }
 0x97c   :  { %2920 = vmatpush1.msra.mxu0 %v7653_v3  ;;  %2991 = vmatpush1.msra.mxu1 %v7654_v7 }
 0x97d   :  { %2921 = vmatprep.subr.mxu0 %v7655_v0  ;;  %2992 = vmatprep.subr.mxu1 %v7656_v31 }
 0x97e   :  { %2922 = vmatpush1.msra.mxu0 %v7691_v46  ;;  %2993 = vmatpush1.msra.mxu1 %v7692_v25 }
 0x97f   :  { %2923 = vmatprep.subr.mxu0 %v7693_v23  ;;  %2994 = vmatprep.subr.mxu1 %v7694_v38 }
 0x980   :  { %2924 = vmatpush1.msra.mxu0 %v7695_v13  ;;  %2995 = vmatpush1.msra.mxu1 %v7696_v37  ;;  %v7707_v37 = vld [vmem:[#allocation49_spill] sm:$0xff] }
 0x981   :  { %2925 = vmatprep.subr.mxu0 %v7697_v50  ;;  %2996 = vmatprep.subr.mxu1 %v7698_v59  ;;  %v7708_v50 = vmov 0.0   ;;  %v7709_v59 = vld [vmem:[#allocation43_spill] sm:$0xff] }
 0x982   :  { %2926 = vmatpush1.msra.mxu0 %v7699_v15  ;;  %2997 = vmatpush1.msra.mxu1 %v7700_v32  ;;  %v7710_v32 = vld [vmem:[#allocation19_spill] sm:$0xff] }
 0x983   :  { %2927 = vmatprep.subr.mxu0 %v7701_v34  ;;  %2998 = vmatprep.subr.mxu1 %v7702_v40  ;;  %v7711_v34 = vld [vmem:[#allocation20_spill] sm:$0xff] }
 0x984   :  { %2928 = vmatpush1.msra.mxu0 %v7703_v33  ;;  %2999 = vmatpush1.msra.mxu1 %v7704_v36 }
 0x985   :  { %2929 = vmatprep.subr.mxu0 %v7705_v35  ;;  %3000 = vmatprep.subr.mxu1 %v7706_v24 }
 0x986   :  { %2930 = vmatpush1.msra.mxu0 %v7707_v37  ;;  %2963 = vmatprep.mubr.f32.mxu0 %v7708_v50 }
 0x987   :  { %3001 = vmatpush1.msra.mxu1 %v7709_v59  ;;  %3034 = vmatprep.mubr.f32.mxu1 %v7708_v50  ;;  %v7712_v50 = vld [vmem:[#allocation21_spill] sm:$0xff] }
 0x988   :  { %3087 = vmatprep.subr.mxu0 %v7710_v32  ;;  %3158 = vmatprep.subr.mxu1 %v7711_v34 }
 0xa27   :  { %v2777_v40 = vpop.f32.mrf.mxu0  ;;  %v2848_v35 = vpop.f32.mrf.mxu1 }
 0xa28   :  { %v2857_v33 = vrot.slane %v2777_v40, 6  ;;  %v2859_v32 = vrot.slane %v2848_v35, 6 }
 0xa29   :  { %v2779_v15 = vpop.f32.mrf.mxu0  ;;  %v2850_v23 = vpop.f32.mrf.mxu1 }
 0xa2a   :  { %v2865_v36 = vadd.f32 %v2857_v33, %v6444_v45  ;;  %v2858_v13 = vrot.slane %v2779_v15, 6  ;;  %v2860_v59 = vrot.slane %v2850_v23, 6  ;;  %v2867_v40 = vadd.f32 %v2859_v32, %v6466_v5 }
 0xa2c   :  { %v4274_v24 = vmul.f32 -1.442695, %v2865_v36  ;;  %v2866_v37 = vadd.f32 %v2858_v13, %v6447_v39  ;;  %v2868_v25 = vadd.f32 %v2860_v59, %v7712_v50 }
 0xa2e   :  { %4685 = vpow2.f32 %v4274_v24  ;;  %v4275_v38 = vmul.f32 -1.442695, %v2866_v37  ;;  %v4276_v46 = vmul.f32 -1.442695, %v2868_v25 }
 0xa30   :  { %4687 = vpow2.f32 %v4275_v38  ;;  %v2889_v38 = vrot.slane %v6469_v43, 6 }
 0xa31   :  { %4689 = vpow2.f32 %v4276_v46 }
 0xa3b   :  { %v4686_v34 = vpop.eup %4685 }
 0xa3c   :  { %v2872_v31 = vadd.f32 1.0, %v4686_v34 }
 0xa3d   :  { %v4688_v0 = vpop.eup %4687 }
 0xa3e   :  { %4691 = vrcp.f32 %v2872_v31  ;;  %v2878_v15 = vadd.f32 1.0, %v4688_v0  ;;  %v4690_v13 = vpop.eup %4689 }
 0xa3f   :  { %4693 = vtanh.f32 %v2867_v40  ;;  %v2885_v33 = vadd.f32 1.0, %v4690_v13 }
 0xa40   :  { %4695 = vrcp.f32 %v2878_v15 }
 0xa41   :  { %4697 = vrcp.f32 %v2885_v33 }
 0xa4b   :  { %v4692_v24 = vpop.eup %4691 }
 0xa4c   :  { %v4694_v37 = vpop.eup %4693 }
 0xa4d   :  { %v4696_v23 = vpop.eup %4695  ;;  %v2892_v59 = vmul.f32 %v4694_v37, %v4692_v24 }
 0xa4e   :  { %v2891_v36 = vmul.f32 %v4696_v23, %v2889_v38  ;;  %v4698_v32 = vpop.eup %4697 }
 0xa50   :  { %v6543_v25 = vadd.f32 %v2892_v59, %v2891_v36 }
 0xa52   :  { %4699 = vtanh.f32 %v6543_v25  ;;  %v3077_v23 = vrot.slane %v6543_v25, 6  ;;  %v6623_v25 = vld [vmem:[#allocation9 + $0x1f0] sm:$0xff] }
 0xa5f   :  { %v4700_v46 = vpop.eup %4699 }
 0xa60   :  { %v2895_v31 = vmul.f32 %v4700_v46, %v4698_v32 }
 0xa62   :  { %v2897_v0 = vrot.slane %v2895_v31, 2 }
 0xa64   :  { %2964 = vmatmul.mubr.f32.vlgmr.msra.gmra.mxu0 %v2897_v0  ;;  %3035 = vmatmul.mubr.f32.vlgmr.msra.gmra.mxu1 %v2897_v0 }
 0xa65   :  { %3088 = vmatpush1.msra.mxu0 %v6157_v54  ;;  %3159 = vmatpush1.msra.mxu1 %v6159_v55  ;;  %v7713_v54 = vld [vmem:[#allocation24_spill] sm:$0xff]  ;;  %v7714_v55 = vld [vmem:[#allocation25_spill] sm:$0xff] }
 0xa66   :  { %3089 = vmatprep.subr.mxu0 %v6163_v52  ;;  %3160 = vmatprep.subr.mxu1 %v6165_v57  ;;  %v7715_v52 = vld [vmem:[#allocation26_spill] sm:$0xff]  ;;  %v7716_v57 = vld [vmem:[#allocation27_spill] sm:$0xff] }
 0xa67   :  { %3090 = vmatpush1.msra.mxu0 %v6169_v48  ;;  %3161 = vmatpush1.msra.mxu1 %v6171_v44  ;;  %v7717_v48 = vld [vmem:[#allocation28_spill] sm:$0xff]  ;;  %v7718_v44 = vld [vmem:[#allocation29_spill] sm:$0xff] }
 0xa68   :  { %3091 = vmatprep.subr.mxu0 %v6175_v42  ;;  %3162 = vmatprep.subr.mxu1 %v6177_v51  ;;  %v7719_v42 = vld [vmem:[#allocation30_spill] sm:$0xff]  ;;  %v7720_v51 = vld [vmem:[#allocation31_spill] sm:$0xff] }
 0xa69   :  { %3092 = vmatpush1.msra.mxu0 %v6181_v41  ;;  %3163 = vmatpush1.msra.mxu1 %v6183_v58  ;;  %v7721_v41 = vld [vmem:[#allocation32_spill] sm:$0xff]  ;;  %v7722_v58 = vld [vmem:[#allocation33_spill] sm:$0xff] }
 0xa6a   :  { %3093 = vmatprep.subr.mxu0 %v6187_v16  ;;  %3164 = vmatprep.subr.mxu1 %v6189_v63  ;;  %v7723_v16 = vld [vmem:[#allocation34_spill] sm:$0xff]  ;;  %v7724_v63 = vld [vmem:[#allocation35_spill] sm:$0xff] }
 0xa6b   :  { %3094 = vmatpush1.msra.mxu0 %v6193_v11  ;;  %3165 = vmatpush1.msra.mxu1 %v6195_v17  ;;  %v7725_v11 = vld [vmem:[#allocation36_spill] sm:$0xff]  ;;  %v7726_v17 = vld [vmem:[#allocation37_spill] sm:$0xff] }
 0xa6c   :  { %3095 = vmatprep.subr.mxu0 %v6199_v10  ;;  %3166 = vmatprep.subr.mxu1 %v6201_v4  ;;  %v7727_v10 = vld [vmem:[#allocation38_spill] sm:$0xff]  ;;  %v7728_v4 = vld [vmem:[#allocation39_spill] sm:$0xff] }
 0xa6d   :  { %3096 = vmatpush1.msra.mxu0 %v6205_v6  ;;  %3167 = vmatpush1.msra.mxu1 %v6207_v8  ;;  %v7729_v6 = vld [vmem:[#allocation40_spill] sm:$0xff]  ;;  %v7730_v8 = vld [vmem:[#allocation41_spill] sm:$0xff] }
 0xa6e   :  { %3097 = vmatprep.subr.mxu0 %v6211_v1  ;;  %3168 = vmatprep.subr.mxu1 %v6213_v12  ;;  %v7731_v1 = vld [vmem:[#allocation49_spill] sm:$0xff]  ;;  %v7732_v12 = vmov 0.0  }
 0xa6f   :  { %3098 = vmatpush1.msra.mxu0 %v6217_v62  ;;  %3169 = vmatpush1.msra.mxu1 %v6219_v19  ;;  %v7733_v62 = vld [vmem:[#allocation43_spill] sm:$0xff] }
 0xa70   :  { %3099 = vmatprep.subr.mxu0 %v6223_v14  ;;  %3170 = vmatprep.subr.mxu1 %v6225_v61  ;;  %v7734_v19 = vld [vmem:[#allocation19_spill] sm:$0xff]  ;;  %v7735_v14 = vld [vmem:[#allocation20_spill] sm:$0xff] }
 0xa71   :  { %3100 = vmatpush1.msra.mxu0 %v6229_v2  ;;  %3171 = vmatpush1.msra.mxu1 %v6231_v9 }
 0xa72   :  { %3101 = vmatprep.subr.mxu0 %v6235_v18  ;;  %3172 = vmatprep.subr.mxu1 %v6237_v20 }
 0xa73   :  { %3102 = vmatpush1.msra.mxu0 %v6241_v21  ;;  %3173 = vmatpush1.msra.mxu1 %v6243_v22 }
 0xa74   :  { %3103 = vmatprep.subr.mxu0 %v6247_v56  ;;  %3174 = vmatprep.subr.mxu1 %v6249_v26 }
 0xa75   :  { %3104 = vmatpush1.msra.mxu0 %v6253_v27  ;;  %3175 = vmatpush1.msra.mxu1 %v6255_v49 }
 0xa76   :  { %3105 = vmatprep.subr.mxu0 %v6259_v28  ;;  %3176 = vmatprep.subr.mxu1 %v6261_v29 }
 0xa77   :  { %3106 = vmatpush1.msra.mxu0 %v6265_v30  ;;  %3177 = vmatpush1.msra.mxu1 %v7650_v53 }
 0xa78   :  { %3107 = vmatprep.subr.mxu0 %v7651_v60  ;;  %3178 = vmatprep.subr.mxu1 %v7652_v47 }
 0xa79   :  { %3108 = vmatpush1.msra.mxu0 %v7653_v3  ;;  %3179 = vmatpush1.msra.mxu1 %v7654_v7 }
 0xa7a   :  { %3109 = vmatprep.subr.mxu0 %v7713_v54  ;;  %3180 = vmatprep.subr.mxu1 %v7714_v55 }
 0xa7b   :  { %3110 = vmatpush1.msra.mxu0 %v7715_v52  ;;  %3181 = vmatpush1.msra.mxu1 %v7716_v57 }
 0xa7c   :  { %3111 = vmatprep.subr.mxu0 %v7717_v48  ;;  %3182 = vmatprep.subr.mxu1 %v7718_v44 }
 0xa7d   :  { %3112 = vmatpush1.msra.mxu0 %v7719_v42  ;;  %3183 = vmatpush1.msra.mxu1 %v7720_v51 }
 0xa7e   :  { %3113 = vmatprep.subr.mxu0 %v7721_v41  ;;  %3184 = vmatprep.subr.mxu1 %v7722_v58 }
 0xa7f   :  { %3114 = vmatpush1.msra.mxu0 %v7723_v16  ;;  %3185 = vmatpush1.msra.mxu1 %v7724_v63 }
 0xa80   :  { %3115 = vmatprep.subr.mxu0 %v7725_v11  ;;  %3186 = vmatprep.subr.mxu1 %v7726_v17 }
 0xa81   :  { %3116 = vmatpush1.msra.mxu0 %v7727_v10  ;;  %3187 = vmatpush1.msra.mxu1 %v7728_v4 }
 0xa82   :  { %3117 = vmatprep.subr.mxu0 %v7729_v6  ;;  %3188 = vmatprep.subr.mxu1 %v7730_v8 }
 0xa83   :  { %3118 = vmatpush1.msra.mxu0 %v7731_v1  ;;  %3151 = vmatprep.mubr.f32.mxu0 %v7732_v12 }
 0xa84   :  { %3189 = vmatpush1.msra.mxu1 %v7733_v62  ;;  %3222 = vmatprep.mubr.f32.mxu1 %v7732_v12 }
 0xa85   :  { %3275 = vmatprep.subr.mxu0 %v7734_v19  ;;  %3346 = vmatprep.subr.mxu1 %v7735_v14 }
 0xb24   :  { %v2965_v61 = vpop.f32.mrf.mxu0  ;;  %v3036_v20 = vpop.f32.mrf.mxu1 }
 0xb25   :  { %v3045_v2 = vrot.slane %v2965_v61, 4  ;;  %v3047_v29 = vrot.slane %v3036_v20, 4  ;;  %v6620_v61 = vld [vmem:[#allocation9 + $0x1e0] sm:$0xff]  ;;  %v6635_v20 = vld [vmem:[#allocation9 + $0x1d0] sm:$0xff] }
 0xb26   :  { %v2967_v9 = vpop.f32.mrf.mxu0  ;;  %v3038_v27 = vpop.f32.mrf.mxu1 }
 0xb27   :  { %v3053_v18 = vadd.f32 %v3045_v2, %v6444_v45  ;;  %v3046_v21 = vrot.slane %v2967_v9, 4  ;;  %v3048_v49 = vrot.slane %v3038_v27, 4  ;;  %v3055_v35 = vadd.f32 %v3047_v29, %v6466_v5  ;;  %v6626_v2 = vld [vmem:[#allocation9 + $0x1c8] sm:$0xff]  ;;  %v6629_v9 = vld [vmem:[#allocation9 + $0x1d8] sm:$0xff]  ;;  %v6659_v29 = vld [vmem:[#allocation9 + $0x190] sm:$0xff] }
 0xb28   :  { %v6650_v27 = vld [vmem:[#allocation9 + $0x188] sm:$0xff] }
 0xb29   :  { %v4277_v22 = vmul.f32 -1.442695, %v3053_v18  ;;  %v3054_v56 = vadd.f32 %v3046_v21, %v6447_v39  ;;  %v3056_v28 = vadd.f32 %v3048_v49, %v7712_v50  ;;  %v6632_v18 = vld [vmem:[#allocation9 + $0x1c0] sm:$0xff]  ;;  %v6638_v21 = vld [vmem:[#allocation9 + $0x1a8] sm:$0xff]  ;;  %v6653_v49 = vld [vmem:[#allocation9 + $0x198] sm:$0xff] }
 0xb2b   :  { %4701 = vpow2.f32 %v4277_v22  ;;  %v4278_v26 = vmul.f32 -1.442695, %v3054_v56  ;;  %v4279_v43 = vmul.f32 -1.442695, %v3056_v28  ;;  %v6641_v22 = vld [vmem:[#allocation9 + $0x1b8] sm:$0xff]  ;;  %v6644_v56 = vld [vmem:[#allocation9 + $0x1a0] sm:$0xff] }
 0xb2c   :  { %v6656_v28 = vld [vmem:[#allocation9 + $0x180] sm:$0xff] }
 0xb2d   :  { %4703 = vpow2.f32 %v4278_v26  ;;  %v6647_v26 = vld [vmem:[#allocation9 + $0x1b0] sm:$0xff] }
 0xb2e   :  { %4705 = vpow2.f32 %v4279_v43  ;;  %v6662_v43 = vld [vmem:[#allocation9 + $0x168] sm:$0xff] }
 0xb38   :  { %v4702_v34 = vpop.eup %4701 }
 0xb39   :  { %v3060_v40 = vadd.f32 1.0, %v4702_v34  ;;  %v6665_v34 = vld [vmem:[#allocation9 + $0x178] sm:$0xff] }
 0xb3a   :  { %v4704_v15 = vpop.eup %4703 }
 0xb3b   :  { %4707 = vrcp.f32 %v3060_v40  ;;  %v3066_v13 = vadd.f32 1.0, %v4704_v15  ;;  %v4706_v24 = vpop.eup %4705  ;;  %v6671_v40 = vld [vmem:[#allocation9 + $0x170] sm:$0xff]  ;;  %v6674_v15 = vld [vmem:[#allocation9 + $0x148] sm:$0xff] }
 0xb3c   :  { %4709 = vtanh.f32 %v3055_v35  ;;  %v3073_v59 = vadd.f32 1.0, %v4706_v24  ;;  %v6668_v35 = vld [vmem:[#allocation9 + $0x160] sm:$0xff] }
 0xb3d   :  { %4711 = vrcp.f32 %v3066_v13  ;;  %v6677_v13 = vld [vmem:[#allocation9 + $0x158] sm:$0xff]  ;;  %v6680_v24 = vld [vmem:[#allocation9 + $0x140] sm:$0xff] }
 0xb3e   :  { %4713 = vrcp.f32 %v3073_v59  ;;  %v6695_v59 = vld [vmem:[#allocation9 + $0x130] sm:$0xff] }
 0xb48   :  { %v4708_v37 = vpop.eup %4707 }
 0xb49   :  { %v4710_v38 = vpop.eup %4709 }
 0xb4a   :  { %v4712_v33 = vpop.eup %4711  ;;  %v3080_v36 = vmul.f32 %v4710_v38, %v4708_v37  ;;  %v6683_v37 = vld [vmem:[#allocation9 + $0x150] sm:$0xff]  ;;  %v6686_v38 = vld [vmem:[#allocation9 + $0x128] sm:$0xff] }
 0xb4b   :  { %v3079_v32 = vmul.f32 %v4712_v33, %v3077_v23  ;;  %v4714_v31 = vpop.eup %4713  ;;  %v6689_v23 = vld [vmem:[#allocation9 + $0x138] sm:$0xff]  ;;  %v6692_v33 = vld [vmem:[#allocation9 + $0x120] sm:$0xff] }
 0xb4d   :  { %v6617_v46 = vadd.f32 %v3080_v36, %v3079_v32  ;;  %v6698_v36 = vld [vmem:[#allocation9 + $0x108] sm:$0xff]  ;;  %v6701_v32 = vld [vmem:[#allocation9 + $0x118] sm:$0xff] }
 0xb4e   :  { %7736 = vst [vmem:[#allocation23_spill] sm:$0xff] %v6698_v36  ;;  %7737 = vst [vmem:[#allocation42_spill] sm:$0xff] %v6701_v32 }
 0xb4f   :  { %4715 = vtanh.f32 %v6617_v46 }
 0xb5c   :  { %v4716_v0 = vpop.eup %4715 }
 0xb5d   :  { %v3083_v19 = vmul.f32 %v4716_v0, %v4714_v31  ;;  %v6704_v31 = vld [vmem:[#allocation9 + $0x100] sm:$0xff]  ;;  %v6707_v0 = vld [vmem:[#allocation9 + $0x110] sm:$0xff] }
 0xb5e   :  { %7738 = vst [vmem:[#allocation21_spill] sm:$0xff] %v6704_v31  ;;  %7739 = vst [vmem:[#allocation24_spill] sm:$0xff] %v6707_v0 }
 0xb5f   :  { %v3085_v14 = vrot.slane %v3083_v19, 4  ;;  %v6710_v19 = vld [vmem:[#allocation9 + $0xe8] sm:$0xff] }
 0xb61   :  { %3152 = vmatmul.mubr.f32.vlgmr.msra.gmra.mxu0 %v3085_v14  ;;  %3223 = vmatmul.mubr.f32.vlgmr.msra.gmra.mxu1 %v3085_v14  ;;  %v6713_v14 = vld [vmem:[#allocation9 + $0xf8] sm:$0xff] }
 0xb62   :  { %3276 = vmatpush1.msra.mxu0 %v6620_v61  ;;  %3347 = vmatpush1.msra.mxu1 %v6623_v25 }
 0xb63   :  { %3277 = vmatprep.subr.mxu0 %v6626_v2  ;;  %3348 = vmatprep.subr.mxu1 %v6629_v9 }
 0xb64   :  { %3278 = vmatpush1.msra.mxu0 %v6632_v18  ;;  %3349 = vmatpush1.msra.mxu1 %v6635_v20 }
 0xb65   :  { %3279 = vmatprep.subr.mxu0 %v6638_v21  ;;  %3350 = vmatprep.subr.mxu1 %v6641_v22 }
 0xb66   :  { %3280 = vmatpush1.msra.mxu0 %v6644_v56  ;;  %3351 = vmatpush1.msra.mxu1 %v6647_v26 }
 0xb67   :  { %3281 = vmatprep.subr.mxu0 %v6650_v27  ;;  %3352 = vmatprep.subr.mxu1 %v6653_v49 }
 0xb68   :  { %3282 = vmatpush1.msra.mxu0 %v6656_v28  ;;  %3353 = vmatpush1.msra.mxu1 %v6659_v29 }
 0xb69   :  { %3283 = vmatprep.subr.mxu0 %v6662_v43  ;;  %3354 = vmatprep.subr.mxu1 %v6665_v34 }
 0xb6a   :  { %3284 = vmatpush1.msra.mxu0 %v6668_v35  ;;  %3355 = vmatpush1.msra.mxu1 %v6671_v40 }
 0xb6b   :  { %3285 = vmatprep.subr.mxu0 %v6674_v15  ;;  %3356 = vmatprep.subr.mxu1 %v6677_v13 }
 0xb6c   :  { %3286 = vmatpush1.msra.mxu0 %v6680_v24  ;;  %3357 = vmatpush1.msra.mxu1 %v6683_v37 }
 0xb6d   :  { %3287 = vmatprep.subr.mxu0 %v6686_v38  ;;  %3358 = vmatprep.subr.mxu1 %v6689_v23 }
 0xb6e   :  { %3288 = vmatpush1.msra.mxu0 %v6692_v33  ;;  %3359 = vmatpush1.msra.mxu1 %v6695_v59 }
 0xb6f   :  { %3289 = vmatprep.subr.mxu0 %v6698_v36  ;;  %3360 = vmatprep.subr.mxu1 %v6701_v32  ;;  %v6716_v36 = vld [vmem:[#allocation9 + $0xe0] sm:$0xff]  ;;  %v6719_v32 = vld [vmem:[#allocation9 + $0xf0] sm:$0xff] }
 0xb70   :  { %3290 = vmatpush1.msra.mxu0 %v6704_v31  ;;  %3361 = vmatpush1.msra.mxu1 %v6707_v0  ;;  %v6722_v31 = vld [vmem:[#allocation9 + $0xc8] sm:$0xff]  ;;  %v6725_v0 = vld [vmem:[#allocation9 + $0xd8] sm:$0xff] }
 0xb71   :  { %3291 = vmatprep.subr.mxu0 %v6710_v19  ;;  %3362 = vmatprep.subr.mxu1 %v6713_v14 }
 0xb72   :  { %3292 = vmatpush1.msra.mxu0 %v6716_v36  ;;  %3363 = vmatpush1.msra.mxu1 %v6719_v32 }
 0xb73   :  { %3293 = vmatprep.subr.mxu0 %v6722_v31  ;;  %3364 = vmatprep.subr.mxu1 %v6725_v0 }
 0xb74   :  { %3294 = vmatpush1.msra.mxu0 %v6265_v30  ;;  %3365 = vmatpush1.msra.mxu1 %v7650_v53  ;;  %v6756_v30 = vld [vmem:[#allocation9 + $0x1e8] sm:$0xff]  ;;  %v6759_v53 = vld [vmem:[#allocation9 + $0x1f8] sm:$0xff] }
 0xb75   :  { %3295 = vmatprep.subr.mxu0 %v7651_v60  ;;  %3366 = vmatprep.subr.mxu1 %v7652_v47  ;;  %7740 = vst [vmem:[#allocation25_spill] sm:$0xff] %v6756_v30  ;;  %7741 = vst [vmem:[#allocation26_spill] sm:$0xff] %v6759_v53 }
 0xb76   :  { %3296 = vmatpush1.msra.mxu0 %v7653_v3  ;;  %3367 = vmatpush1.msra.mxu1 %v7654_v7 }
 0xb77   :  { %3297 = vmatprep.subr.mxu0 %v7713_v54  ;;  %3368 = vmatprep.subr.mxu1 %v7714_v55 }
 0xb78   :  { %3298 = vmatpush1.msra.mxu0 %v7715_v52  ;;  %3369 = vmatpush1.msra.mxu1 %v7716_v57 }
 0xb79   :  { %3299 = vmatprep.subr.mxu0 %v7717_v48  ;;  %3370 = vmatprep.subr.mxu1 %v7718_v44 }
 0xb7a   :  { %3300 = vmatpush1.msra.mxu0 %v7719_v42  ;;  %3371 = vmatpush1.msra.mxu1 %v7720_v51 }
 0xb7b   :  { %3301 = vmatprep.subr.mxu0 %v7721_v41  ;;  %3372 = vmatprep.subr.mxu1 %v7722_v58 }
 0xb7c   :  { %3302 = vmatpush1.msra.mxu0 %v7723_v16  ;;  %3373 = vmatpush1.msra.mxu1 %v7724_v63 }
 0xb7d   :  { %3303 = vmatprep.subr.mxu0 %v7725_v11  ;;  %3374 = vmatprep.subr.mxu1 %v7726_v17 }
 0xb7e   :  { %3304 = vmatpush1.msra.mxu0 %v7727_v10  ;;  %3375 = vmatpush1.msra.mxu1 %v7728_v4 }
 0xb7f   :  { %3305 = vmatprep.subr.mxu0 %v7729_v6  ;;  %3376 = vmatprep.subr.mxu1 %v7730_v8  ;;  %v3265_v6 = vrot.slane %v6617_v46, 6  ;;  %v7742_v46 = vld [vmem:[#allocation23_spill] sm:$0xff] }
 0xb80   :  { %3306 = vmatpush1.msra.mxu0 %v7731_v1  ;;  %3339 = vmatprep.mubr.f32.mxu0 %v7732_v12 }
 0xb81   :  { %3377 = vmatpush1.msra.mxu1 %v7733_v62  ;;  %3410 = vmatprep.mubr.f32.mxu1 %v7732_v12 }
 0xb82   :  { %3448 = vmatprep.subr.mxu0 %v6756_v30  ;;  %3519 = vmatprep.subr.mxu1 %v6759_v53 }
 0xc21   :  { %v3153_v60 = vpop.f32.mrf.mxu0  ;;  %v3224_v54 = vpop.f32.mrf.mxu1 }
 0xc22   :  { %v3233_v47 = vrot.slane %v3153_v60, 2  ;;  %v3235_v41 = vrot.slane %v3224_v54, 2  ;;  %v7743_v54 = vld [vmem:[#allocation42_spill] sm:$0xff] }
 0xc23   :  { %v3155_v3 = vpop.f32.mrf.mxu0  ;;  %v3226_v44 = vpop.f32.mrf.mxu1 }
 0xc24   :  { %v3241_v7 = vadd.f32 %v3233_v47, %v6444_v45  ;;  %v3234_v55 = vrot.slane %v3155_v3, 2  ;;  %v3236_v42 = vrot.slane %v3226_v44, 2  ;;  %v3243_v63 = vadd.f32 %v3235_v41, %v6466_v5  ;;  %v6812_v44 = vld [vmem:[#allocation9 + $0xa8] sm:$0xff]  ;;  %v6821_v41 = vld [vmem:[#allocation9 + $0xb0] sm:$0xff] }
 0xc26   :  { %v4280_v52 = vmul.f32 -1.442695, %v3241_v7  ;;  %v3242_v57 = vadd.f32 %v3234_v55, %v6447_v39  ;;  %v3244_v51 = vadd.f32 %v3236_v42, %v7712_v50  ;;  %v7744_v55 = vld [vmem:[#allocation21_spill] sm:$0xff]  ;;  %v6815_v42 = vld [vmem:[#allocation9 + $0xb8] sm:$0xff] }
 0xc28   :  { %4717 = vpow2.f32 %v4280_v52  ;;  %v4281_v48 = vmul.f32 -1.442695, %v3242_v57  ;;  %v4282_v58 = vmul.f32 -1.442695, %v3244_v51  ;;  %v7745_v52 = vld [vmem:[#allocation24_spill] sm:$0xff] }
 0xc29   :  { %v6806_v57 = vld [vmem:[#allocation9 + $0xc0] sm:$0xff] }
 0xc2a   :  { %4719 = vpow2.f32 %v4281_v48  ;;  %v6809_v48 = vld [vmem:[#allocation9 + $0xd0] sm:$0xff]  ;;  %v6818_v51 = vld [vmem:[#allocation9 + $0xa0] sm:$0xff] }
 0xc2b   :  { %4721 = vpow2.f32 %v4282_v58  ;;  %v6824_v58 = vld [vmem:[#allocation9 + $0x88] sm:$0xff] }
 0xc2c   :  { %7746 = vst [vmem:[#allocation27_spill] sm:$0xff] %v6824_v58 }
 0xc35   :  { %v4718_v16 = vpop.eup %4717 }
 0xc36   :  { %v3248_v11 = vadd.f32 1.0, %v4718_v16  ;;  %v6827_v16 = vld [vmem:[#allocation9 + $0x98] sm:$0xff] }
 0xc37   :  { %v4720_v17 = vpop.eup %4719  ;;  %7747 = vst [vmem:[#allocation28_spill] sm:$0xff] %v6827_v16 }
 0xc38   :  { %4723 = vrcp.f32 %v3248_v11  ;;  %v3254_v45 = vadd.f32 1.0, %v4720_v17  ;;  %v4722_v39 = vpop.eup %4721  ;;  %v6833_v11 = vld [vmem:[#allocation9 + $0x90] sm:$0xff]  ;;  %v6836_v17 = vld [vmem:[#allocation9 + $0x68] sm:$0xff] }
 0xc39   :  { %4725 = vtanh.f32 %v3243_v63  ;;  %v3261_v1 = vadd.f32 1.0, %v4722_v39  ;;  %v6830_v63 = vld [vmem:[#allocation9 + $0x80] sm:$0xff]  ;;  %7749 = vst [vmem:[#allocation30_spill] sm:$0xff] %v6833_v11  ;;  %7750 = vst [vmem:[#allocation31_spill] sm:$0xff] %v6836_v17 }
 0xc3a   :  { %4727 = vrcp.f32 %v3254_v45  ;;  %7748 = vst [vmem:[#allocation29_spill] sm:$0xff] %v6830_v63  ;;  %v6839_v45 = vld [vmem:[#allocation9 + $0x78] sm:$0xff]  ;;  %v6842_v39 = vld [vmem:[#allocation9 + $0x60] sm:$0xff] }
 0xc3b   :  { %4729 = vrcp.f32 %v3261_v1  ;;  %7751 = vst [vmem:[#allocation32_spill] sm:$0xff] %v6839_v45  ;;  %7752 = vst [vmem:[#allocation33_spill] sm:$0xff] %v6842_v39  ;;  %v6857_v1 = vld [vmem:[#allocation9 + $0x50] sm:$0xff] }
 0xc3c   :  { %7757 = vst [vmem:[#allocation38_spill] sm:$0xff] %v6857_v1 }
 0xc45   :  { %v4724_v10 = vpop.eup %4723 }
 0xc46   :  { %v4726_v4 = vpop.eup %4725 }
 0xc47   :  { %v4728_v8 = vpop.eup %4727  ;;  %v3268_v50 = vmul.f32 %v4726_v4, %v4724_v10  ;;  %v6845_v10 = vld [vmem:[#allocation9 + $0x70] sm:$0xff]  ;;  %v6848_v4 = vld [vmem:[#allocation9 + $0x48] sm:$0xff] }
 0xc48   :  { %v3267_v62 = vmul.f32 %v4728_v8, %v3265_v6  ;;  %v4730_v5 = vpop.eup %4729  ;;  %7753 = vst [vmem:[#allocation34_spill] sm:$0xff] %v6845_v10  ;;  %7754 = vst [vmem:[#allocation35_spill] sm:$0xff] %v6848_v4  ;;  %v6851_v6 = vld [vmem:[#allocation9 + $0x58] sm:$0xff]  ;;  %v6854_v8 = vld [vmem:[#allocation9 + $0x40] sm:$0xff] }
 0xc49   :  { %7755 = vst [vmem:[#allocation36_spill] sm:$0xff] %v6851_v6  ;;  %7756 = vst [vmem:[#allocation37_spill] sm:$0xff] %v6854_v8 }
 0xc4a   :  { %v6767_v60 = vadd.f32 %v3268_v50, %v3267_v62  ;;  %v6860_v50 = vld [vmem:[#allocation9 + $0x28] sm:$0xff]  ;;  %v6863_v62 = vld [vmem:[#allocation9 + $0x38] sm:$0xff] }
 0xc4b   :  { %7758 = vst [vmem:[#allocation39_spill] sm:$0xff] %v6860_v50  ;;  %7759 = vst [vmem:[#allocation40_spill] sm:$0xff] %v6863_v62 }
 0xc4c   :  { %4731 = vtanh.f32 %v6767_v60 }
 0xc59   :  { %v4732_v47 = vpop.eup %4731 }
 0xc5a   :  { %v3271_v3 = vmul.f32 %v4732_v47, %v4730_v5  ;;  %v6866_v5 = vld [vmem:[#allocation9 + $0x20] sm:$0xff]  ;;  %v6869_v47 = vld [vmem:[#allocation9 + $0x30] sm:$0xff] }
 0xc5b   :  { %7760 = vst [vmem:[#allocation41_spill] sm:$0xff] %v6866_v5  ;;  %7761 = vst [vmem:[#allocation49_spill] sm:$0xff] %v6869_v47 }
 0xc5c   :  { %v3273_v7 = vrot.slane %v3271_v3, 6  ;;  %v6872_v3 = vld [vmem:[#allocation9 + $0x8] sm:$0xff] }
 0xc5d   :  { %7762 = vst [vmem:[#allocation43_spill] sm:$0xff] %v6872_v3 }
 0xc5e   :  { %3340 = vmatmul.mubr.f32.vlgmr.msra.gmra.mxu0 %v3273_v7  ;;  %3411 = vmatmul.mubr.f32.vlgmr.msra.gmra.mxu1 %v3273_v7  ;;  %v6875_v7 = vld [vmem:[#allocation9 + $0x18] sm:$0xff] }
 0xc5f   :  { %3449 = vmatpush1.msra.mxu0 %v6620_v61  ;;  %3520 = vmatpush1.msra.mxu1 %v6623_v25  ;;  %7763 = vst [vmem:[#allocation19_spill] sm:$0xff] %v6875_v7 }
 0xc60   :  { %3450 = vmatprep.subr.mxu0 %v6626_v2  ;;  %3521 = vmatprep.subr.mxu1 %v6629_v9 }
 0xc61   :  { %3451 = vmatpush1.msra.mxu0 %v6632_v18  ;;  %3522 = vmatpush1.msra.mxu1 %v6635_v20 }
 0xc62   :  { %3452 = vmatprep.subr.mxu0 %v6638_v21  ;;  %3523 = vmatprep.subr.mxu1 %v6641_v22 }
 0xc63   :  { %3453 = vmatpush1.msra.mxu0 %v6644_v56  ;;  %3524 = vmatpush1.msra.mxu1 %v6647_v26 }
 0xc64   :  { %3454 = vmatprep.subr.mxu0 %v6650_v27  ;;  %3525 = vmatprep.subr.mxu1 %v6653_v49 }
 0xc65   :  { %3455 = vmatpush1.msra.mxu0 %v6656_v28  ;;  %3526 = vmatpush1.msra.mxu1 %v6659_v29 }
 0xc66   :  { %3456 = vmatprep.subr.mxu0 %v6662_v43  ;;  %3527 = vmatprep.subr.mxu1 %v6665_v34 }
 0xc67   :  { %3457 = vmatpush1.msra.mxu0 %v6668_v35  ;;  %3528 = vmatpush1.msra.mxu1 %v6671_v40 }
 0xc68   :  { %3458 = vmatprep.subr.mxu0 %v6674_v15  ;;  %3529 = vmatprep.subr.mxu1 %v6677_v13 }
 0xc69   :  { %3459 = vmatpush1.msra.mxu0 %v6680_v24  ;;  %3530 = vmatpush1.msra.mxu1 %v6683_v37 }
 0xc6a   :  { %3460 = vmatprep.subr.mxu0 %v6686_v38  ;;  %3531 = vmatprep.subr.mxu1 %v6689_v23 }
 0xc6b   :  { %3461 = vmatpush1.msra.mxu0 %v6692_v33  ;;  %3532 = vmatpush1.msra.mxu1 %v6695_v59 }
 0xc6c   :  { %3462 = vmatprep.subr.mxu0 %v7742_v46  ;;  %3533 = vmatprep.subr.mxu1 %v7743_v54 }
 0xc6d   :  { %3463 = vmatpush1.msra.mxu0 %v7744_v55  ;;  %3534 = vmatpush1.msra.mxu1 %v7745_v52 }
 0xc6e   :  { %3464 = vmatprep.subr.mxu0 %v6710_v19  ;;  %3535 = vmatprep.subr.mxu1 %v6713_v14 }
 0xc6f   :  { %3465 = vmatpush1.msra.mxu0 %v6716_v36  ;;  %3536 = vmatpush1.msra.mxu1 %v6719_v32 }
 0xc70   :  { %3466 = vmatprep.subr.mxu0 %v6722_v31  ;;  %3537 = vmatprep.subr.mxu1 %v6725_v0 }
 0xc71   :  { %3467 = vmatpush1.msra.mxu0 %v6806_v57  ;;  %3538 = vmatpush1.msra.mxu1 %v6809_v48 }
 0xc72   :  { %3468 = vmatprep.subr.mxu0 %v6812_v44  ;;  %3539 = vmatprep.subr.mxu1 %v6815_v42 }
 0xc73   :  { %3469 = vmatpush1.msra.mxu0 %v6818_v51  ;;  %3540 = vmatpush1.msra.mxu1 %v6821_v41 }
 0xc74   :  { %3470 = vmatprep.subr.mxu0 %v6824_v58  ;;  %3541 = vmatprep.subr.mxu1 %v6827_v16 }
 0xc75   :  { %3471 = vmatpush1.msra.mxu0 %v6830_v63  ;;  %3542 = vmatpush1.msra.mxu1 %v6833_v11 }
 0xc76   :  { %3472 = vmatprep.subr.mxu0 %v6836_v17  ;;  %3543 = vmatprep.subr.mxu1 %v6839_v45  ;;  %v7773_v45 = vld [vmem:[#allocation17_spill] sm:$0xff]  ;;  %v7775_v17 = vld [vmem:[#allocation22_spill] sm:$0xff] }
 0xc77   :  { %3473 = vmatpush1.msra.mxu0 %v6842_v39  ;;  %3544 = vmatpush1.msra.mxu1 %v6845_v10  ;;  %v7772_v39 = vld [vmem:[#allocation18_spill] sm:$0xff] }
 0xc78   :  { %3474 = vmatprep.subr.mxu0 %v6848_v4  ;;  %3545 = vmatprep.subr.mxu1 %v6851_v6 }
 0xc79   :  { %3475 = vmatpush1.msra.mxu0 %v6854_v8  ;;  %3546 = vmatpush1.msra.mxu1 %v6857_v1  ;;  %v7769_v1 = vld [vmem:[#allocation46_spill] sm:$0xff]  ;;  %v7770_v8 = vld [vmem:[#allocation47_spill] sm:$0xff] }
 0xc7a   :  { %3476 = vmatprep.subr.mxu0 %v6860_v50  ;;  %3547 = vmatprep.subr.mxu1 %v6863_v62  ;;  %v6878_v50 = vld [vmem:[#allocation9] sm:$0xff]  ;;  %v6882_v62 = vld [vmem:[#allocation9 + $0x10] sm:$0xff] }
 0xc7b   :  { %3477 = vmatpush1.msra.mxu0 %v6866_v5  ;;  %3548 = vmatpush1.msra.mxu1 %v6869_v47  ;;  %7764 = vst [vmem:[#allocation20_spill] sm:$0xff] %v6878_v50  ;;  %7765 = vst [vmem:[#allocation23_spill] sm:$0xff] %v6882_v62  ;;  %v7767_v47 = vld [vmem:[#allocation45_spill] sm:$0xff] }
 0xc7c   :  { %3478 = vmatprep.subr.mxu0 %v6872_v3  ;;  %3549 = vmatprep.subr.mxu1 %v6875_v7  ;;  %v7766_v3 = vld [vmem:[#allocation44_spill] sm:$0xff] }
 0xc7d   :  { %3479 = vmatpush1.msra.mxu0 %v6878_v50  ;;  %3512 = vmatprep.mubr.f32.mxu0 %v7732_v12  ;;  %v6890_v5 = vadd.f32 %v7767_v47, %v7766_v3  ;;  %v6894_v50 = vadd.f32 %v7770_v8, %v7769_v1  ;;  %v6900_v47 = vadd.f32 %v7773_v45, %v7772_v39  ;;  %v7776_v8 = vld [vmem:[#allocation48_spill] sm:$0xff] }
 0xc7e   :  { %3550 = vmatpush1.msra.mxu1 %v6882_v62  ;;  %3583 = vmatprep.mubr.f32.mxu1 %v7732_v12  ;;  %v6905_v1 = vadd.f32 %v7776_v8, %v7775_v17 }
 0xc7f   :  { %3636 = vmatprep.subr.mxu0 %v6756_v30  ;;  %3707 = vmatprep.subr.mxu1 %v6759_v53  ;;  %7768 = vst [vmem:[#allocation42_spill] sm:$0xff] %v6890_v5  ;;  %7771 = vst [vmem:[#allocation21_spill] sm:$0xff] %v6894_v50 }
 0xc80   :  { %7774 = vst [vmem:[#allocation24_spill] sm:$0xff] %v6900_v47 }
 0xd1e   :  { %v3341_v7 = vpop.f32.mrf.mxu0  ;;  %v3412_v12 = vpop.f32.mrf.mxu1 }
 0xd1f   :  { %v3417_v6 = vadd.f32 %v3341_v7, %v6890_v5 }
 0xd20   :  { %v3343_v4 = vpop.f32.mrf.mxu0  ;;  %v3414_v53 = vpop.f32.mrf.mxu1 }
 0xd21   :  { %v4283_v10 = vmul.f32 -1.442695, %v3417_v6  ;;  %v3418_v62 = vadd.f32 %v3343_v4, %v6894_v50  ;;  %v3420_v3 = vadd.f32 %v3414_v53, %v6900_v47  ;;  %v3419_v6 = vadd.f32 %v3412_v12, %v6905_v1 }
 0xd22   :  { %v3441_v53 = vrot.slane %v6767_v60, 6  ;;  %v7777_v60 = vld [vmem:[#allocation31_spill] sm:$0xff] }
 0xd23   :  { %4733 = vpow2.f32 %v4283_v10  ;;  %v4284_v30 = vmul.f32 -1.442695, %v3418_v62  ;;  %v4285_v7 = vmul.f32 -1.442695, %v3420_v3 }
 0xd25   :  { %4735 = vpow2.f32 %v4284_v30 }
 0xd26   :  { %4737 = vpow2.f32 %v4285_v7 }
 0xd30   :  { %v4734_v5 = vpop.eup %4733 }
 0xd31   :  { %v3424_v4 = vadd.f32 1.0, %v4734_v5 }
 0xd32   :  { %v4736_v10 = vpop.eup %4735 }
 0xd33   :  { %4739 = vrcp.f32 %v3424_v4  ;;  %v3430_v30 = vadd.f32 1.0, %v4736_v10  ;;  %v4738_v62 = vpop.eup %4737  ;;  %v7781_v4 = vld [vmem:[#allocation35_spill] sm:$0xff]  ;;  %v7782_v10 = vld [vmem:[#allocation36_spill] sm:$0xff] }
 0xd34   :  { %4741 = vtanh.f32 %v3419_v6  ;;  %v3437_v50 = vadd.f32 1.0, %v4738_v62  ;;  %v7780_v6 = vld [vmem:[#allocation34_spill] sm:$0xff] }
 0xd35   :  { %4743 = vrcp.f32 %v3430_v30  ;;  %v7783_v30 = vld [vmem:[#allocation37_spill] sm:$0xff]  ;;  %v7784_v62 = vld [vmem:[#allocation38_spill] sm:$0xff] }
 0xd36   :  { %4745 = vrcp.f32 %v3437_v50  ;;  %v7778_v50 = vld [vmem:[#allocation32_spill] sm:$0xff] }
 0xd40   :  { %v4740_v45 = vpop.eup %4739 }
 0xd41   :  { %v4742_v39 = vpop.eup %4741 }
 0xd42   :  { %v4744_v47 = vpop.eup %4743  ;;  %v3444_v17 = vmul.f32 %v4742_v39, %v4740_v45  ;;  %v7785_v45 = vld [vmem:[#allocation39_spill] sm:$0xff]  ;;  %v7786_v39 = vld [vmem:[#allocation40_spill] sm:$0xff] }
 0xd43   :  { %v3443_v8 = vmul.f32 %v4744_v47, %v3441_v53  ;;  %v4746_v12 = vpop.eup %4745  ;;  %v7779_v47 = vld [vmem:[#allocation33_spill] sm:$0xff] }
 0xd44   :  { %v7787_v53 = vld [vmem:[#allocation41_spill] sm:$0xff] }
 0xd45   :  { %v6909_v3 = vadd.f32 %v3444_v17, %v3443_v8  ;;  %v7788_v17 = vld [vmem:[#allocation49_spill] sm:$0xff]  ;;  %v7789_v8 = vld [vmem:[#allocation43_spill] sm:$0xff] }
 0xd47   :  { %4747 = vtanh.f32 %v6909_v3 }
 0xd54   :  { %v4748_v5 = vpop.eup %4747 }
 0xd55   :  { %v3447_v7 = vmul.f32 %v4748_v5, %v4746_v12  ;;  %v7790_v12 = vld [vmem:[#allocation19_spill] sm:$0xff]  ;;  %v7791_v5 = vld [vmem:[#allocation20_spill] sm:$0xff] }
 0xd57   :  { %3513 = vmatmul.mubr.f32.vlgmr.msra.gmra.mxu0 %v3447_v7  ;;  %3584 = vmatmul.mubr.f32.vlgmr.msra.gmra.mxu1 %v3447_v7  ;;  %v7792_v7 = vmov 0.0  }
 0xd58   :  { %3637 = vmatpush1.msra.mxu0 %v6620_v61  ;;  %3708 = vmatpush1.msra.mxu1 %v6623_v25 }
 0xd59   :  { %3638 = vmatprep.subr.mxu0 %v6626_v2  ;;  %3709 = vmatprep.subr.mxu1 %v6629_v9 }
 0xd5a   :  { %3639 = vmatpush1.msra.mxu0 %v6632_v18  ;;  %3710 = vmatpush1.msra.mxu1 %v6635_v20 }
 0xd5b   :  { %3640 = vmatprep.subr.mxu0 %v6638_v21  ;;  %3711 = vmatprep.subr.mxu1 %v6641_v22 }
 0xd5c   :  { %3641 = vmatpush1.msra.mxu0 %v6644_v56  ;;  %3712 = vmatpush1.msra.mxu1 %v6647_v26 }
 0xd5d   :  { %3642 = vmatprep.subr.mxu0 %v6650_v27  ;;  %3713 = vmatprep.subr.mxu1 %v6653_v49 }
 0xd5e   :  { %3643 = vmatpush1.msra.mxu0 %v6656_v28  ;;  %3714 = vmatpush1.msra.mxu1 %v6659_v29 }
 0xd5f   :  { %3644 = vmatprep.subr.mxu0 %v6662_v43  ;;  %3715 = vmatprep.subr.mxu1 %v6665_v34 }
 0xd60   :  { %3645 = vmatpush1.msra.mxu0 %v6668_v35  ;;  %3716 = vmatpush1.msra.mxu1 %v6671_v40 }
 0xd61   :  { %3646 = vmatprep.subr.mxu0 %v6674_v15  ;;  %3717 = vmatprep.subr.mxu1 %v6677_v13 }
 0xd62   :  { %3647 = vmatpush1.msra.mxu0 %v6680_v24  ;;  %3718 = vmatpush1.msra.mxu1 %v6683_v37 }
 0xd63   :  { %3648 = vmatprep.subr.mxu0 %v6686_v38  ;;  %3719 = vmatprep.subr.mxu1 %v6689_v23 }
 0xd64   :  { %3649 = vmatpush1.msra.mxu0 %v6692_v33  ;;  %3720 = vmatpush1.msra.mxu1 %v6695_v59 }
 0xd65   :  { %3650 = vmatprep.subr.mxu0 %v7742_v46  ;;  %3721 = vmatprep.subr.mxu1 %v7743_v54 }
 0xd66   :  { %3651 = vmatpush1.msra.mxu0 %v7744_v55  ;;  %3722 = vmatpush1.msra.mxu1 %v7745_v52 }
 0xd67   :  { %3652 = vmatprep.subr.mxu0 %v6710_v19  ;;  %3723 = vmatprep.subr.mxu1 %v6713_v14 }
 0xd68   :  { %3653 = vmatpush1.msra.mxu0 %v6716_v36  ;;  %3724 = vmatpush1.msra.mxu1 %v6719_v32 }
 0xd69   :  { %3654 = vmatprep.subr.mxu0 %v6722_v31  ;;  %3725 = vmatprep.subr.mxu1 %v6725_v0 }
 0xd6a   :  { %3655 = vmatpush1.msra.mxu0 %v6806_v57  ;;  %3726 = vmatpush1.msra.mxu1 %v6809_v48 }
 0xd6b   :  { %3656 = vmatprep.subr.mxu0 %v6812_v44  ;;  %3727 = vmatprep.subr.mxu1 %v6815_v42 }
 0xd6c   :  { %3657 = vmatpush1.msra.mxu0 %v6818_v51  ;;  %3728 = vmatpush1.msra.mxu1 %v6821_v41 }
 0xd6d   :  { %3658 = vmatprep.subr.mxu0 %v6824_v58  ;;  %3729 = vmatprep.subr.mxu1 %v6827_v16 }
 0xd6e   :  { %3659 = vmatpush1.msra.mxu0 %v6830_v63  ;;  %3730 = vmatpush1.msra.mxu1 %v6833_v11 }
 0xd6f   :  { %3660 = vmatprep.subr.mxu0 %v7777_v60  ;;  %3731 = vmatprep.subr.mxu1 %v7778_v50 }
 0xd70   :  { %3661 = vmatpush1.msra.mxu0 %v7779_v47  ;;  %3732 = vmatpush1.msra.mxu1 %v7780_v6  ;;  %v7797_v47 = vld [vmem:[#allocation21_spill] sm:$0xff] }
 0xd71   :  { %3662 = vmatprep.subr.mxu0 %v7781_v4  ;;  %3733 = vmatprep.subr.mxu1 %v7782_v10  ;;  %v7793_v10 = vld [vmem:[#allocation23_spill] sm:$0xff] }
 0xd72   :  { %3663 = vmatpush1.msra.mxu0 %v7783_v30  ;;  %3734 = vmatpush1.msra.mxu1 %v7784_v62  ;;  %v7794_v62 = vld [vmem:[#allocation25_spill] sm:$0xff] }
 0xd73   :  { %3664 = vmatprep.subr.mxu0 %v7785_v45  ;;  %3735 = vmatprep.subr.mxu1 %v7786_v39  ;;  %v7795_v45 = vld [vmem:[#allocation26_spill] sm:$0xff] }
 0xd74   :  { %3665 = vmatpush1.msra.mxu0 %v7787_v53  ;;  %3736 = vmatpush1.msra.mxu1 %v7788_v17  ;;  %v7796_v17 = vld [vmem:[#allocation42_spill] sm:$0xff] }
 0xd75   :  { %3666 = vmatprep.subr.mxu0 %v7789_v8  ;;  %3737 = vmatprep.subr.mxu1 %v7790_v12 }
 0xd76   :  { %3667 = vmatpush1.msra.mxu0 %v7791_v5  ;;  %3700 = vmatprep.mubr.f32.mxu0 %v7792_v7 }
 0xd77   :  { %3738 = vmatpush1.msra.mxu1 %v7793_v10  ;;  %3771 = vmatprep.mubr.f32.mxu1 %v7792_v7  ;;  %v7798_v7 = vld [vmem:[#allocation24_spill] sm:$0xff] }
 0xd78   :  { %3824 = vmatprep.subr.mxu0 %v7794_v62  ;;  %3895 = vmatprep.subr.mxu1 %v7795_v45 }
 0xe17   :  { %v3514_v39 = vpop.f32.mrf.mxu0  ;;  %v3585_v8 = vpop.f32.mrf.mxu1 }
 0xe18   :  { %v3594_v53 = vrot.slane %v3514_v39, 6  ;;  %v3596_v62 = vrot.slane %v3585_v8, 6 }
 0xe19   :  { %v3516_v30 = vpop.f32.mrf.mxu0  ;;  %v3587_v60 = vpop.f32.mrf.mxu1 }
 0xe1a   :  { %v3602_v4 = vadd.f32 %v3594_v53, %v7796_v17  ;;  %v3595_v6 = vrot.slane %v3516_v30, 6  ;;  %v3597_v10 = vrot.slane %v3587_v60, 6  ;;  %v3604_v39 = vadd.f32 %v3596_v62, %v6905_v1 }
 0xe1c   :  { %v4286_v12 = vmul.f32 -1.442695, %v3602_v4  ;;  %v3603_v5 = vadd.f32 %v3595_v6, %v7797_v47  ;;  %v3605_v11 = vadd.f32 %v3597_v10, %v7798_v7 }
 0xe1e   :  { %4749 = vpow2.f32 %v4286_v12  ;;  %v4287_v50 = vmul.f32 -1.442695, %v3603_v5  ;;  %v4288_v63 = vmul.f32 -1.442695, %v3605_v11 }
 0xe20   :  { %4751 = vpow2.f32 %v4287_v50  ;;  %v3626_v50 = vrot.slane %v6909_v3, 6 }
 0xe21   :  { %4753 = vpow2.f32 %v4288_v63 }
 0xe2b   :  { %v4750_v45 = vpop.eup %4749 }
 0xe2c   :  { %v3609_v16 = vadd.f32 1.0, %v4750_v45 }
 0xe2d   :  { %v4752_v58 = vpop.eup %4751 }
 0xe2e   :  { %4755 = vrcp.f32 %v3609_v16  ;;  %v3615_v30 = vadd.f32 1.0, %v4752_v58  ;;  %v4754_v6 = vpop.eup %4753 }
 0xe2f   :  { %4757 = vtanh.f32 %v3604_v39  ;;  %v3622_v12 = vadd.f32 1.0, %v4754_v6 }
 0xe30   :  { %4759 = vrcp.f32 %v3615_v30 }
 0xe31   :  { %4761 = vrcp.f32 %v3622_v12 }
 0xe3b   :  { %v4756_v4 = vpop.eup %4755 }
 0xe3c   :  { %v4758_v53 = vpop.eup %4757 }
 0xe3d   :  { %v4760_v60 = vpop.eup %4759  ;;  %v3629_v10 = vmul.f32 %v4758_v53, %v4756_v4 }
 0xe3e   :  { %v3628_v8 = vmul.f32 %v4760_v60, %v3626_v50  ;;  %v4762_v5 = vpop.eup %4761 }
 0xe40   :  { %v6983_v11 = vadd.f32 %v3629_v10, %v3628_v8  ;;  %v4024_v10 = vld [vmem:[#allocation11 + $0x78] sm:$0xff]  ;;  %v4023_v8 = vld [vmem:[#allocation11 + $0x70] sm:$0xff] }
 0xe42   :  { %4763 = vtanh.f32 %v6983_v11  ;;  %v3814_v62 = vrot.slane %v6983_v11, 6  ;;  %v4022_v11 = vld [vmem:[#allocation11 + $0x68] sm:$0xff] }
 0xe4f   :  { %v4764_v63 = vpop.eup %4763 }
 0xe50   :  { %v3632_v16 = vmul.f32 %v4764_v63, %v4762_v5  ;;  %v4021_v5 = vld [vmem:[#allocation11 + $0x60] sm:$0xff]  ;;  %v4020_v63 = vld [vmem:[#allocation11 + $0x58] sm:$0xff] }
 0xe52   :  { %v3634_v58 = vrot.slane %v3632_v16, 2  ;;  %v4019_v16 = vld [vmem:[#allocation11 + $0x50] sm:$0xff] }
 0xe54   :  { %3701 = vmatmul.mubr.f32.vlgmr.msra.gmra.mxu0 %v3634_v58  ;;  %3772 = vmatmul.mubr.f32.vlgmr.msra.gmra.mxu1 %v3634_v58  ;;  %v4018_v58 = vld [vmem:[#allocation11 + $0x48] sm:$0xff] }
 0xe55   :  { %3825 = vmatpush1.msra.mxu0 %v6620_v61  ;;  %3896 = vmatpush1.msra.mxu1 %v6623_v25  ;;  %v7799_v61 = vld [vmem:[#allocation27_spill] sm:$0xff]  ;;  %v7800_v25 = vld [vmem:[#allocation28_spill] sm:$0xff] }
 0xe56   :  { %3826 = vmatprep.subr.mxu0 %v6626_v2  ;;  %3897 = vmatprep.subr.mxu1 %v6629_v9  ;;  %v7801_v2 = vld [vmem:[#allocation29_spill] sm:$0xff]  ;;  %v7802_v9 = vld [vmem:[#allocation30_spill] sm:$0xff] }
 0xe57   :  { %3827 = vmatpush1.msra.mxu0 %v6632_v18  ;;  %3898 = vmatpush1.msra.mxu1 %v6635_v20  ;;  %v7803_v18 = vld [vmem:[#allocation31_spill] sm:$0xff]  ;;  %v7804_v20 = vld [vmem:[#allocation32_spill] sm:$0xff] }
 0xe58   :  { %3828 = vmatprep.subr.mxu0 %v6638_v21  ;;  %3899 = vmatprep.subr.mxu1 %v6641_v22  ;;  %v7805_v21 = vld [vmem:[#allocation33_spill] sm:$0xff]  ;;  %v7806_v22 = vld [vmem:[#allocation34_spill] sm:$0xff] }
 0xe59   :  { %3829 = vmatpush1.msra.mxu0 %v6644_v56  ;;  %3900 = vmatpush1.msra.mxu1 %v6647_v26  ;;  %v7807_v56 = vld [vmem:[#allocation35_spill] sm:$0xff]  ;;  %v7808_v26 = vld [vmem:[#allocation36_spill] sm:$0xff] }
 0xe5a   :  { %3830 = vmatprep.subr.mxu0 %v6650_v27  ;;  %3901 = vmatprep.subr.mxu1 %v6653_v49  ;;  %v7809_v27 = vld [vmem:[#allocation37_spill] sm:$0xff]  ;;  %v7810_v49 = vld [vmem:[#allocation38_spill] sm:$0xff] }
 0xe5b   :  { %3831 = vmatpush1.msra.mxu0 %v6656_v28  ;;  %3902 = vmatpush1.msra.mxu1 %v6659_v29  ;;  %v7811_v28 = vld [vmem:[#allocation39_spill] sm:$0xff]  ;;  %v7812_v29 = vld [vmem:[#allocation40_spill] sm:$0xff] }
 0xe5c   :  { %3832 = vmatprep.subr.mxu0 %v6662_v43  ;;  %3903 = vmatprep.subr.mxu1 %v6665_v34  ;;  %v7813_v43 = vld [vmem:[#allocation41_spill] sm:$0xff] }
 0xe5d   :  { %3833 = vmatpush1.msra.mxu0 %v6668_v35  ;;  %3904 = vmatpush1.msra.mxu1 %v6671_v40  ;;  %v7814_v34 = vld [vmem:[#allocation49_spill] sm:$0xff]  ;;  %v7815_v35 = vld [vmem:[#allocation43_spill] sm:$0xff] }
 0xe5e   :  { %3834 = vmatprep.subr.mxu0 %v6674_v15  ;;  %3905 = vmatprep.subr.mxu1 %v6677_v13  ;;  %v7816_v40 = vld [vmem:[#allocation19_spill] sm:$0xff]  ;;  %v7817_v15 = vld [vmem:[#allocation20_spill] sm:$0xff]  ;;  %v7818_v13 = vmov 0.0  }
 0xe5f   :  { %3835 = vmatpush1.msra.mxu0 %v6680_v24  ;;  %3906 = vmatpush1.msra.mxu1 %v6683_v37  ;;  %v7819_v24 = vld [vmem:[#allocation23_spill] sm:$0xff] }
 0xe60   :  { %3836 = vmatprep.subr.mxu0 %v6686_v38  ;;  %3907 = vmatprep.subr.mxu1 %v6689_v23 }
 0xe61   :  { %3837 = vmatpush1.msra.mxu0 %v6692_v33  ;;  %3908 = vmatpush1.msra.mxu1 %v6695_v59 }
 0xe62   :  { %3838 = vmatprep.subr.mxu0 %v7742_v46  ;;  %3909 = vmatprep.subr.mxu1 %v7743_v54 }
 0xe63   :  { %3839 = vmatpush1.msra.mxu0 %v7744_v55  ;;  %3910 = vmatpush1.msra.mxu1 %v7745_v52 }
 0xe64   :  { %3840 = vmatprep.subr.mxu0 %v6710_v19  ;;  %3911 = vmatprep.subr.mxu1 %v6713_v14 }
 0xe65   :  { %3841 = vmatpush1.msra.mxu0 %v6716_v36  ;;  %3912 = vmatpush1.msra.mxu1 %v6719_v32 }
 0xe66   :  { %3842 = vmatprep.subr.mxu0 %v6722_v31  ;;  %3913 = vmatprep.subr.mxu1 %v6725_v0 }
 0xe67   :  { %3843 = vmatpush1.msra.mxu0 %v6806_v57  ;;  %3914 = vmatpush1.msra.mxu1 %v6809_v48 }
 0xe68   :  { %3844 = vmatprep.subr.mxu0 %v6812_v44  ;;  %3915 = vmatprep.subr.mxu1 %v6815_v42 }
 0xe69   :  { %3845 = vmatpush1.msra.mxu0 %v6818_v51  ;;  %3916 = vmatpush1.msra.mxu1 %v6821_v41 }
 0xe6a   :  { %3846 = vmatprep.subr.mxu0 %v7799_v61  ;;  %3917 = vmatprep.subr.mxu1 %v7800_v25  ;;  %v4017_v61 = vld [vmem:[#allocation11 + $0x40] sm:$0xff]  ;;  %v4016_v25 = vld [vmem:[#allocation11 + $0x38] sm:$0xff] }
 0xe6b   :  { %3847 = vmatpush1.msra.mxu0 %v7801_v2  ;;  %3918 = vmatpush1.msra.mxu1 %v7802_v9  ;;  %v4015_v2 = vld [vmem:[#allocation11 + $0x30] sm:$0xff]  ;;  %v4014_v9 = vld [vmem:[#allocation11 + $0x28] sm:$0xff] }
 0xe6c   :  { %3848 = vmatprep.subr.mxu0 %v7803_v18  ;;  %3919 = vmatprep.subr.mxu1 %v7804_v20  ;;  %v4013_v18 = vld [vmem:[#allocation11 + $0x20] sm:$0xff]  ;;  %v4012_v20 = vld [vmem:[#allocation11 + $0x18] sm:$0xff] }
 0xe6d   :  { %3849 = vmatpush1.msra.mxu0 %v7805_v21  ;;  %3920 = vmatpush1.msra.mxu1 %v7806_v22  ;;  %v4011_v21 = vld [vmem:[#allocation11 + $0x10] sm:$0xff]  ;;  %v4010_v22 = vld [vmem:[#allocation11 + $0x8] sm:$0xff] }
 0xe6e   :  { %3850 = vmatprep.subr.mxu0 %v7807_v56  ;;  %3921 = vmatprep.subr.mxu1 %v7808_v26  ;;  %v4009_v56 = vld [vmem:[#allocation11] sm:$0xff]  ;;  %v4121_v26 = vld [vmem:[%s7164_s10 + $0x78] sm:$0xff] }
 0xe6f   :  { %3851 = vmatpush1.msra.mxu0 %v7809_v27  ;;  %3922 = vmatpush1.msra.mxu1 %v7810_v49  ;;  %v4120_v27 = vld [vmem:[%s7164_s10 + $0x70] sm:$0xff]  ;;  %v4119_v49 = vld [vmem:[%s7164_s10 + $0x68] sm:$0xff] }
 0xe70   :  { %3852 = vmatprep.subr.mxu0 %v7811_v28  ;;  %3923 = vmatprep.subr.mxu1 %v7812_v29  ;;  %v4118_v28 = vld [vmem:[%s7164_s10 + $0x60] sm:$0xff]  ;;  %v4117_v29 = vld [vmem:[%s7164_s10 + $0x58] sm:$0xff] }
 0xe71   :  { %3853 = vmatpush1.msra.mxu0 %v7813_v43  ;;  %3924 = vmatpush1.msra.mxu1 %v7814_v34  ;;  %v4116_v43 = vld [vmem:[%s7164_s10 + $0x50] sm:$0xff]  ;;  %v4115_v34 = vld [vmem:[%s7164_s10 + $0x48] sm:$0xff] }
 0xe72   :  { %3854 = vmatprep.subr.mxu0 %v7815_v35  ;;  %3925 = vmatprep.subr.mxu1 %v7816_v40  ;;  %v4114_v35 = vld [vmem:[%s7164_s10 + $0x40] sm:$0xff]  ;;  %v4113_v40 = vld [vmem:[%s7164_s10 + $0x38] sm:$0xff] }
 0xe73   :  { %3855 = vmatpush1.msra.mxu0 %v7817_v15  ;;  %3888 = vmatprep.mubr.f32.mxu0 %v7818_v13  ;;  %v4112_v15 = vld [vmem:[%s7164_s10 + $0x30] sm:$0xff] }
 0xe74   :  { %3926 = vmatpush1.msra.mxu1 %v7819_v24  ;;  %3959 = vmatprep.mubr.f32.mxu1 %v7818_v13  ;;  %v4111_v24 = vld [vmem:[%s7164_s10 + $0x28] sm:$0xff] }
 0xe75   :  { %4331 = vmatprep.subr.mxu0 %v7818_v13  ;;  %4366 = vmatprep.subr.mxu1 %v7818_v13 }
 0xf14   :  { %v3702_v37 = vpop.f32.mrf.mxu0  ;;  %v3773_v59 = vpop.f32.mrf.mxu1 }
 0xf15   :  { %v3782_v38 = vrot.slane %v3702_v37, 4  ;;  %v3784_v54 = vrot.slane %v3773_v59, 4  ;;  %v4110_v37 = vld [vmem:[%s7164_s10 + $0x20] sm:$0xff] }
 0xf16   :  { %v3704_v23 = vpop.f32.mrf.mxu0  ;;  %v3775_v19 = vpop.f32.mrf.mxu1 }
 0xf17   :  { %v3790_v33 = vadd.f32 %v3782_v38, %v7796_v17  ;;  %v3783_v36 = vrot.slane %v3704_v23, 4  ;;  %v3785_v14 = vrot.slane %v3775_v19, 4  ;;  %v3792_v57 = vadd.f32 %v3784_v54, %v6905_v1  ;;  %v4109_v38 = vld [vmem:[%s7164_s10 + $0x18] sm:$0xff] }
 0xf19   :  { %v4289_v32 = vmul.f32 -1.442695, %v3790_v33  ;;  %v3791_v31 = vadd.f32 %v3783_v36, %v7797_v47  ;;  %v3793_v46 = vadd.f32 %v3785_v14, %v7798_v7 }
 0xf1b   :  { %4765 = vpow2.f32 %v4289_v32  ;;  %v4290_v0 = vmul.f32 -1.442695, %v3791_v31  ;;  %v4291_v55 = vmul.f32 -1.442695, %v3793_v46 }
 0xf1d   :  { %4767 = vpow2.f32 %v4290_v0 }
 0xf1e   :  { %4769 = vpow2.f32 %v4291_v55 }
 0xf28   :  { %v4766_v52 = vpop.eup %4765 }
 0xf29   :  { %v3797_v48 = vadd.f32 1.0, %v4766_v52 }
 0xf2a   :  { %v4768_v44 = vpop.eup %4767 }
 0xf2b   :  { %4771 = vrcp.f32 %v3797_v48  ;;  %v3803_v42 = vadd.f32 1.0, %v4768_v44  ;;  %v4770_v51 = vpop.eup %4769 }
 0xf2c   :  { %4773 = vtanh.f32 %v3792_v57  ;;  %v3810_v39 = vadd.f32 1.0, %v4770_v51 }
 0xf2d   :  { %4775 = vrcp.f32 %v3803_v42 }
 0xf2e   :  { %4777 = vrcp.f32 %v3810_v39 }
 0xf38   :  { %v4772_v41 = vpop.eup %4771 }
 0xf39   :  { %v4774_v3 = vpop.eup %4773 }
 0xf3a   :  { %v4776_v45 = vpop.eup %4775  ;;  %v3817_v30 = vmul.f32 %v4774_v3, %v4772_v41 }
 0xf3b   :  { %v3816_v6 = vmul.f32 %v4776_v45, %v3814_v62  ;;  %v4778_v53 = vpop.eup %4777 }
 0xf3d   :  { %v7057_v4 = vadd.f32 %v3817_v30, %v3816_v6 }
 0xf3f   :  { %4779 = vtanh.f32 %v7057_v4  ;;  %v4002_v62 = vrot.slane %v7057_v4, 6  ;;  %v4107_v4 = vld [vmem:[%s7164_s10 + $0x8] sm:$0xff] }
 0xf4c   :  { %v4780_v50 = vpop.eup %4779 }
 0xf4d   :  { %v3820_v60 = vmul.f32 %v4780_v50, %v4778_v53 }
 0xf4f   :  { %v3822_v12 = vrot.slane %v3820_v60, 4 }
 0xf51   :  { %3889 = vmatmul.mubr.f32.vlgmr.msra.gmra.mxu0 %v3822_v12  ;;  %3960 = vmatmul.mubr.f32.vlgmr.msra.gmra.mxu1 %v3822_v12  ;;  %v4108_v12 = vld [vmem:[%s7164_s10 + $0x10] sm:$0xff] }
 0xf52   :  { %4332 = vmatpush3.msra.mxu0 %v4024_v10  ;;  %4363 = vmatprep.mubr.msk.f32.mxu0 %vm5063_vm8, %v7818_v13  ;;  %v4106_v10 = vld [vmem:[%s7164_s10] sm:$0xff]  ;;  %s5025_s10 = scalar_lea.vmem %s4208_s5, 32 }
 0xf53   :  { %4333 = vmatprep.subr.mxu0 %v7818_v13  ;;  %4398 = vmatprep.mubr.msk.f32.mxu1 %vm5063_vm8, %v7818_v13  ;;  %p5026_p11 = scmp.ne.s32.totalorder %s4208_s5, %s5025_s10  ;;  %p5031_p13 = scmp.lt.s32.totalorder %s5025_s10, %s5025_s10 }
 0xf54   :  { %4334 = vmatpush3.msra.mxu0 %v4023_v8  ;;  %4367 = vmatpush3.msra.mxu1 %v4121_v26  ;;  %v4295_v8 = vld [vmem:[%s7163_s9] ss:$0 sm:$0xff] }
 0xf55   :  { %4335 = vmatprep.subr.mxu0 %v7818_v13  ;;  %4368 = vmatprep.subr.mxu1 %v7818_v13  ;;  %p5032_p0 = por %p5031_p13, %p5030_p12 }
 0xf56   :  { %4336 = vmatpush3.msra.mxu0 %v4022_v11  ;;  %4369 = vmatpush3.msra.mxu1 %v4120_v27 }
 0xf57   :  { %4337 = vmatprep.subr.mxu0 %v7818_v13  ;;  %4370 = vmatprep.subr.mxu1 %v7818_v13  ;;  %p5033_p1 = pnand %p5032_p0, %p5026_p11 }
 0xf58   :  { %4338 = vmatpush3.msra.mxu0 %v4021_v5  ;;  %4371 = vmatpush3.msra.mxu1 %v4119_v49 }
 0xf59   :  { %4339 = vmatprep.subr.mxu0 %v7818_v13  ;;  %4372 = vmatprep.subr.mxu1 %v7818_v13 }
 0xf5a   :  { %4340 = vmatpush3.msra.mxu0 %v4020_v63  ;;  %4373 = vmatpush3.msra.mxu1 %v4118_v28 }
 0xf5b   :  { %4341 = vmatprep.subr.mxu0 %v7818_v13  ;;  %4374 = vmatprep.subr.mxu1 %v7818_v13 }
 0xf5c   :  { %4342 = vmatpush3.msra.mxu0 %v4019_v16  ;;  %4375 = vmatpush3.msra.mxu1 %v4117_v29 }
 0xf5d   :  { %4343 = vmatprep.subr.mxu0 %v7818_v13  ;;  %4376 = vmatprep.subr.mxu1 %v7818_v13 }
 0xf5e   :  { %4344 = vmatpush3.msra.mxu0 %v4018_v58  ;;  %4377 = vmatpush3.msra.mxu1 %v4116_v43  ;;  %v4296_v58 = vld [vmem:[%s7165_s11] ss:$0 sm:$0xff] }
 0xf5f   :  { %4345 = vmatprep.subr.mxu0 %v7818_v13  ;;  %4378 = vmatprep.subr.mxu1 %v7818_v13 }
 0xf60   :  { %4346 = vmatpush3.msra.mxu0 %v4017_v61  ;;  %4379 = vmatpush3.msra.mxu1 %v4115_v34 }
 0xf61   :  { %4347 = vmatprep.subr.mxu0 %v7818_v13  ;;  %4380 = vmatprep.subr.mxu1 %v7818_v13 }
 0xf62   :  { %4348 = vmatpush3.msra.mxu0 %v4016_v25  ;;  %4381 = vmatpush3.msra.mxu1 %v4114_v35 }
 0xf63   :  { %4349 = vmatprep.subr.mxu0 %v7818_v13  ;;  %4382 = vmatprep.subr.mxu1 %v7818_v13 }
 0xf64   :  { %4350 = vmatpush3.msra.mxu0 %v4015_v2  ;;  %4383 = vmatpush3.msra.mxu1 %v4113_v40 }
 0xf65   :  { %4351 = vmatprep.subr.mxu0 %v7818_v13  ;;  %4384 = vmatprep.subr.mxu1 %v7818_v13 }
 0xf66   :  { %4352 = vmatpush3.msra.mxu0 %v4014_v9  ;;  %4385 = vmatpush3.msra.mxu1 %v4112_v15 }
 0xf67   :  { %4353 = vmatprep.subr.mxu0 %v7818_v13  ;;  %4386 = vmatprep.subr.mxu1 %v7818_v13 }
 0xf68   :  { %4354 = vmatpush3.msra.mxu0 %v4013_v18  ;;  %4387 = vmatpush3.msra.mxu1 %v4111_v24 }
 0xf69   :  { %4355 = vmatprep.subr.mxu0 %v7818_v13  ;;  %4388 = vmatprep.subr.mxu1 %v7818_v13 }
 0xf6a   :  { %4356 = vmatpush3.msra.mxu0 %v4012_v20  ;;  %4389 = vmatpush3.msra.mxu1 %v4110_v37 }
 0xf6b   :  { %4357 = vmatprep.subr.mxu0 %v7818_v13  ;;  %4390 = vmatprep.subr.mxu1 %v7818_v13 }
 0xf6c   :  { %4358 = vmatpush3.msra.mxu0 %v4011_v21  ;;  %4391 = vmatpush3.msra.mxu1 %v4109_v38 }
 0xf6d   :  { %4359 = vmatprep.subr.mxu0 %v7818_v13  ;;  %4392 = vmatprep.subr.mxu1 %v7818_v13 }
 0xf6e   :  { %4360 = vmatpush3.msra.mxu0 %v4010_v22  ;;  %4393 = vmatpush3.msra.mxu1 %v4108_v12 }
 0xf6f   :  { %4361 = vmatprep.subr.mxu0 %v7818_v13  ;;  %4394 = vmatprep.subr.mxu1 %v7818_v13 }
 0xf70   :  { %4362 = vmatpush3.msra.mxu0 %v4009_v56  ;;  %4395 = vmatpush3.msra.mxu1 %v4107_v4 }
 0xf71   :  { %4396 = vmatprep.subr.mxu1 %v7818_v13 }
 0xf72   :  { %4397 = vmatpush3.msra.mxu1 %v4106_v10 }
0x1011   :  { %v3890_v23 = vpop.f32.mrf.mxu0  ;;  %v3961_v32 = vpop.f32.mrf.mxu1 }
0x1012   :  { %v3970_v33 = vrot.slane %v3890_v23, 2  ;;  %v3972_v52 = vrot.slane %v3961_v32, 2 }
0x1013   :  { %v3892_v59 = vpop.f32.mrf.mxu0  ;;  %v3963_v46 = vpop.f32.mrf.mxu1 }
0x1014   :  { %v3978_v36 = vadd.f32 %v3970_v33, %v7796_v17  ;;  %v3971_v31 = vrot.slane %v3892_v59, 2  ;;  %v3973_v54 = vrot.slane %v3963_v46, 2  ;;  %v3980_v44 = vadd.f32 %v3972_v52, %v6905_v1 }
0x1016   :  { %v4292_v0 = vmul.f32 -1.442695, %v3978_v36  ;;  %v3979_v19 = vadd.f32 %v3971_v31, %v7797_v47  ;;  %v3981_v55 = vadd.f32 %v3973_v54, %v7798_v7 }
0x1018   :  { %4781 = vpow2.f32 %v4292_v0  ;;  %v4293_v14 = vmul.f32 -1.442695, %v3979_v19  ;;  %v4294_v57 = vmul.f32 -1.442695, %v3981_v55 }
0x101a   :  { %4783 = vpow2.f32 %v4293_v14 }
0x101b   :  { %4785 = vpow2.f32 %v4294_v57 }
0x1025   :  { %v4782_v48 = vpop.eup %4781 }
0x1026   :  { %v3985_v42 = vadd.f32 1.0, %v4782_v48 }
0x1027   :  { %v4784_v51 = vpop.eup %4783 }
0x1028   :  { %4787 = vrcp.f32 %v3985_v42  ;;  %v3991_v17 = vadd.f32 1.0, %v4784_v51  ;;  %v4786_v47 = vpop.eup %4785 }
0x1029   :  { %4789 = vtanh.f32 %v3980_v44  ;;  %v3998_v39 = vadd.f32 1.0, %v4786_v47 }
0x102a   :  { %4791 = vrcp.f32 %v3991_v17 }
0x102b   :  { %4793 = vrcp.f32 %v3998_v39 }
0x1035   :  { %v4788_v41 = vpop.eup %4787 }
0x1036   :  { %v4790_v3 = vpop.eup %4789 }
0x1037   :  { %v4792_v45 = vpop.eup %4791  ;;  %v4005_v7 = vmul.f32 %v4790_v3, %v4788_v41 }
0x1038   :  { %v4004_v30 = vmul.f32 %v4792_v45, %v4002_v62  ;;  %v4794_v1 = vpop.eup %4793 }
0x103a   :  { %v4006_v6 = vadd.f32 %v4005_v7, %v4004_v30 }
0x103c   :  { %4795 = vtanh.f32 %v4006_v6 }
0x1049   :  { %v4796_v53 = vpop.eup %4795 }
0x104a   :  { %v4008_v50 = vmul.f32 %v4796_v53, %v4794_v1 }
0x104c   :  { %v4033_v60 = vrot.slane %v4008_v50, 6 }
0x104e   :  { %4364 = vmatmul.mubr.f32.vlgmr.msra.gmra.mxu0 %v4033_v60 }
0x110e   :  { %v4101_v11 = vpop.f32.mrf.mxu0 }
0x110f   :  { %v4102_v5 = vadd.f32 %v4295_v8, %v4101_v11 }
0x1110   :  { %v4365_v63 = vpop.f32.mrf.mxu0 }
0x1111   :  { %v4105_v16 = vmax.f32 %v4102_v5, 0.0 }
0x1113   :  { %4399 = vmatmul.mubr.f32.vlgmr.msra.gmra.mxu1 %v4105_v16 }
0x11d3   :  { %v4195_v61 = vpop.f32.mrf.mxu1 }
0x11d4   :  { %v4196_v25 = vadd.f32 %v4296_v58, %v4195_v61 }
0x11d5   :  { %v4400_v13 = vpop.f32.mrf.mxu1 }
0x11d6   :  { %4200 = vst.msk [vmem:[#allocation12] sm:$0x3] %vm4199_vm9, %v4196_v25 }
0x11d7   :  { %5036 = shalt.err (!%p5033_p1)
}
0x11d8   :  { %4210 = dma.vmem_to_hbm [thread:$0]  %s4208_s5, 32, %s7166_s12, [#allocation5]  }
0x11d9   :  { %5051 = dma.done.wait [#allocation5], 32  }
0x11da   :  { %5052 = vsyncadd [#allocation5], 4294967264 }
0x11db   :  { %4214 = vsyncpa [#allocation4], 1 }
0x11dc   :  { %4215 = vsyncpa [#allocation7], 1 }
0x11dd   :  { %4216 = vsyncpa [#allocation10], 1 }
0x11de   :  { %4217 = vsyncpa [#allocation5], 1 }

</bundles_post_ra>
